<compile_context>
chip_gen: v6e
topology: v6e:2x2x1
jax: 0.10.0
libtpu: 0.0.40
codegen_flags: <defaults>
</compile_context>

<pallas_src>
import functools

import jax
import jax.numpy as jnp
from jax import lax
from jax.experimental import pallas as pl
from jax.experimental.pallas import tpu as pltpu

LANE = 128      # vreg lane width
SUBLANE = 8     # f32 vreg sublane count


def _ceil_to(x, m):
    return ((x + m - 1) // m) * m


def _pad_to(x, shape):
    pads = [(0, s - d) for d, s in zip(x.shape, shape)]
    return jnp.pad(x, pads)


def _pad_gate_cols(w, hidden, hidden_p):
    """Last dim holds 4 gate blocks (PyTorch order i,f,g,o) of width `hidden`;
    zero-pad each block to `hidden_p` so every gate slice is lane-aligned."""
    parts = jnp.split(w, 4, axis=-1)
    parts = [_pad_to(p, p.shape[:-1] + (hidden_p,)) for p in parts]
    return jnp.concatenate(parts, axis=-1)


def _sigmoid(x):
    # EUP-friendly sigmoid: one tanh (EUP slot) instead of exp + divide on the
    # VALU/div path.  Mathematically identical to jax.nn.sigmoid.
    return 0.5 * jnp.tanh(0.5 * x) + 0.5


def _lstm_cell(gates, c, Hp):
    i_g = _sigmoid(gates[:, 0 * Hp:1 * Hp])
    f_g = _sigmoid(gates[:, 1 * Hp:2 * Hp])
    g_g = jnp.tanh(gates[:, 2 * Hp:3 * Hp])
    o_g = _sigmoid(gates[:, 3 * Hp:4 * Hp])
    c_new = f_g * c + i_g * g_g
    h_new = o_g * jnp.tanh(c_new)
    return h_new, c_new


# -----------------------------------------------------------------------------
# Fused kernel.
# -----------------------------------------------------------------------------
def _seq2seq_kernel(src_x_ref, tgt_x_ref,
                    enc_wih_ref, enc_whh_ref, enc_b_ref,
                    dec_wih_ref, dec_whh_ref, dec_b_ref,
                    w1_ref, b1_ref, w2_ref, b2_ref,
                    logits_ref,
                    xg_sc, y_sc, hid_sc,
                    *, T_src, T_tgt, Bp, Ep, Hp):
    # ---- phase 1 (vocab tile 0 only): the whole sequential recurrence -------
    @pl.when(pl.program_id(0) == 0)
    def _recurrence():
        def project_inputs(x_ref, wih, b_row, T):
            # x @ W_ih^T + b for all time steps, written to scratch in time
            # chunks: one big-M bf16 MXU matmul per chunk, transient footprint
            # bounded to one chunk instead of the whole (T, Bp, 4Hp) value.
            CH = min(T, 16)
            n_full = T // CH

            def chunk(ci, carry):
                t0 = pl.multiple_of(ci * CH, CH)
                xc = x_ref[pl.ds(t0, CH)].reshape(CH * Bp, Ep).astype(jnp.bfloat16)
                g = jnp.dot(xc, wih, preferred_element_type=jnp.float32) + b_row
                xg_sc[pl.ds(t0, CH)] = g.reshape(CH, Bp, 4 * Hp)
                return carry

            lax.fori_loop(0, n_full, chunk, 0)
            rem = T - n_full * CH
            if rem:  # static tail (T not a multiple of CH)
                t0 = n_full * CH
                xc = x_ref[pl.ds(t0, rem)].reshape(rem * Bp, Ep).astype(jnp.bfloat16)
                g = jnp.dot(xc, wih, preferred_element_type=jnp.float32) + b_row
                xg_sc[pl.ds(t0, rem)] = g.reshape(rem, Bp, 4 * Hp)

        def run_lstm(T, whh, h0, c0, save_y):
            # NOTE: this matmul is weight-streaming bound; with Bp << 128 most
            # MXU rows are idle -- batch more sequences/beams if available.
            def step(t, carry):
                h, c = carry
                gates = xg_sc[t] + jnp.dot(h.astype(jnp.bfloat16), whh,
                                           preferred_element_type=jnp.float32)
                h_new, c_new = _lstm_cell(gates, c, Hp)
                if save_y:
                    y_sc[t] = h_new
                return h_new, c_new

            # Steps are serially dependent on h: full unroll only for short T,
            # partial unroll otherwise (bounded program size / compile time).
            return lax.fori_loop(0, T, step, (h0, c0),
                                 unroll=(T if T <= 16 else 8))

        # ---- encoder: only the final (h, c) is kept ----
        project_inputs(src_x_ref, enc_wih_ref[...], enc_b_ref[...], T_src)
        zeros = jnp.zeros((Bp, Hp), jnp.float32)
        h_enc, c_enc = run_lstm(T_src, enc_whh_ref[...], zeros, zeros, False)

        # ---- decoder: hidden states kept in VMEM (xg scratch reused) ----
        project_inputs(tgt_x_ref, dec_wih_ref[...], dec_b_ref[...], T_tgt)
        run_lstm(T_tgt, dec_whh_ref[...], h_enc, c_enc, True)

        # ---- Linear(H, 4H) + ReLU on the full hidden slab, cached in bf16 ---
        # TODO(synk): row-chunk this matmul (and bf16/stream xg_sc) for
        # realistic T so the slabs stay within v7x's 64 MiB VMEM.
        y_all = y_sc[...].reshape(T_tgt * Bp, Hp).astype(jnp.bfloat16)
        hid = jnp.dot(y_all, w1_ref[...],
                      preferred_element_type=jnp.float32) + b1_ref[...]
        hid_sc[...] = jnp.maximum(hid, 0.0).astype(hid_sc.dtype)

    # ---- phase 2 (every vocab tile): logits tile = hid @ w2_tile + b2_tile --
    # Lane-dense (multiple-of-128) stores; the w2 DMA for tile i+1 overlaps
    # this matmul via the BlockSpec pipeline.
    logits_ref[...] = (
        jnp.dot(hid_sc[...], w2_ref[...], preferred_element_type=jnp.float32)
        + b2_ref[...])


def seq2seq_forward_pallas(src_x, tgt_x, enc_wih, enc_whh, enc_b,
                           dec_wih, dec_whh, dec_b, w1, b1, w2, b2, *, tile_v):
    """src_x/tgt_x: (T, Bp, Ep) f32 time-major; LSTM weights pre-transposed and
    bf16; w1: (Hp, Fp) bf16; w2: (Fp, Vp) bf16.  Returns logits (T_tgt*Bp, Vp)."""
    T_src, Bp, Ep = src_x.shape
    T_tgt = tgt_x.shape[0]
    Hp = enc_whh.shape[0]
    Fp = w1.shape[1]
    Vp = w2.shape[1]
    assert Vp % tile_v == 0
    n_vt = Vp // tile_v
    T_max = max(T_src, T_tgt)

    kernel = functools.partial(_seq2seq_kernel, T_src=T_src, T_tgt=T_tgt,
                               Bp=Bp, Ep=Ep, Hp=Hp)

    # Explicit scoped-VMEM budget: (double-buffered) blocks + scratch + headroom.
    block_bytes = (
        4 * Bp * Ep * (T_src + T_tgt)                 # f32 x slabs
        + 2 * 2 * (Ep * 4 * Hp + Hp * 4 * Hp)         # bf16 enc/dec W_ih, W_hh
        + 2 * 4 * (4 * Hp)                            # f32 enc/dec biases
        + 2 * Hp * Fp + 4 * Fp                        # bf16 w1, f32 b1
        + 2 * Fp * tile_v + 4 * tile_v                # bf16 w2 tile, f32 b2 tile
        + 4 * T_tgt * Bp * tile_v)                    # f32 logits tile
    scratch_bytes = (4 * T_max * Bp * 4 * Hp          # f32 x-projection gates
                     + 4 * T_tgt * Bp * Hp            # f32 decoder hidden states
                     + 2 * T_tgt * Bp * Fp)           # bf16 post-ReLU MLP slab
    vmem_limit = int(min(128 * 1024 * 1024,
                         max(32 * 1024 * 1024,
                             2 * block_bytes + scratch_bytes + (4 << 20))))

    grid_spec = pltpu.PrefetchScalarGridSpec(
        num_scalar_prefetch=0,
        grid=(n_vt,),
        in_specs=[
            pl.BlockSpec((T_src, Bp, Ep), lambda v: (0, 0, 0)),
            pl.BlockSpec((T_tgt, Bp, Ep), lambda v: (0, 0, 0)),
            pl.BlockSpec((Ep, 4 * Hp), lambda v: (0, 0)),
            pl.BlockSpec((Hp, 4 * Hp), lambda v: (0, 0)),
            pl.BlockSpec((1, 4 * Hp), lambda v: (0, 0)),
            pl.BlockSpec((Ep, 4 * Hp), lambda v: (0, 0)),
            pl.BlockSpec((Hp, 4 * Hp), lambda v: (0, 0)),
            pl.BlockSpec((1, 4 * Hp), lambda v: (0, 0)),
            pl.BlockSpec((Hp, Fp), lambda v: (0, 0)),
            pl.BlockSpec((1, Fp), lambda v: (0, 0)),
            pl.BlockSpec((Fp, tile_v), lambda v: (0, v)),   # streamed per vocab tile
            pl.BlockSpec((1, tile_v), lambda v: (0, v)),
        ],
        out_specs=pl.BlockSpec((T_tgt * Bp, tile_v), lambda v: (0, v)),
        scratch_shapes=[
            pltpu.VMEM((T_max, Bp, 4 * Hp), jnp.float32),   # x-projection gates
            pltpu.VMEM((T_tgt, Bp, Hp), jnp.float32),       # decoder hidden states
            pltpu.VMEM((T_tgt * Bp, Fp), jnp.bfloat16),     # post-ReLU MLP hidden
        ],
    )

    # Vocab axis is "arbitrary": the recurrence result is carried across it in
    # VMEM scratch (a "parallel" split would leave the second core without it).
    return pl.pallas_call(
        kernel,
        out_shape=jax.ShapeDtypeStruct((T_tgt * Bp, Vp), jnp.float32),
        grid_spec=grid_spec,
        compiler_params=pltpu.CompilerParams(
            dimension_semantics=("arbitrary",),
            vmem_limit_bytes=vmem_limit),
    )(src_x, tgt_x, enc_wih, enc_whh, enc_b, dec_wih, dec_whh, dec_b,
      w1, b1, w2, b2)


# -----------------------------------------------------------------------------
# Full model wrapper.  Embedding gathers + layout padding are plain-JAX glue.
# -----------------------------------------------------------------------------
@jax.jit
def translation_model_forward(params, source_ids, target_ids):
    B, _ = source_ids.shape
    _, T_tgt = target_ids.shape
    E = params["src_emb"].shape[1]
    H = params["enc_whh"].shape[0]
    V = params["out_w2"].shape[1]

    Hp = _ceil_to(H, LANE)            # lane-aligned hidden size
    Ep = _ceil_to(E, LANE)            # lane-aligned embedding size
    Fp = _ceil_to(4 * H, LANE)        # lane-aligned MLP width
    Vp = _ceil_to(V, LANE)            # lane-aligned vocab
    Bp = _ceil_to(B, SUBLANE)         # sublane-aligned batch (layout only)
    tile_v = next(t for t in (512, 256, 128) if Vp % t == 0)

    # Batch-pad token ids (token 0), gather time-major embeddings with the
    # embedding dim zero-padded to a lane multiple (dense x DMA / full MXU K).
    src_ids_p = jnp.pad(source_ids, ((0, Bp - B), (0, 0)))
    tgt_ids_p = jnp.pad(target_ids, ((0, Bp - B), (0, 0)))
    src_emb = _pad_to(params["src_emb"], (params["src_emb"].shape[0], Ep))
    tgt_emb = _pad_to(params["tgt_emb"], (params["tgt_emb"].shape[0], Ep))
    src_x = src_emb[src_ids_p.T]                 # (T_src, Bp, Ep)
    tgt_x = tgt_emb[tgt_ids_p.T]                 # (T_tgt, Bp, Ep)

    # LSTM weights: per-gate columns padded to Hp, rows padded to Ep/Hp, cast
    # to bf16 (MXU-native, halves weight DMA/VMEM).  Biases stay f32.
    def pad_lstm(wih, whh, b):
        wih_p = _pad_to(_pad_gate_cols(wih, H, Hp), (Ep, 4 * Hp)).astype(jnp.bfloat16)
        whh_p = _pad_to(_pad_gate_cols(whh, H, Hp), (Hp, 4 * Hp)).astype(jnp.bfloat16)
        return wih_p, whh_p, _pad_gate_cols(b, H, Hp)

    enc_wih, enc_whh, enc_b = pad_lstm(params["enc_wih"], params["enc_whh"],
                                       params["enc_b"])
    dec_wih, dec_whh, dec_b = pad_lstm(params["dec_wih"], params["dec_whh"],
                                       params["dec_b"])

    out_w1 = _pad_to(params["out_w1"], (Hp, Fp)).astype(jnp.bfloat16)
    out_b1 = _pad_to(params["out_b1"], (1, Fp))
    out_w2 = _pad_to(params["out_w2"], (Fp, Vp)).astype(jnp.bfloat16)
    out_b2 = _pad_to(params["out_b2"], (1, Vp))

    logits_flat = seq2seq_forward_pallas(
        src_x, tgt_x, enc_wih, enc_whh, enc_b, dec_wih, dec_whh, dec_b,
        out_w1, out_b1, out_w2, out_b2, tile_v=tile_v)    # (T_tgt*Bp, Vp)

    logits = logits_flat.reshape(T_tgt, Bp, Vp)
    return jnp.transpose(logits, (1, 0, 2))[:B, :, :V]


# -----------------------------------------------------------------------------
# Pure-JAX reference (unpadded, f32) for correctness check.
# -----------------------------------------------------------------------------
def _lstm_ref(x_bte, h0, c0, wih_t, whh_t, b_row):
    H = h0.shape[1]

    def step(carry, x_t):
        h, c = carry
        gates = x_t @ wih_t + h @ whh_t + b_row
        i = jax.nn.sigmoid(gates[:, 0 * H:1 * H])
        f = jax.nn.sigmoid(gates[:, 1 * H:2 * H])
        g = jnp.tanh(gates[:, 2 * H:3 * H])
        o = jax.nn.sigmoid(gates[:, 3 * H:4 * H])
        c_new = f * c + i * g
        h_new = o * jnp.tanh(c_new)
        return (h_new, c_new), h_new

    (h_f, c_f), ys = lax.scan(step, (h0, c0), jnp.transpose(x_bte, (1, 0, 2)))
    return jnp.transpose(ys, (1, 0, 2)), h_f, c_f


def translation_model_ref(params, source_ids, target_ids):
    src_embed = params["src_emb"][source_ids]
    tgt_embed = params["tgt_emb"][target_ids]
    B = source_ids.shape[0]
    H = params["enc_whh"].shape[0]
    zeros = jnp.zeros((B, H), jnp.float32)
    _, enc_h, enc_c = _lstm_ref(src_embed, zeros, zeros,
                                params["enc_wih"], params["enc_whh"],
                                params["enc_b"])
    dec_out, _, _ = _lstm_ref(tgt_embed, enc_h, enc_c,
                              params["dec_wih"], params["dec_whh"],
                              params["dec_b"])
    h = jnp.maximum(dec_out @ params["out_w1"] + params["out_b1"], 0.0)
    return h @ params["out_w2"] + params["out_b2"]


# -----------------------------------------------------------------------------
if __name__ == "__main__":
    # TGT_VOCAB=384 -> padded vocab 384 -> 3 vocab tiles of 128 (exercises the
    # tiled projection + pl.when-gated recurrence path).
    SRC_VOCAB, TGT_VOCAB = 64, 384
    EMBED, HIDDEN = 32, 32
    B, T_SRC, T_TGT = 2, 8, 8

    key = jax.random.PRNGKey(0)
    ks = jax.random.split(key, 12)

    def init(k, shape, scale=0.1):
        return (scale * jax.random.normal(k, shape)).astype(jnp.float32)

    params = {
        "src_emb": init(ks[0], (SRC_VOCAB, EMBED)),
        "tgt_emb": init(ks[1], (TGT_VOCAB, EMBED)),
        # LSTM weights stored pre-transposed: W_ih^T (E, 4H), W_hh^T (H, 4H);
        # bias row = b_ih + b_hh (PyTorch keeps them separate; sum is equivalent).
        "enc_wih": init(ks[2], (EMBED, 4 * HIDDEN)),
        "enc_whh": init(ks[3], (HIDDEN, 4 * HIDDEN)),
        "enc_b":   init(ks[4], (1, 4 * HIDDEN)),
        "dec_wih": init(ks[5], (EMBED, 4 * HIDDEN)),
        "dec_whh": init(ks[6], (HIDDEN, 4 * HIDDEN)),
        "dec_b":   init(ks[7], (1, 4 * HIDDEN)),
        "out_w1":  init(ks[8], (HIDDEN, 4 * HIDDEN)),
        "out_b1":  init(ks[9], (1, 4 * HIDDEN)),
        "out_w2":  init(ks[10], (4 * HIDDEN, TGT_VOCAB)),
        "out_b2":  init(ks[11], (1, TGT_VOCAB)),
    }

    kid = jax.random.split(jax.random.PRNGKey(1), 2)
    source_ids = jax.random.randint(kid[0], (B, T_SRC), 0, SRC_VOCAB, dtype=jnp.int32)
    target_ids = jax.random.randint(kid[1], (B, T_TGT), 0, TGT_VOCAB, dtype=jnp.int32)

    logits = translation_model_forward(params, source_ids, target_ids)
    logits = jax.block_until_ready(logits)
    assert logits.shape == (B, T_TGT, TGT_VOCAB), logits.shape

    ref = translation_model_ref(params, source_ids, target_ids)
    # bf16 MXU operands -> loosened tolerance vs the f32 reference.
    assert jnp.allclose(logits, ref, atol=2e-2, rtol=2e-2), \
        float(jnp.max(jnp.abs(logits - ref)))

    print("KERNEL_OK")
</pallas_src>

<mosaic_0001>
module attributes {stable_mosaic.version = 11 : i64} {
  func.func @_seq2seq_kernel(%arg0: i32, %arg1: memref<8x8x128xf32, #tpu.memory_space<vmem>>, %arg2: memref<8x8x128xf32, #tpu.memory_space<vmem>>, %arg3: memref<128x512xbf16, #tpu.memory_space<vmem>>, %arg4: memref<128x512xbf16, #tpu.memory_space<vmem>>, %arg5: memref<1x512xf32, #tpu.memory_space<vmem>>, %arg6: memref<128x512xbf16, #tpu.memory_space<vmem>>, %arg7: memref<128x512xbf16, #tpu.memory_space<vmem>>, %arg8: memref<1x512xf32, #tpu.memory_space<vmem>>, %arg9: memref<128x128xbf16, #tpu.memory_space<vmem>>, %arg10: memref<1x128xf32, #tpu.memory_space<vmem>>, %arg11: memref<128x128xbf16, #tpu.memory_space<vmem>>, %arg12: memref<1x128xf32, #tpu.memory_space<vmem>>, %arg13: memref<64x128xf32, #tpu.memory_space<vmem>>, %arg14: memref<8x8x512xf32, #tpu.memory_space<vmem>>, %arg15: memref<8x8x128xf32, #tpu.memory_space<vmem>>, %arg16: memref<64x128xbf16, #tpu.memory_space<vmem>>) attributes {dimension_semantics = [#tpu.dimension_semantics<arbitrary>], iteration_bounds = array<i64: 3>, scalar_prefetch = 0 : i64, scratch_operands = 3 : i64, tpu.core_type = #tpu.core_type<tc>, window_params = [{pipeline_mode = #tpu.pipeline_mode<synchronous>, transform_indices = @transform_0, window_bounds = array<i64: 8, 8, 128>}, {pipeline_mode = #tpu.pipeline_mode<synchronous>, transform_indices = @transform_1, window_bounds = array<i64: 8, 8, 128>}, {pipeline_mode = #tpu.pipeline_mode<synchronous>, transform_indices = @transform_2, window_bounds = array<i64: 128, 512>}, {pipeline_mode = #tpu.pipeline_mode<synchronous>, transform_indices = @transform_3, window_bounds = array<i64: 128, 512>}, {pipeline_mode = #tpu.pipeline_mode<synchronous>, transform_indices = @transform_4, window_bounds = array<i64: 1, 512>}, {pipeline_mode = #tpu.pipeline_mode<synchronous>, transform_indices = @transform_5, window_bounds = array<i64: 128, 512>}, {pipeline_mode = #tpu.pipeline_mode<synchronous>, transform_indices = @transform_6, window_bounds = array<i64: 128, 512>}, {pipeline_mode = #tpu.pipeline_mode<synchronous>, transform_indices = @transform_7, window_bounds = array<i64: 1, 512>}, {pipeline_mode = #tpu.pipeline_mode<synchronous>, transform_indices = @transform_8, window_bounds = array<i64: 128, 128>}, {pipeline_mode = #tpu.pipeline_mode<synchronous>, transform_indices = @transform_9, window_bounds = array<i64: 1, 128>}, {transform_indices = @transform_10, window_bounds = array<i64: 128, 128>}, {transform_indices = @transform_11, window_bounds = array<i64: 1, 128>}, {transform_indices = @transform_12, window_bounds = array<i64: 64, 128>}]} {
    %c0_i32 = arith.constant 0 : i32
    %0 = arith.cmpi eq, %arg0, %c0_i32 : i32
    %1 = arith.extui %0 : i1 to i32
    %c0_i32_0 = arith.constant 0 : i32
    %2 = arith.cmpi ne, %1, %c0_i32_0 : i32
    scf.if %2 {
      %c0_8 = arith.constant 0 : index
      %c0_9 = arith.constant 0 : index
      %10 = vector.load %arg3[%c0_8, %c0_9] : memref<128x512xbf16, #tpu.memory_space<vmem>>, vector<128x512xbf16>
      %c0_10 = arith.constant 0 : index
      %c0_11 = arith.constant 0 : index
      %11 = vector.load %arg5[%c0_10, %c0_11] : memref<1x512xf32, #tpu.memory_space<vmem>>, vector<1x512xf32>
      %c0_i32_12 = arith.constant 0 : i32
      %c8_i32 = arith.constant 8 : i32
      %12 = arith.muli %c0_i32_12, %c8_i32 : i32
      %13 = tpu.assume_multiple %12, 8 : i32
      %14 = arith.index_cast %13 : i32 to index
      %c0_13 = arith.constant 0 : index
      %c0_14 = arith.constant 0 : index
      %15 = vector.load %arg1[%14, %c0_13, %c0_14] : memref<8x8x128xf32, #tpu.memory_space<vmem>>, vector<8x8x128xf32>
      %16 = vector.shape_cast %15 : vector<8x8x128xf32> to vector<64x128xf32>
      %17 = arith.truncf %16 : vector<64x128xf32> to vector<64x128xbf16>
      %cst_15 = arith.constant dense<0.000000e+00> : vector<64x512xf32>
      %18 = tpu.matmul %17, %10, %cst_15 {dimension_numbers = #tpu.dot_dimension_numbers<[1], [0], [0], [1], [0, 0, 1, 1], [], []>} : vector<64x128xbf16>, vector<128x512xbf16>, vector<64x512xf32> -> vector<64x512xf32>
      %19 = vector.broadcast %11 : vector<1x512xf32> to vector<64x512xf32>
      %20 = arith.addf %18, %19 : vector<64x512xf32>
      %21 = vector.shape_cast %20 : vector<64x512xf32> to vector<8x8x512xf32>
      %22 = arith.index_cast %13 : i32 to index
      %c0_16 = arith.constant 0 : index
      %c0_17 = arith.constant 0 : index
      %23 = vector.load %arg14[%22, %c0_16, %c0_17] : memref<8x8x512xf32, #tpu.memory_space<vmem>>, vector<8x8x512xf32>
      tpu.vector_store %arg14[%22, %c0_16, %c0_17], %21 {strides = array<i32>} : memref<8x8x512xf32, #tpu.memory_space<vmem>>, vector<8x8x512xf32>,
      %c1_i32 = arith.constant 1 : i32
      %cst_18 = arith.constant 0.000000e+00 : f32
      %24 = vector.broadcast %cst_18 : f32 to vector<8x128xf32>
      %c0_19 = arith.constant 0 : index
      %c0_20 = arith.constant 0 : index
      %25 = vector.load %arg4[%c0_19, %c0_20] : memref<128x512xbf16, #tpu.memory_space<vmem>>, vector<128x512xbf16>
      %c0_i32_21 = arith.constant 0 : i32
      %26 = arith.index_cast %c0_i32_21 : i32 to index
      %c0_22 = arith.constant 0 : index
      %c0_23 = arith.constant 0 : index
      %27 = vector.load %arg14[%26, %c0_22, %c0_23] : memref<8x8x512xf32, #tpu.memory_space<vmem>>, vector<1x8x512xf32>
      %28 = vector.shape_cast %27 : vector<1x8x512xf32> to vector<8x512xf32>
      %29 = arith.truncf %24 : vector<8x128xf32> to vector<8x128xbf16>
      %cst_24 = arith.constant dense<0.000000e+00> : vector<8x512xf32>
      %30 = tpu.matmul %29, %25, %cst_24 {dimension_numbers = #tpu.dot_dimension_numbers<[1], [0], [0], [1], [0, 0, 1, 1], [], []>} : vector<8x128xbf16>, vector<128x512xbf16>, vector<8x512xf32> -> vector<8x512xf32>
      %31 = arith.addf %28, %30 : vector<8x512xf32>
      %32 = vector.extract_strided_slice %31 {offsets = [0, 0], sizes = [8, 128], strides = [1, 1]} : vector<8x512xf32> to vector<8x128xf32>
      %cst_25 = arith.constant 5.000000e-01 : f32
      %33 = vector.broadcast %cst_25 : f32 to vector<8x128xf32>
      %34 = arith.mulf %33, %32 : vector<8x128xf32>
      %35 = math.tanh %34 : vector<8x128xf32>
      %cst_26 = arith.constant 5.000000e-01 : f32
      %36 = vector.broadcast %cst_26 : f32 to vector<8x128xf32>
      %37 = arith.mulf %36, %35 : vector<8x128xf32>
      %cst_27 = arith.constant 5.000000e-01 : f32
      %38 = vector.broadcast %cst_27 : f32 to vector<8x128xf32>
      %39 = arith.addf %37, %38 : vector<8x128xf32>
      %40 = vector.extract_strided_slice %31 {offsets = [0, 128], sizes = [8, 128], strides = [1, 1]} : vector<8x512xf32> to vector<8x128xf32>
      %cst_28 = arith.constant 5.000000e-01 : f32
      %41 = vector.broadcast %cst_28 : f32 to vector<8x128xf32>
      %42 = arith.mulf %41, %40 : vector<8x128xf32>
      %43 = math.tanh %42 : vector<8x128xf32>
      %cst_29 = arith.constant 5.000000e-01 : f32
      %44 = vector.broadcast %cst_29 : f32 to vector<8x128xf32>
      %45 = arith.mulf %44, %43 : vector<8x128xf32>
      %cst_30 = arith.constant 5.000000e-01 : f32
      %46 = vector.broadcast %cst_30 : f32 to vector<8x128xf32>
      %47 = arith.addf %45, %46 : vector<8x128xf32>
      %48 = vector.extract_strided_slice %31 {offsets = [0, 256], sizes = [8, 128], strides = [1, 1]} : vector<8x512xf32> to vector<8x128xf32>
      %49 = math.tanh %48 : vector<8x128xf32>
      %50 = vector.extract_strided_slice %31 {offsets = [0, 384], sizes = [8, 128], strides = [1, 1]} : vector<8x512xf32> to vector<8x128xf32>
      %cst_31 = arith.constant 5.000000e-01 : f32
      %51 = vector.broadcast %cst_31 : f32 to vector<8x128xf32>
      %52 = arith.mulf %51, %50 : vector<8x128xf32>
      %53 = math.tanh %52 : vector<8x128xf32>
      %cst_32 = arith.constant 5.000000e-01 : f32
      %54 = vector.broadcast %cst_32 : f32 to vector<8x128xf32>
      %55 = arith.mulf %54, %53 : vector<8x128xf32>
      %cst_33 = arith.constant 5.000000e-01 : f32
      %56 = vector.broadcast %cst_33 : f32 to vector<8x128xf32>
      %57 = arith.addf %55, %56 : vector<8x128xf32>
      %58 = arith.mulf %47, %24 : vector<8x128xf32>
      %59 = arith.mulf %39, %49 : vector<8x128xf32>
      %60 = arith.addf %58, %59 : vector<8x128xf32>
      %61 = math.tanh %60 : vector<8x128xf32>
      %62 = arith.mulf %57, %61 : vector<8x128xf32>
      %c1_i32_34 = arith.constant 1 : i32
      %63 = arith.index_cast %c1_i32_34 : i32 to index
      %c0_35 = arith.constant 0 : index
      %c0_36 = arith.constant 0 : index
      %64 = vector.load %arg14[%63, %c0_35, %c0_36] : memref<8x8x512xf32, #tpu.memory_space<vmem>>, vector<1x8x512xf32>
      %65 = vector.shape_cast %64 : vector<1x8x512xf32> to vector<8x512xf32>
      %66 = arith.truncf %62 : vector<8x128xf32> to vector<8x128xbf16>
      %cst_37 = arith.constant dense<0.000000e+00> : vector<8x512xf32>
      %67 = tpu.matmul %66, %25, %cst_37 {dimension_numbers = #tpu.dot_dimension_numbers<[1], [0], [0], [1], [0, 0, 1, 1], [], []>} : vector<8x128xbf16>, vector<128x512xbf16>, vector<8x512xf32> -> vector<8x512xf32>
      %68 = arith.addf %65, %67 : vector<8x512xf32>
      %69 = vector.extract_strided_slice %68 {offsets = [0, 0], sizes = [8, 128], strides = [1, 1]} : vector<8x512xf32> to vector<8x128xf32>
      %cst_38 = arith.constant 5.000000e-01 : f32
      %70 = vector.broadcast %cst_38 : f32 to vector<8x128xf32>
      %71 = arith.mulf %70, %69 : vector<8x128xf32>
      %72 = math.tanh %71 : vector<8x128xf32>
      %cst_39 = arith.constant 5.000000e-01 : f32
      %73 = vector.broadcast %cst_39 : f32 to vector<8x128xf32>
      %74 = arith.mulf %73, %72 : vector<8x128xf32>
      %cst_40 = arith.constant 5.000000e-01 : f32
      %75 = vector.broadcast %cst_40 : f32 to vector<8x128xf32>
      %76 = arith.addf %74, %75 : vector<8x128xf32>
      %77 = vector.extract_strided_slice %68 {offsets = [0, 128], sizes = [8, 128], strides = [1, 1]} : vector<8x512xf32> to vector<8x128xf32>
      %cst_41 = arith.constant 5.000000e-01 : f32
      %78 = vector.broadcast %cst_41 : f32 to vector<8x128xf32>
      %79 = arith.mulf %78, %77 : vector<8x128xf32>
      %80 = math.tanh %79 : vector<8x128xf32>
      %cst_42 = arith.constant 5.000000e-01 : f32
      %81 = vector.broadcast %cst_42 : f32 to vector<8x128xf32>
      %82 = arith.mulf %81, %80 : vector<8x128xf32>
      %cst_43 = arith.constant 5.000000e-01 : f32
      %83 = vector.broadcast %cst_43 : f32 to vector<8x128xf32>
      %84 = arith.addf %82, %83 : vector<8x128xf32>
      %85 = vector.extract_strided_slice %68 {offsets = [0, 256], sizes = [8, 128], strides = [1, 1]} : vector<8x512xf32> to vector<8x128xf32>
      %86 = math.tanh %85 : vector<8x128xf32>
      %87 = vector.extract_strided_slice %68 {offsets = [0, 384], sizes = [8, 128], strides = [1, 1]} : vector<8x512xf32> to vector<8x128xf32>
      %cst_44 = arith.constant 5.000000e-01 : f32
      %88 = vector.broadcast %cst_44 : f32 to vector<8x128xf32>
      %89 = arith.mulf %88, %87 : vector<8x128xf32>
      %90 = math.tanh %89 : vector<8x128xf32>
      %cst_45 = arith.constant 5.000000e-01 : f32
      %91 = vector.broadcast %cst_45 : f32 to vector<8x128xf32>
      %92 = arith.mulf %91, %90 : vector<8x128xf32>
      %cst_46 = arith.constant 5.000000e-01 : f32
      %93 = vector.broadcast %cst_46 : f32 to vector<8x128xf32>
      %94 = arith.addf %92, %93 : vector<8x128xf32>
      %95 = arith.mulf %84, %60 : vector<8x128xf32>
      %96 = arith.mulf %76, %86 : vector<8x128xf32>
      %97 = arith.addf %95, %96 : vector<8x128xf32>
      %98 = math.tanh %97 : vector<8x128xf32>
      %99 = arith.mulf %94, %98 : vector<8x128xf32>
      %c2_i32 = arith.constant 2 : i32
      %100 = arith.index_cast %c2_i32 : i32 to index
      %c0_47 = arith.constant 0 : index
      %c0_48 = arith.constant 0 : index
      %101 = vector.load %arg14[%100, %c0_47, %c0_48] : memref<8x8x512xf32, #tpu.memory_space<vmem>>, vector<1x8x512xf32>
      %102 = vector.shape_cast %101 : vector<1x8x512xf32> to vector<8x512xf32>
      %103 = arith.truncf %99 : vector<8x128xf32> to vector<8x128xbf16>
      %cst_49 = arith.constant dense<0.000000e+00> : vector<8x512xf32>
      %104 = tpu.matmul %103, %25, %cst_49 {dimension_numbers = #tpu.dot_dimension_numbers<[1], [0], [0], [1], [0, 0, 1, 1], [], []>} : vector<8x128xbf16>, vector<128x512xbf16>, vector<8x512xf32> -> vector<8x512xf32>
      %105 = arith.addf %102, %104 : vector<8x512xf32>
      %106 = vector.extract_strided_slice %105 {offsets = [0, 0], sizes = [8, 128], strides = [1, 1]} : vector<8x512xf32> to vector<8x128xf32>
      %cst_50 = arith.constant 5.000000e-01 : f32
      %107 = vector.broadcast %cst_50 : f32 to vector<8x128xf32>
      %108 = arith.mulf %107, %106 : vector<8x128xf32>
      %109 = math.tanh %108 : vector<8x128xf32>
      %cst_51 = arith.constant 5.000000e-01 : f32
      %110 = vector.broadcast %cst_51 : f32 to vector<8x128xf32>
      %111 = arith.mulf %110, %109 : vector<8x128xf32>
      %cst_52 = arith.constant 5.000000e-01 : f32
      %112 = vector.broadcast %cst_52 : f32 to vector<8x128xf32>
      %113 = arith.addf %111, %112 : vector<8x128xf32>
      %114 = vector.extract_strided_slice %105 {offsets = [0, 128], sizes = [8, 128], strides = [1, 1]} : vector<8x512xf32> to vector<8x128xf32>
      %cst_53 = arith.constant 5.000000e-01 : f32
      %115 = vector.broadcast %cst_53 : f32 to vector<8x128xf32>
      %116 = arith.mulf %115, %114 : vector<8x128xf32>
      %117 = math.tanh %116 : vector<8x128xf32>
      %cst_54 = arith.constant 5.000000e-01 : f32
      %118 = vector.broadcast %cst_54 : f32 to vector<8x128xf32>
      %119 = arith.mulf %118, %117 : vector<8x128xf32>
      %cst_55 = arith.constant 5.000000e-01 : f32
      %120 = vector.broadcast %cst_55 : f32 to vector<8x128xf32>
      %121 = arith.addf %119, %120 : vector<8x128xf32>
      %122 = vector.extract_strided_slice %105 {offsets = [0, 256], sizes = [8, 128], strides = [1, 1]} : vector<8x512xf32> to vector<8x128xf32>
      %123 = math.tanh %122 : vector<8x128xf32>
      %124 = vector.extract_strided_slice %105 {offsets = [0, 384], sizes = [8, 128], strides = [1, 1]} : vector<8x512xf32> to vector<8x128xf32>
      %cst_56 = arith.constant 5.000000e-01 : f32
      %125 = vector.broadcast %cst_56 : f32 to vector<8x128xf32>
      %126 = arith.mulf %125, %124 : vector<8x128xf32>
      %127 = math.tanh %126 : vector<8x128xf32>
      %cst_57 = arith.constant 5.000000e-01 : f32
      %128 = vector.broadcast %cst_57 : f32 to vector<8x128xf32>
      %129 = arith.mulf %128, %127 : vector<8x128xf32>
      %cst_58 = arith.constant 5.000000e-01 : f32
      %130 = vector.broadcast %cst_58 : f32 to vector<8x128xf32>
      %131 = arith.addf %129, %130 : vector<8x128xf32>
      %132 = arith.mulf %121, %97 : vector<8x128xf32>
      %133 = arith.mulf %113, %123 : vector<8x128xf32>
      %134 = arith.addf %132, %133 : vector<8x128xf32>
      %135 = math.tanh %134 : vector<8x128xf32>
      %136 = arith.mulf %131, %135 : vector<8x128xf32>
      %c3_i32 = arith.constant 3 : i32
      %137 = arith.index_cast %c3_i32 : i32 to index
      %c0_59 = arith.constant 0 : index
      %c0_60 = arith.constant 0 : index
      %138 = vector.load %arg14[%137, %c0_59, %c0_60] : memref<8x8x512xf32, #tpu.memory_space<vmem>>, vector<1x8x512xf32>
      %139 = vector.shape_cast %138 : vector<1x8x512xf32> to vector<8x512xf32>
      %140 = arith.truncf %136 : vector<8x128xf32> to vector<8x128xbf16>
      %cst_61 = arith.constant dense<0.000000e+00> : vector<8x512xf32>
      %141 = tpu.matmul %140, %25, %cst_61 {dimension_numbers = #tpu.dot_dimension_numbers<[1], [0], [0], [1], [0, 0, 1, 1], [], []>} : vector<8x128xbf16>, vector<128x512xbf16>, vector<8x512xf32> -> vector<8x512xf32>
      %142 = arith.addf %139, %141 : vector<8x512xf32>
      %143 = vector.extract_strided_slice %142 {offsets = [0, 0], sizes = [8, 128], strides = [1, 1]} : vector<8x512xf32> to vector<8x128xf32>
      %cst_62 = arith.constant 5.000000e-01 : f32
      %144 = vector.broadcast %cst_62 : f32 to vector<8x128xf32>
      %145 = arith.mulf %144, %143 : vector<8x128xf32>
      %146 = math.tanh %145 : vector<8x128xf32>
      %cst_63 = arith.constant 5.000000e-01 : f32
      %147 = vector.broadcast %cst_63 : f32 to vector<8x128xf32>
      %148 = arith.mulf %147, %146 : vector<8x128xf32>
      %cst_64 = arith.constant 5.000000e-01 : f32
      %149 = vector.broadcast %cst_64 : f32 to vector<8x128xf32>
      %150 = arith.addf %148, %149 : vector<8x128xf32>
      %151 = vector.extract_strided_slice %142 {offsets = [0, 128], sizes = [8, 128], strides = [1, 1]} : vector<8x512xf32> to vector<8x128xf32>
      %cst_65 = arith.constant 5.000000e-01 : f32
      %152 = vector.broadcast %cst_65 : f32 to vector<8x128xf32>
      %153 = arith.mulf %152, %151 : vector<8x128xf32>
      %154 = math.tanh %153 : vector<8x128xf32>
      %cst_66 = arith.constant 5.000000e-01 : f32
      %155 = vector.broadcast %cst_66 : f32 to vector<8x128xf32>
      %156 = arith.mulf %155, %154 : vector<8x128xf32>
      %cst_67 = arith.constant 5.000000e-01 : f32
      %157 = vector.broadcast %cst_67 : f32 to vector<8x128xf32>
      %158 = arith.addf %156, %157 : vector<8x128xf32>
      %159 = vector.extract_strided_slice %142 {offsets = [0, 256], sizes = [8, 128], strides = [1, 1]} : vector<8x512xf32> to vector<8x128xf32>
      %160 = math.tanh %159 : vector<8x128xf32>
      %161 = vector.extract_strided_slice %142 {offsets = [0, 384], sizes = [8, 128], strides = [1, 1]} : vector<8x512xf32> to vector<8x128xf32>
      %cst_68 = arith.constant 5.000000e-01 : f32
      %162 = vector.broadcast %cst_68 : f32 to vector<8x128xf32>
      %163 = arith.mulf %162, %161 : vector<8x128xf32>
      %164 = math.tanh %163 : vector<8x128xf32>
      %cst_69 = arith.constant 5.000000e-01 : f32
      %165 = vector.broadcast %cst_69 : f32 to vector<8x128xf32>
      %166 = arith.mulf %165, %164 : vector<8x128xf32>
      %cst_70 = arith.constant 5.000000e-01 : f32
      %167 = vector.broadcast %cst_70 : f32 to vector<8x128xf32>
      %168 = arith.addf %166, %167 : vector<8x128xf32>
      %169 = arith.mulf %158, %134 : vector<8x128xf32>
      %170 = arith.mulf %150, %160 : vector<8x128xf32>
      %171 = arith.addf %169, %170 : vector<8x128xf32>
      %172 = math.tanh %171 : vector<8x128xf32>
      %173 = arith.mulf %168, %172 : vector<8x128xf32>
      %c4_i32 = arith.constant 4 : i32
      %174 = arith.index_cast %c4_i32 : i32 to index
      %c0_71 = arith.constant 0 : index
      %c0_72 = arith.constant 0 : index
      %175 = vector.load %arg14[%174, %c0_71, %c0_72] : memref<8x8x512xf32, #tpu.memory_space<vmem>>, vector<1x8x512xf32>
      %176 = vector.shape_cast %175 : vector<1x8x512xf32> to vector<8x512xf32>
      %177 = arith.truncf %173 : vector<8x128xf32> to vector<8x128xbf16>
      %cst_73 = arith.constant dense<0.000000e+00> : vector<8x512xf32>
      %178 = tpu.matmul %177, %25, %cst_73 {dimension_numbers = #tpu.dot_dimension_numbers<[1], [0], [0], [1], [0, 0, 1, 1], [], []>} : vector<8x128xbf16>, vector<128x512xbf16>, vector<8x512xf32> -> vector<8x512xf32>
      %179 = arith.addf %176, %178 : vector<8x512xf32>
      %180 = vector.extract_strided_slice %179 {offsets = [0, 0], sizes = [8, 128], strides = [1, 1]} : vector<8x512xf32> to vector<8x128xf32>
      %cst_74 = arith.constant 5.000000e-01 : f32
      %181 = vector.broadcast %cst_74 : f32 to vector<8x128xf32>
      %182 = arith.mulf %181, %180 : vector<8x128xf32>
      %183 = math.tanh %182 : vector<8x128xf32>
      %cst_75 = arith.constant 5.000000e-01 : f32
      %184 = vector.broadcast %cst_75 : f32 to vector<8x128xf32>
      %185 = arith.mulf %184, %183 : vector<8x128xf32>
      %cst_76 = arith.constant 5.000000e-01 : f32
      %186 = vector.broadcast %cst_76 : f32 to vector<8x128xf32>
      %187 = arith.addf %185, %186 : vector<8x128xf32>
      %188 = vector.extract_strided_slice %179 {offsets = [0, 128], sizes = [8, 128], strides = [1, 1]} : vector<8x512xf32> to vector<8x128xf32>
      %cst_77 = arith.constant 5.000000e-01 : f32
      %189 = vector.broadcast %cst_77 : f32 to vector<8x128xf32>
      %190 = arith.mulf %189, %188 : vector<8x128xf32>
      %191 = math.tanh %190 : vector<8x128xf32>
      %cst_78 = arith.constant 5.000000e-01 : f32
      %192 = vector.broadcast %cst_78 : f32 to vector<8x128xf32>
      %193 = arith.mulf %192, %191 : vector<8x128xf32>
      %cst_79 = arith.constant 5.000000e-01 : f32
      %194 = vector.broadcast %cst_79 : f32 to vector<8x128xf32>
      %195 = arith.addf %193, %194 : vector<8x128xf32>
      %196 = vector.extract_strided_slice %179 {offsets = [0, 256], sizes = [8, 128], strides = [1, 1]} : vector<8x512xf32> to vector<8x128xf32>
      %197 = math.tanh %196 : vector<8x128xf32>
      %198 = vector.extract_strided_slice %179 {offsets = [0, 384], sizes = [8, 128], strides = [1, 1]} : vector<8x512xf32> to vector<8x128xf32>
      %cst_80 = arith.constant 5.000000e-01 : f32
      %199 = vector.broadcast %cst_80 : f32 to vector<8x128xf32>
      %200 = arith.mulf %199, %198 : vector<8x128xf32>
      %201 = math.tanh %200 : vector<8x128xf32>
      %cst_81 = arith.constant 5.000000e-01 : f32
      %202 = vector.broadcast %cst_81 : f32 to vector<8x128xf32>
      %203 = arith.mulf %202, %201 : vector<8x128xf32>
      %cst_82 = arith.constant 5.000000e-01 : f32
      %204 = vector.broadcast %cst_82 : f32 to vector<8x128xf32>
      %205 = arith.addf %203, %204 : vector<8x128xf32>
      %206 = arith.mulf %195, %171 : vector<8x128xf32>
      %207 = arith.mulf %187, %197 : vector<8x128xf32>
      %208 = arith.addf %206, %207 : vector<8x128xf32>
      %209 = math.tanh %208 : vector<8x128xf32>
      %210 = arith.mulf %205, %209 : vector<8x128xf32>
      %c5_i32 = arith.constant 5 : i32
      %211 = arith.index_cast %c5_i32 : i32 to index
      %c0_83 = arith.constant 0 : index
      %c0_84 = arith.constant 0 : index
      %212 = vector.load %arg14[%211, %c0_83, %c0_84] : memref<8x8x512xf32, #tpu.memory_space<vmem>>, vector<1x8x512xf32>
      %213 = vector.shape_cast %212 : vector<1x8x512xf32> to vector<8x512xf32>
      %214 = arith.truncf %210 : vector<8x128xf32> to vector<8x128xbf16>
      %cst_85 = arith.constant dense<0.000000e+00> : vector<8x512xf32>
      %215 = tpu.matmul %214, %25, %cst_85 {dimension_numbers = #tpu.dot_dimension_numbers<[1], [0], [0], [1], [0, 0, 1, 1], [], []>} : vector<8x128xbf16>, vector<128x512xbf16>, vector<8x512xf32> -> vector<8x512xf32>
      %216 = arith.addf %213, %215 : vector<8x512xf32>
      %217 = vector.extract_strided_slice %216 {offsets = [0, 0], sizes = [8, 128], strides = [1, 1]} : vector<8x512xf32> to vector<8x128xf32>
      %cst_86 = arith.constant 5.000000e-01 : f32
      %218 = vector.broadcast %cst_86 : f32 to vector<8x128xf32>
      %219 = arith.mulf %218, %217 : vector<8x128xf32>
      %220 = math.tanh %219 : vector<8x128xf32>
      %cst_87 = arith.constant 5.000000e-01 : f32
      %221 = vector.broadcast %cst_87 : f32 to vector<8x128xf32>
      %222 = arith.mulf %221, %220 : vector<8x128xf32>
      %cst_88 = arith.constant 5.000000e-01 : f32
      %223 = vector.broadcast %cst_88 : f32 to vector<8x128xf32>
      %224 = arith.addf %222, %223 : vector<8x128xf32>
      %225 = vector.extract_strided_slice %216 {offsets = [0, 128], sizes = [8, 128], strides = [1, 1]} : vector<8x512xf32> to vector<8x128xf32>
      %cst_89 = arith.constant 5.000000e-01 : f32
      %226 = vector.broadcast %cst_89 : f32 to vector<8x128xf32>
      %227 = arith.mulf %226, %225 : vector<8x128xf32>
      %228 = math.tanh %227 : vector<8x128xf32>
      %cst_90 = arith.constant 5.000000e-01 : f32
      %229 = vector.broadcast %cst_90 : f32 to vector<8x128xf32>
      %230 = arith.mulf %229, %228 : vector<8x128xf32>
      %cst_91 = arith.constant 5.000000e-01 : f32
      %231 = vector.broadcast %cst_91 : f32 to vector<8x128xf32>
      %232 = arith.addf %230, %231 : vector<8x128xf32>
      %233 = vector.extract_strided_slice %216 {offsets = [0, 256], sizes = [8, 128], strides = [1, 1]} : vector<8x512xf32> to vector<8x128xf32>
      %234 = math.tanh %233 : vector<8x128xf32>
      %235 = vector.extract_strided_slice %216 {offsets = [0, 384], sizes = [8, 128], strides = [1, 1]} : vector<8x512xf32> to vector<8x128xf32>
      %cst_92 = arith.constant 5.000000e-01 : f32
      %236 = vector.broadcast %cst_92 : f32 to vector<8x128xf32>
      %237 = arith.mulf %236, %235 : vector<8x128xf32>
      %238 = math.tanh %237 : vector<8x128xf32>
      %cst_93 = arith.constant 5.000000e-01 : f32
      %239 = vector.broadcast %cst_93 : f32 to vector<8x128xf32>
      %240 = arith.mulf %239, %238 : vector<8x128xf32>
      %cst_94 = arith.constant 5.000000e-01 : f32
      %241 = vector.broadcast %cst_94 : f32 to vector<8x128xf32>
      %242 = arith.addf %240, %241 : vector<8x128xf32>
      %243 = arith.mulf %232, %208 : vector<8x128xf32>
      %244 = arith.mulf %224, %234 : vector<8x128xf32>
      %245 = arith.addf %243, %244 : vector<8x128xf32>
      %246 = math.tanh %245 : vector<8x128xf32>
      %247 = arith.mulf %242, %246 : vector<8x128xf32>
      %c6_i32 = arith.constant 6 : i32
      %248 = arith.index_cast %c6_i32 : i32 to index
      %c0_95 = arith.constant 0 : index
      %c0_96 = arith.constant 0 : index
      %249 = vector.load %arg14[%248, %c0_95, %c0_96] : memref<8x8x512xf32, #tpu.memory_space<vmem>>, vector<1x8x512xf32>
      %250 = vector.shape_cast %249 : vector<1x8x512xf32> to vector<8x512xf32>
      %251 = arith.truncf %247 : vector<8x128xf32> to vector<8x128xbf16>
      %cst_97 = arith.constant dense<0.000000e+00> : vector<8x512xf32>
      %252 = tpu.matmul %251, %25, %cst_97 {dimension_numbers = #tpu.dot_dimension_numbers<[1], [0], [0], [1], [0, 0, 1, 1], [], []>} : vector<8x128xbf16>, vector<128x512xbf16>, vector<8x512xf32> -> vector<8x512xf32>
      %253 = arith.addf %250, %252 : vector<8x512xf32>
      %254 = vector.extract_strided_slice %253 {offsets = [0, 0], sizes = [8, 128], strides = [1, 1]} : vector<8x512xf32> to vector<8x128xf32>
      %cst_98 = arith.constant 5.000000e-01 : f32
      %255 = vector.broadcast %cst_98 : f32 to vector<8x128xf32>
      %256 = arith.mulf %255, %254 : vector<8x128xf32>
      %257 = math.tanh %256 : vector<8x128xf32>
      %cst_99 = arith.constant 5.000000e-01 : f32
      %258 = vector.broadcast %cst_99 : f32 to vector<8x128xf32>
      %259 = arith.mulf %258, %257 : vector<8x128xf32>
      %cst_100 = arith.constant 5.000000e-01 : f32
      %260 = vector.broadcast %cst_100 : f32 to vector<8x128xf32>
      %261 = arith.addf %259, %260 : vector<8x128xf32>
      %262 = vector.extract_strided_slice %253 {offsets = [0, 128], sizes = [8, 128], strides = [1, 1]} : vector<8x512xf32> to vector<8x128xf32>
      %cst_101 = arith.constant 5.000000e-01 : f32
      %263 = vector.broadcast %cst_101 : f32 to vector<8x128xf32>
      %264 = arith.mulf %263, %262 : vector<8x128xf32>
      %265 = math.tanh %264 : vector<8x128xf32>
      %cst_102 = arith.constant 5.000000e-01 : f32
      %266 = vector.broadcast %cst_102 : f32 to vector<8x128xf32>
      %267 = arith.mulf %266, %265 : vector<8x128xf32>
      %cst_103 = arith.constant 5.000000e-01 : f32
      %268 = vector.broadcast %cst_103 : f32 to vector<8x128xf32>
      %269 = arith.addf %267, %268 : vector<8x128xf32>
      %270 = vector.extract_strided_slice %253 {offsets = [0, 256], sizes = [8, 128], strides = [1, 1]} : vector<8x512xf32> to vector<8x128xf32>
      %271 = math.tanh %270 : vector<8x128xf32>
      %272 = vector.extract_strided_slice %253 {offsets = [0, 384], sizes = [8, 128], strides = [1, 1]} : vector<8x512xf32> to vector<8x128xf32>
      %cst_104 = arith.constant 5.000000e-01 : f32
      %273 = vector.broadcast %cst_104 : f32 to vector<8x128xf32>
      %274 = arith.mulf %273, %272 : vector<8x128xf32>
      %275 = math.tanh %274 : vector<8x128xf32>
      %cst_105 = arith.constant 5.000000e-01 : f32
      %276 = vector.broadcast %cst_105 : f32 to vector<8x128xf32>
      %277 = arith.mulf %276, %275 : vector<8x128xf32>
      %cst_106 = arith.constant 5.000000e-01 : f32
      %278 = vector.broadcast %cst_106 : f32 to vector<8x128xf32>
      %279 = arith.addf %277, %278 : vector<8x128xf32>
      %280 = arith.mulf %269, %245 : vector<8x128xf32>
      %281 = arith.mulf %261, %271 : vector<8x128xf32>
      %282 = arith.addf %280, %281 : vector<8x128xf32>
      %283 = math.tanh %282 : vector<8x128xf32>
      %284 = arith.mulf %279, %283 : vector<8x128xf32>
      %c7_i32 = arith.constant 7 : i32
      %285 = arith.index_cast %c7_i32 : i32 to index
      %c0_107 = arith.constant 0 : index
      %c0_108 = arith.constant 0 : index
      %286 = vector.load %arg14[%285, %c0_107, %c0_108] : memref<8x8x512xf32, #tpu.memory_space<vmem>>, vector<1x8x512xf32>
      %287 = vector.shape_cast %286 : vector<1x8x512xf32> to vector<8x512xf32>
      %288 = arith.truncf %284 : vector<8x128xf32> to vector<8x128xbf16>
      %cst_109 = arith.constant dense<0.000000e+00> : vector<8x512xf32>
      %289 = tpu.matmul %288, %25, %cst_109 {dimension_numbers = #tpu.dot_dimension_numbers<[1], [0], [0], [1], [0, 0, 1, 1], [], []>} : vector<8x128xbf16>, vector<128x512xbf16>, vector<8x512xf32> -> vector<8x512xf32>
      %290 = arith.addf %287, %289 : vector<8x512xf32>
      %291 = vector.extract_strided_slice %290 {offsets = [0, 0], sizes = [8, 128], strides = [1, 1]} : vector<8x512xf32> to vector<8x128xf32>
      %cst_110 = arith.constant 5.000000e-01 : f32
      %292 = vector.broadcast %cst_110 : f32 to vector<8x128xf32>
      %293 = arith.mulf %292, %291 : vector<8x128xf32>
      %294 = math.tanh %293 : vector<8x128xf32>
      %cst_111 = arith.constant 5.000000e-01 : f32
      %295 = vector.broadcast %cst_111 : f32 to vector<8x128xf32>
      %296 = arith.mulf %295, %294 : vector<8x128xf32>
      %cst_112 = arith.constant 5.000000e-01 : f32
      %297 = vector.broadcast %cst_112 : f32 to vector<8x128xf32>
      %298 = arith.addf %296, %297 : vector<8x128xf32>
      %299 = vector.extract_strided_slice %290 {offsets = [0, 128], sizes = [8, 128], strides = [1, 1]} : vector<8x512xf32> to vector<8x128xf32>
      %cst_113 = arith.constant 5.000000e-01 : f32
      %300 = vector.broadcast %cst_113 : f32 to vector<8x128xf32>
      %301 = arith.mulf %300, %299 : vector<8x128xf32>
      %302 = math.tanh %301 : vector<8x128xf32>
      %cst_114 = arith.constant 5.000000e-01 : f32
      %303 = vector.broadcast %cst_114 : f32 to vector<8x128xf32>
      %304 = arith.mulf %303, %302 : vector<8x128xf32>
      %cst_115 = arith.constant 5.000000e-01 : f32
      %305 = vector.broadcast %cst_115 : f32 to vector<8x128xf32>
      %306 = arith.addf %304, %305 : vector<8x128xf32>
      %307 = vector.extract_strided_slice %290 {offsets = [0, 256], sizes = [8, 128], strides = [1, 1]} : vector<8x512xf32> to vector<8x128xf32>
      %308 = math.tanh %307 : vector<8x128xf32>
      %309 = vector.extract_strided_slice %290 {offsets = [0, 384], sizes = [8, 128], strides = [1, 1]} : vector<8x512xf32> to vector<8x128xf32>
      %cst_116 = arith.constant 5.000000e-01 : f32
      %310 = vector.broadcast %cst_116 : f32 to vector<8x128xf32>
      %311 = arith.mulf %310, %309 : vector<8x128xf32>
      %312 = math.tanh %311 : vector<8x128xf32>
      %cst_117 = arith.constant 5.000000e-01 : f32
      %313 = vector.broadcast %cst_117 : f32 to vector<8x128xf32>
      %314 = arith.mulf %313, %312 : vector<8x128xf32>
      %cst_118 = arith.constant 5.000000e-01 : f32
      %315 = vector.broadcast %cst_118 : f32 to vector<8x128xf32>
      %316 = arith.addf %314, %315 : vector<8x128xf32>
      %317 = arith.mulf %306, %282 : vector<8x128xf32>
      %318 = arith.mulf %298, %308 : vector<8x128xf32>
      %319 = arith.addf %317, %318 : vector<8x128xf32>
      %320 = math.tanh %319 : vector<8x128xf32>
      %321 = arith.mulf %316, %320 : vector<8x128xf32>
      %c8_i32_119 = arith.constant 8 : i32
      %c0_120 = arith.constant 0 : index
      %c0_121 = arith.constant 0 : index
      %322 = vector.load %arg6[%c0_120, %c0_121] : memref<128x512xbf16, #tpu.memory_space<vmem>>, vector<128x512xbf16>
      %c0_122 = arith.constant 0 : index
      %c0_123 = arith.constant 0 : index
      %323 = vector.load %arg8[%c0_122, %c0_123] : memref<1x512xf32, #tpu.memory_space<vmem>>, vector<1x512xf32>
      %c0_i32_124 = arith.constant 0 : i32
      %c8_i32_125 = arith.constant 8 : i32
      %324 = arith.muli %c0_i32_124, %c8_i32_125 : i32
      %325 = tpu.assume_multiple %324, 8 : i32
      %326 = arith.index_cast %325 : i32 to index
      %c0_126 = arith.constant 0 : index
      %c0_127 = arith.constant 0 : index
      %327 = vector.load %arg2[%326, %c0_126, %c0_127] : memref<8x8x128xf32, #tpu.memory_space<vmem>>, vector<8x8x128xf32>
      %328 = vector.shape_cast %327 : vector<8x8x128xf32> to vector<64x128xf32>
      %329 = arith.truncf %328 : vector<64x128xf32> to vector<64x128xbf16>
      %cst_128 = arith.constant dense<0.000000e+00> : vector<64x512xf32>
      %330 = tpu.matmul %329, %322, %cst_128 {dimension_numbers = #tpu.dot_dimension_numbers<[1], [0], [0], [1], [0, 0, 1, 1], [], []>} : vector<64x128xbf16>, vector<128x512xbf16>, vector<64x512xf32> -> vector<64x512xf32>
      %331 = vector.broadcast %323 : vector<1x512xf32> to vector<64x512xf32>
      %332 = arith.addf %330, %331 : vector<64x512xf32>
      %333 = vector.shape_cast %332 : vector<64x512xf32> to vector<8x8x512xf32>
      %334 = arith.index_cast %325 : i32 to index
      %c0_129 = arith.constant 0 : index
      %c0_130 = arith.constant 0 : index
      %335 = vector.load %arg14[%334, %c0_129, %c0_130] : memref<8x8x512xf32, #tpu.memory_space<vmem>>, vector<8x8x512xf32>
      tpu.vector_store %arg14[%334, %c0_129, %c0_130], %333 {strides = array<i32>} : memref<8x8x512xf32, #tpu.memory_space<vmem>>, vector<8x8x512xf32>,
      %c1_i32_131 = arith.constant 1 : i32
      %c0_132 = arith.constant 0 : index
      %c0_133 = arith.constant 0 : index
      %336 = vector.load %arg7[%c0_132, %c0_133] : memref<128x512xbf16, #tpu.memory_space<vmem>>, vector<128x512xbf16>
      %c0_i32_134 = arith.constant 0 : i32
      %337 = arith.index_cast %c0_i32_134 : i32 to index
      %c0_135 = arith.constant 0 : index
      %c0_136 = arith.constant 0 : index
      %338 = vector.load %arg14[%337, %c0_135, %c0_136] : memref<8x8x512xf32, #tpu.memory_space<vmem>>, vector<1x8x512xf32>
      %339 = vector.shape_cast %338 : vector<1x8x512xf32> to vector<8x512xf32>
      %340 = arith.truncf %321 : vector<8x128xf32> to vector<8x128xbf16>
      %cst_137 = arith.constant dense<0.000000e+00> : vector<8x512xf32>
      %341 = tpu.matmul %340, %336, %cst_137 {dimension_numbers = #tpu.dot_dimension_numbers<[1], [0], [0], [1], [0, 0, 1, 1], [], []>} : vector<8x128xbf16>, vector<128x512xbf16>, vector<8x512xf32> -> vector<8x512xf32>
      %342 = arith.addf %339, %341 : vector<8x512xf32>
      %343 = vector.extract_strided_slice %342 {offsets = [0, 0], sizes = [8, 128], strides = [1, 1]} : vector<8x512xf32> to vector<8x128xf32>
      %cst_138 = arith.constant 5.000000e-01 : f32
      %344 = vector.broadcast %cst_138 : f32 to vector<8x128xf32>
      %345 = arith.mulf %344, %343 : vector<8x128xf32>
      %346 = math.tanh %345 : vector<8x128xf32>
      %cst_139 = arith.constant 5.000000e-01 : f32
      %347 = vector.broadcast %cst_139 : f32 to vector<8x128xf32>
      %348 = arith.mulf %347, %346 : vector<8x128xf32>
      %cst_140 = arith.constant 5.000000e-01 : f32
      %349 = vector.broadcast %cst_140 : f32 to vector<8x128xf32>
      %350 = arith.addf %348, %349 : vector<8x128xf32>
      %351 = vector.extract_strided_slice %342 {offsets = [0, 128], sizes = [8, 128], strides = [1, 1]} : vector<8x512xf32> to vector<8x128xf32>
      %cst_141 = arith.constant 5.000000e-01 : f32
      %352 = vector.broadcast %cst_141 : f32 to vector<8x128xf32>
      %353 = arith.mulf %352, %351 : vector<8x128xf32>
      %354 = math.tanh %353 : vector<8x128xf32>
      %cst_142 = arith.constant 5.000000e-01 : f32
      %355 = vector.broadcast %cst_142 : f32 to vector<8x128xf32>
      %356 = arith.mulf %355, %354 : vector<8x128xf32>
      %cst_143 = arith.constant 5.000000e-01 : f32
      %357 = vector.broadcast %cst_143 : f32 to vector<8x128xf32>
      %358 = arith.addf %356, %357 : vector<8x128xf32>
      %359 = vector.extract_strided_slice %342 {offsets = [0, 256], sizes = [8, 128], strides = [1, 1]} : vector<8x512xf32> to vector<8x128xf32>
      %360 = math.tanh %359 : vector<8x128xf32>
      %361 = vector.extract_strided_slice %342 {offsets = [0, 384], sizes = [8, 128], strides = [1, 1]} : vector<8x512xf32> to vector<8x128xf32>
      %cst_144 = arith.constant 5.000000e-01 : f32
      %362 = vector.broadcast %cst_144 : f32 to vector<8x128xf32>
      %363 = arith.mulf %362, %361 : vector<8x128xf32>
      %364 = math.tanh %363 : vector<8x128xf32>
      %cst_145 = arith.constant 5.000000e-01 : f32
      %365 = vector.broadcast %cst_145 : f32 to vector<8x128xf32>
      %366 = arith.mulf %365, %364 : vector<8x128xf32>
      %cst_146 = arith.constant 5.000000e-01 : f32
      %367 = vector.broadcast %cst_146 : f32 to vector<8x128xf32>
      %368 = arith.addf %366, %367 : vector<8x128xf32>
      %369 = arith.mulf %358, %319 : vector<8x128xf32>
      %370 = arith.mulf %350, %360 : vector<8x128xf32>
      %371 = arith.addf %369, %370 : vector<8x128xf32>
      %372 = math.tanh %371 : vector<8x128xf32>
      %373 = arith.mulf %368, %372 : vector<8x128xf32>
      %374 = arith.index_cast %c0_i32_134 : i32 to index
      %c0_147 = arith.constant 0 : index
      %c0_148 = arith.constant 0 : index
      %375 = vector.load %arg15[%374, %c0_147, %c0_148] : memref<8x8x128xf32, #tpu.memory_space<vmem>>, vector<1x8x128xf32>
      %376 = vector.shape_cast %375 : vector<1x8x128xf32> to vector<8x128xf32>
      %377 = vector.shape_cast %373 : vector<8x128xf32> to vector<1x8x128xf32>
      tpu.vector_store %arg15[%374, %c0_147, %c0_148], %377 {strides = array<i32>} : memref<8x8x128xf32, #tpu.memory_space<vmem>>, vector<1x8x128xf32>,
      %c1_i32_149 = arith.constant 1 : i32
      %378 = arith.index_cast %c1_i32_149 : i32 to index
      %c0_150 = arith.constant 0 : index
      %c0_151 = arith.constant 0 : index
      %379 = vector.load %arg14[%378, %c0_150, %c0_151] : memref<8x8x512xf32, #tpu.memory_space<vmem>>, vector<1x8x512xf32>
      %380 = vector.shape_cast %379 : vector<1x8x512xf32> to vector<8x512xf32>
      %381 = arith.truncf %373 : vector<8x128xf32> to vector<8x128xbf16>
      %cst_152 = arith.constant dense<0.000000e+00> : vector<8x512xf32>
      %382 = tpu.matmul %381, %336, %cst_152 {dimension_numbers = #tpu.dot_dimension_numbers<[1], [0], [0], [1], [0, 0, 1, 1], [], []>} : vector<8x128xbf16>, vector<128x512xbf16>, vector<8x512xf32> -> vector<8x512xf32>
      %383 = arith.addf %380, %382 : vector<8x512xf32>
      %384 = vector.extract_strided_slice %383 {offsets = [0, 0], sizes = [8, 128], strides = [1, 1]} : vector<8x512xf32> to vector<8x128xf32>
      %cst_153 = arith.constant 5.000000e-01 : f32
      %385 = vector.broadcast %cst_153 : f32 to vector<8x128xf32>
      %386 = arith.mulf %385, %384 : vector<8x128xf32>
      %387 = math.tanh %386 : vector<8x128xf32>
      %cst_154 = arith.constant 5.000000e-01 : f32
      %388 = vector.broadcast %cst_154 : f32 to vector<8x128xf32>
      %389 = arith.mulf %388, %387 : vector<8x128xf32>
      %cst_155 = arith.constant 5.000000e-01 : f32
      %390 = vector.broadcast %cst_155 : f32 to vector<8x128xf32>
      %391 = arith.addf %389, %390 : vector<8x128xf32>
      %392 = vector.extract_strided_slice %383 {offsets = [0, 128], sizes = [8, 128], strides = [1, 1]} : vector<8x512xf32> to vector<8x128xf32>
      %cst_156 = arith.constant 5.000000e-01 : f32
      %393 = vector.broadcast %cst_156 : f32 to vector<8x128xf32>
      %394 = arith.mulf %393, %392 : vector<8x128xf32>
      %395 = math.tanh %394 : vector<8x128xf32>
      %cst_157 = arith.constant 5.000000e-01 : f32
      %396 = vector.broadcast %cst_157 : f32 to vector<8x128xf32>
      %397 = arith.mulf %396, %395 : vector<8x128xf32>
      %cst_158 = arith.constant 5.000000e-01 : f32
      %398 = vector.broadcast %cst_158 : f32 to vector<8x128xf32>
      %399 = arith.addf %397, %398 : vector<8x128xf32>
      %400 = vector.extract_strided_slice %383 {offsets = [0, 256], sizes = [8, 128], strides = [1, 1]} : vector<8x512xf32> to vector<8x128xf32>
      %401 = math.tanh %400 : vector<8x128xf32>
      %402 = vector.extract_strided_slice %383 {offsets = [0, 384], sizes = [8, 128], strides = [1, 1]} : vector<8x512xf32> to vector<8x128xf32>
      %cst_159 = arith.constant 5.000000e-01 : f32
      %403 = vector.broadcast %cst_159 : f32 to vector<8x128xf32>
      %404 = arith.mulf %403, %402 : vector<8x128xf32>
      %405 = math.tanh %404 : vector<8x128xf32>
      %cst_160 = arith.constant 5.000000e-01 : f32
      %406 = vector.broadcast %cst_160 : f32 to vector<8x128xf32>
      %407 = arith.mulf %406, %405 : vector<8x128xf32>
      %cst_161 = arith.constant 5.000000e-01 : f32
      %408 = vector.broadcast %cst_161 : f32 to vector<8x128xf32>
      %409 = arith.addf %407, %408 : vector<8x128xf32>
      %410 = arith.mulf %399, %371 : vector<8x128xf32>
      %411 = arith.mulf %391, %401 : vector<8x128xf32>
      %412 = arith.addf %410, %411 : vector<8x128xf32>
      %413 = math.tanh %412 : vector<8x128xf32>
      %414 = arith.mulf %409, %413 : vector<8x128xf32>
      %415 = arith.index_cast %c1_i32_149 : i32 to index
      %c0_162 = arith.constant 0 : index
      %c0_163 = arith.constant 0 : index
      %416 = vector.load %arg15[%415, %c0_162, %c0_163] : memref<8x8x128xf32, #tpu.memory_space<vmem>>, vector<1x8x128xf32>
      %417 = vector.shape_cast %416 : vector<1x8x128xf32> to vector<8x128xf32>
      %418 = vector.shape_cast %414 : vector<8x128xf32> to vector<1x8x128xf32>
      tpu.vector_store %arg15[%415, %c0_162, %c0_163], %418 {strides = array<i32>} : memref<8x8x128xf32, #tpu.memory_space<vmem>>, vector<1x8x128xf32>,
      %c2_i32_164 = arith.constant 2 : i32
      %419 = arith.index_cast %c2_i32_164 : i32 to index
      %c0_165 = arith.constant 0 : index
      %c0_166 = arith.constant 0 : index
      %420 = vector.load %arg14[%419, %c0_165, %c0_166] : memref<8x8x512xf32, #tpu.memory_space<vmem>>, vector<1x8x512xf32>
      %421 = vector.shape_cast %420 : vector<1x8x512xf32> to vector<8x512xf32>
      %422 = arith.truncf %414 : vector<8x128xf32> to vector<8x128xbf16>
      %cst_167 = arith.constant dense<0.000000e+00> : vector<8x512xf32>
      %423 = tpu.matmul %422, %336, %cst_167 {dimension_numbers = #tpu.dot_dimension_numbers<[1], [0], [0], [1], [0, 0, 1, 1], [], []>} : vector<8x128xbf16>, vector<128x512xbf16>, vector<8x512xf32> -> vector<8x512xf32>
      %424 = arith.addf %421, %423 : vector<8x512xf32>
      %425 = vector.extract_strided_slice %424 {offsets = [0, 0], sizes = [8, 128], strides = [1, 1]} : vector<8x512xf32> to vector<8x128xf32>
      %cst_168 = arith.constant 5.000000e-01 : f32
      %426 = vector.broadcast %cst_168 : f32 to vector<8x128xf32>
      %427 = arith.mulf %426, %425 : vector<8x128xf32>
      %428 = math.tanh %427 : vector<8x128xf32>
      %cst_169 = arith.constant 5.000000e-01 : f32
      %429 = vector.broadcast %cst_169 : f32 to vector<8x128xf32>
      %430 = arith.mulf %429, %428 : vector<8x128xf32>
      %cst_170 = arith.constant 5.000000e-01 : f32
      %431 = vector.broadcast %cst_170 : f32 to vector<8x128xf32>
      %432 = arith.addf %430, %431 : vector<8x128xf32>
      %433 = vector.extract_strided_slice %424 {offsets = [0, 128], sizes = [8, 128], strides = [1, 1]} : vector<8x512xf32> to vector<8x128xf32>
      %cst_171 = arith.constant 5.000000e-01 : f32
      %434 = vector.broadcast %cst_171 : f32 to vector<8x128xf32>
      %435 = arith.mulf %434, %433 : vector<8x128xf32>
      %436 = math.tanh %435 : vector<8x128xf32>
      %cst_172 = arith.constant 5.000000e-01 : f32
      %437 = vector.broadcast %cst_172 : f32 to vector<8x128xf32>
      %438 = arith.mulf %437, %436 : vector<8x128xf32>
      %cst_173 = arith.constant 5.000000e-01 : f32
      %439 = vector.broadcast %cst_173 : f32 to vector<8x128xf32>
      %440 = arith.addf %438, %439 : vector<8x128xf32>
      %441 = vector.extract_strided_slice %424 {offsets = [0, 256], sizes = [8, 128], strides = [1, 1]} : vector<8x512xf32> to vector<8x128xf32>
      %442 = math.tanh %441 : vector<8x128xf32>
      %443 = vector.extract_strided_slice %424 {offsets = [0, 384], sizes = [8, 128], strides = [1, 1]} : vector<8x512xf32> to vector<8x128xf32>
      %cst_174 = arith.constant 5.000000e-01 : f32
      %444 = vector.broadcast %cst_174 : f32 to vector<8x128xf32>
      %445 = arith.mulf %444, %443 : vector<8x128xf32>
      %446 = math.tanh %445 : vector<8x128xf32>
      %cst_175 = arith.constant 5.000000e-01 : f32
      %447 = vector.broadcast %cst_175 : f32 to vector<8x128xf32>
      %448 = arith.mulf %447, %446 : vector<8x128xf32>
      %cst_176 = arith.constant 5.000000e-01 : f32
      %449 = vector.broadcast %cst_176 : f32 to vector<8x128xf32>
      %450 = arith.addf %448, %449 : vector<8x128xf32>
      %451 = arith.mulf %440, %412 : vector<8x128xf32>
      %452 = arith.mulf %432, %442 : vector<8x128xf32>
      %453 = arith.addf %451, %452 : vector<8x128xf32>
      %454 = math.tanh %453 : vector<8x128xf32>
      %455 = arith.mulf %450, %454 : vector<8x128xf32>
      %456 = arith.index_cast %c2_i32_164 : i32 to index
      %c0_177 = arith.constant 0 : index
      %c0_178 = arith.constant 0 : index
      %457 = vector.load %arg15[%456, %c0_177, %c0_178] : memref<8x8x128xf32, #tpu.memory_space<vmem>>, vector<1x8x128xf32>
      %458 = vector.shape_cast %457 : vector<1x8x128xf32> to vector<8x128xf32>
      %459 = vector.shape_cast %455 : vector<8x128xf32> to vector<1x8x128xf32>
      tpu.vector_store %arg15[%456, %c0_177, %c0_178], %459 {strides = array<i32>} : memref<8x8x128xf32, #tpu.memory_space<vmem>>, vector<1x8x128xf32>,
      %c3_i32_179 = arith.constant 3 : i32
      %460 = arith.index_cast %c3_i32_179 : i32 to index
      %c0_180 = arith.constant 0 : index
      %c0_181 = arith.constant 0 : index
      %461 = vector.load %arg14[%460, %c0_180, %c0_181] : memref<8x8x512xf32, #tpu.memory_space<vmem>>, vector<1x8x512xf32>
      %462 = vector.shape_cast %461 : vector<1x8x512xf32> to vector<8x512xf32>
      %463 = arith.truncf %455 : vector<8x128xf32> to vector<8x128xbf16>
      %cst_182 = arith.constant dense<0.000000e+00> : vector<8x512xf32>
      %464 = tpu.matmul %463, %336, %cst_182 {dimension_numbers = #tpu.dot_dimension_numbers<[1], [0], [0], [1], [0, 0, 1, 1], [], []>} : vector<8x128xbf16>, vector<128x512xbf16>, vector<8x512xf32> -> vector<8x512xf32>
      %465 = arith.addf %462, %464 : vector<8x512xf32>
      %466 = vector.extract_strided_slice %465 {offsets = [0, 0], sizes = [8, 128], strides = [1, 1]} : vector<8x512xf32> to vector<8x128xf32>
      %cst_183 = arith.constant 5.000000e-01 : f32
      %467 = vector.broadcast %cst_183 : f32 to vector<8x128xf32>
      %468 = arith.mulf %467, %466 : vector<8x128xf32>
      %469 = math.tanh %468 : vector<8x128xf32>
      %cst_184 = arith.constant 5.000000e-01 : f32
      %470 = vector.broadcast %cst_184 : f32 to vector<8x128xf32>
      %471 = arith.mulf %470, %469 : vector<8x128xf32>
      %cst_185 = arith.constant 5.000000e-01 : f32
      %472 = vector.broadcast %cst_185 : f32 to vector<8x128xf32>
      %473 = arith.addf %471, %472 : vector<8x128xf32>
      %474 = vector.extract_strided_slice %465 {offsets = [0, 128], sizes = [8, 128], strides = [1, 1]} : vector<8x512xf32> to vector<8x128xf32>
      %cst_186 = arith.constant 5.000000e-01 : f32
      %475 = vector.broadcast %cst_186 : f32 to vector<8x128xf32>
      %476 = arith.mulf %475, %474 : vector<8x128xf32>
      %477 = math.tanh %476 : vector<8x128xf32>
      %cst_187 = arith.constant 5.000000e-01 : f32
      %478 = vector.broadcast %cst_187 : f32 to vector<8x128xf32>
      %479 = arith.mulf %478, %477 : vector<8x128xf32>
      %cst_188 = arith.constant 5.000000e-01 : f32
      %480 = vector.broadcast %cst_188 : f32 to vector<8x128xf32>
      %481 = arith.addf %479, %480 : vector<8x128xf32>
      %482 = vector.extract_strided_slice %465 {offsets = [0, 256], sizes = [8, 128], strides = [1, 1]} : vector<8x512xf32> to vector<8x128xf32>
      %483 = math.tanh %482 : vector<8x128xf32>
      %484 = vector.extract_strided_slice %465 {offsets = [0, 384], sizes = [8, 128], strides = [1, 1]} : vector<8x512xf32> to vector<8x128xf32>
      %cst_189 = arith.constant 5.000000e-01 : f32
      %485 = vector.broadcast %cst_189 : f32 to vector<8x128xf32>
      %486 = arith.mulf %485, %484 : vector<8x128xf32>
      %487 = math.tanh %486 : vector<8x128xf32>
      %cst_190 = arith.constant 5.000000e-01 : f32
      %488 = vector.broadcast %cst_190 : f32 to vector<8x128xf32>
      %489 = arith.mulf %488, %487 : vector<8x128xf32>
      %cst_191 = arith.constant 5.000000e-01 : f32
      %490 = vector.broadcast %cst_191 : f32 to vector<8x128xf32>
      %491 = arith.addf %489, %490 : vector<8x128xf32>
      %492 = arith.mulf %481, %453 : vector<8x128xf32>
      %493 = arith.mulf %473, %483 : vector<8x128xf32>
      %494 = arith.addf %492, %493 : vector<8x128xf32>
      %495 = math.tanh %494 : vector<8x128xf32>
      %496 = arith.mulf %491, %495 : vector<8x128xf32>
      %497 = arith.index_cast %c3_i32_179 : i32 to index
      %c0_192 = arith.constant 0 : index
      %c0_193 = arith.constant 0 : index
      %498 = vector.load %arg15[%497, %c0_192, %c0_193] : memref<8x8x128xf32, #tpu.memory_space<vmem>>, vector<1x8x128xf32>
      %499 = vector.shape_cast %498 : vector<1x8x128xf32> to vector<8x128xf32>
      %500 = vector.shape_cast %496 : vector<8x128xf32> to vector<1x8x128xf32>
      tpu.vector_store %arg15[%497, %c0_192, %c0_193], %500 {strides = array<i32>} : memref<8x8x128xf32, #tpu.memory_space<vmem>>, vector<1x8x128xf32>,
      %c4_i32_194 = arith.constant 4 : i32
      %501 = arith.index_cast %c4_i32_194 : i32 to index
      %c0_195 = arith.constant 0 : index
      %c0_196 = arith.constant 0 : index
      %502 = vector.load %arg14[%501, %c0_195, %c0_196] : memref<8x8x512xf32, #tpu.memory_space<vmem>>, vector<1x8x512xf32>
      %503 = vector.shape_cast %502 : vector<1x8x512xf32> to vector<8x512xf32>
      %504 = arith.truncf %496 : vector<8x128xf32> to vector<8x128xbf16>
      %cst_197 = arith.constant dense<0.000000e+00> : vector<8x512xf32>
      %505 = tpu.matmul %504, %336, %cst_197 {dimension_numbers = #tpu.dot_dimension_numbers<[1], [0], [0], [1], [0, 0, 1, 1], [], []>} : vector<8x128xbf16>, vector<128x512xbf16>, vector<8x512xf32> -> vector<8x512xf32>
      %506 = arith.addf %503, %505 : vector<8x512xf32>
      %507 = vector.extract_strided_slice %506 {offsets = [0, 0], sizes = [8, 128], strides = [1, 1]} : vector<8x512xf32> to vector<8x128xf32>
      %cst_198 = arith.constant 5.000000e-01 : f32
      %508 = vector.broadcast %cst_198 : f32 to vector<8x128xf32>
      %509 = arith.mulf %508, %507 : vector<8x128xf32>
      %510 = math.tanh %509 : vector<8x128xf32>
      %cst_199 = arith.constant 5.000000e-01 : f32
      %511 = vector.broadcast %cst_199 : f32 to vector<8x128xf32>
      %512 = arith.mulf %511, %510 : vector<8x128xf32>
      %cst_200 = arith.constant 5.000000e-01 : f32
      %513 = vector.broadcast %cst_200 : f32 to vector<8x128xf32>
      %514 = arith.addf %512, %513 : vector<8x128xf32>
      %515 = vector.extract_strided_slice %506 {offsets = [0, 128], sizes = [8, 128], strides = [1, 1]} : vector<8x512xf32> to vector<8x128xf32>
      %cst_201 = arith.constant 5.000000e-01 : f32
      %516 = vector.broadcast %cst_201 : f32 to vector<8x128xf32>
      %517 = arith.mulf %516, %515 : vector<8x128xf32>
      %518 = math.tanh %517 : vector<8x128xf32>
      %cst_202 = arith.constant 5.000000e-01 : f32
      %519 = vector.broadcast %cst_202 : f32 to vector<8x128xf32>
      %520 = arith.mulf %519, %518 : vector<8x128xf32>
      %cst_203 = arith.constant 5.000000e-01 : f32
      %521 = vector.broadcast %cst_203 : f32 to vector<8x128xf32>
      %522 = arith.addf %520, %521 : vector<8x128xf32>
      %523 = vector.extract_strided_slice %506 {offsets = [0, 256], sizes = [8, 128], strides = [1, 1]} : vector<8x512xf32> to vector<8x128xf32>
      %524 = math.tanh %523 : vector<8x128xf32>
      %525 = vector.extract_strided_slice %506 {offsets = [0, 384], sizes = [8, 128], strides = [1, 1]} : vector<8x512xf32> to vector<8x128xf32>
      %cst_204 = arith.constant 5.000000e-01 : f32
      %526 = vector.broadcast %cst_204 : f32 to vector<8x128xf32>
      %527 = arith.mulf %526, %525 : vector<8x128xf32>
      %528 = math.tanh %527 : vector<8x128xf32>
      %cst_205 = arith.constant 5.000000e-01 : f32
      %529 = vector.broadcast %cst_205 : f32 to vector<8x128xf32>
      %530 = arith.mulf %529, %528 : vector<8x128xf32>
      %cst_206 = arith.constant 5.000000e-01 : f32
      %531 = vector.broadcast %cst_206 : f32 to vector<8x128xf32>
      %532 = arith.addf %530, %531 : vector<8x128xf32>
      %533 = arith.mulf %522, %494 : vector<8x128xf32>
      %534 = arith.mulf %514, %524 : vector<8x128xf32>
      %535 = arith.addf %533, %534 : vector<8x128xf32>
      %536 = math.tanh %535 : vector<8x128xf32>
      %537 = arith.mulf %532, %536 : vector<8x128xf32>
      %538 = arith.index_cast %c4_i32_194 : i32 to index
      %c0_207 = arith.constant 0 : index
      %c0_208 = arith.constant 0 : index
      %539 = vector.load %arg15[%538, %c0_207, %c0_208] : memref<8x8x128xf32, #tpu.memory_space<vmem>>, vector<1x8x128xf32>
      %540 = vector.shape_cast %539 : vector<1x8x128xf32> to vector<8x128xf32>
      %541 = vector.shape_cast %537 : vector<8x128xf32> to vector<1x8x128xf32>
      tpu.vector_store %arg15[%538, %c0_207, %c0_208], %541 {strides = array<i32>} : memref<8x8x128xf32, #tpu.memory_space<vmem>>, vector<1x8x128xf32>,
      %c5_i32_209 = arith.constant 5 : i32
      %542 = arith.index_cast %c5_i32_209 : i32 to index
      %c0_210 = arith.constant 0 : index
      %c0_211 = arith.constant 0 : index
      %543 = vector.load %arg14[%542, %c0_210, %c0_211] : memref<8x8x512xf32, #tpu.memory_space<vmem>>, vector<1x8x512xf32>
      %544 = vector.shape_cast %543 : vector<1x8x512xf32> to vector<8x512xf32>
      %545 = arith.truncf %537 : vector<8x128xf32> to vector<8x128xbf16>
      %cst_212 = arith.constant dense<0.000000e+00> : vector<8x512xf32>
      %546 = tpu.matmul %545, %336, %cst_212 {dimension_numbers = #tpu.dot_dimension_numbers<[1], [0], [0], [1], [0, 0, 1, 1], [], []>} : vector<8x128xbf16>, vector<128x512xbf16>, vector<8x512xf32> -> vector<8x512xf32>
      %547 = arith.addf %544, %546 : vector<8x512xf32>
      %548 = vector.extract_strided_slice %547 {offsets = [0, 0], sizes = [8, 128], strides = [1, 1]} : vector<8x512xf32> to vector<8x128xf32>
      %cst_213 = arith.constant 5.000000e-01 : f32
      %549 = vector.broadcast %cst_213 : f32 to vector<8x128xf32>
      %550 = arith.mulf %549, %548 : vector<8x128xf32>
      %551 = math.tanh %550 : vector<8x128xf32>
      %cst_214 = arith.constant 5.000000e-01 : f32
      %552 = vector.broadcast %cst_214 : f32 to vector<8x128xf32>
      %553 = arith.mulf %552, %551 : vector<8x128xf32>
      %cst_215 = arith.constant 5.000000e-01 : f32
      %554 = vector.broadcast %cst_215 : f32 to vector<8x128xf32>
      %555 = arith.addf %553, %554 : vector<8x128xf32>
      %556 = vector.extract_strided_slice %547 {offsets = [0, 128], sizes = [8, 128], strides = [1, 1]} : vector<8x512xf32> to vector<8x128xf32>
      %cst_216 = arith.constant 5.000000e-01 : f32
      %557 = vector.broadcast %cst_216 : f32 to vector<8x128xf32>
      %558 = arith.mulf %557, %556 : vector<8x128xf32>
      %559 = math.tanh %558 : vector<8x128xf32>
      %cst_217 = arith.constant 5.000000e-01 : f32
      %560 = vector.broadcast %cst_217 : f32 to vector<8x128xf32>
      %561 = arith.mulf %560, %559 : vector<8x128xf32>
      %cst_218 = arith.constant 5.000000e-01 : f32
      %562 = vector.broadcast %cst_218 : f32 to vector<8x128xf32>
      %563 = arith.addf %561, %562 : vector<8x128xf32>
      %564 = vector.extract_strided_slice %547 {offsets = [0, 256], sizes = [8, 128], strides = [1, 1]} : vector<8x512xf32> to vector<8x128xf32>
      %565 = math.tanh %564 : vector<8x128xf32>
      %566 = vector.extract_strided_slice %547 {offsets = [0, 384], sizes = [8, 128], strides = [1, 1]} : vector<8x512xf32> to vector<8x128xf32>
      %cst_219 = arith.constant 5.000000e-01 : f32
      %567 = vector.broadcast %cst_219 : f32 to vector<8x128xf32>
      %568 = arith.mulf %567, %566 : vector<8x128xf32>
      %569 = math.tanh %568 : vector<8x128xf32>
      %cst_220 = arith.constant 5.000000e-01 : f32
      %570 = vector.broadcast %cst_220 : f32 to vector<8x128xf32>
      %571 = arith.mulf %570, %569 : vector<8x128xf32>
      %cst_221 = arith.constant 5.000000e-01 : f32
      %572 = vector.broadcast %cst_221 : f32 to vector<8x128xf32>
      %573 = arith.addf %571, %572 : vector<8x128xf32>
      %574 = arith.mulf %563, %535 : vector<8x128xf32>
      %575 = arith.mulf %555, %565 : vector<8x128xf32>
      %576 = arith.addf %574, %575 : vector<8x128xf32>
      %577 = math.tanh %576 : vector<8x128xf32>
      %578 = arith.mulf %573, %577 : vector<8x128xf32>
      %579 = arith.index_cast %c5_i32_209 : i32 to index
      %c0_222 = arith.constant 0 : index
      %c0_223 = arith.constant 0 : index
      %580 = vector.load %arg15[%579, %c0_222, %c0_223] : memref<8x8x128xf32, #tpu.memory_space<vmem>>, vector<1x8x128xf32>
      %581 = vector.shape_cast %580 : vector<1x8x128xf32> to vector<8x128xf32>
      %582 = vector.shape_cast %578 : vector<8x128xf32> to vector<1x8x128xf32>
      tpu.vector_store %arg15[%579, %c0_222, %c0_223], %582 {strides = array<i32>} : memref<8x8x128xf32, #tpu.memory_space<vmem>>, vector<1x8x128xf32>,
      %c6_i32_224 = arith.constant 6 : i32
      %583 = arith.index_cast %c6_i32_224 : i32 to index
      %c0_225 = arith.constant 0 : index
      %c0_226 = arith.constant 0 : index
      %584 = vector.load %arg14[%583, %c0_225, %c0_226] : memref<8x8x512xf32, #tpu.memory_space<vmem>>, vector<1x8x512xf32>
      %585 = vector.shape_cast %584 : vector<1x8x512xf32> to vector<8x512xf32>
      %586 = arith.truncf %578 : vector<8x128xf32> to vector<8x128xbf16>
      %cst_227 = arith.constant dense<0.000000e+00> : vector<8x512xf32>
      %587 = tpu.matmul %586, %336, %cst_227 {dimension_numbers = #tpu.dot_dimension_numbers<[1], [0], [0], [1], [0, 0, 1, 1], [], []>} : vector<8x128xbf16>, vector<128x512xbf16>, vector<8x512xf32> -> vector<8x512xf32>
      %588 = arith.addf %585, %587 : vector<8x512xf32>
      %589 = vector.extract_strided_slice %588 {offsets = [0, 0], sizes = [8, 128], strides = [1, 1]} : vector<8x512xf32> to vector<8x128xf32>
      %cst_228 = arith.constant 5.000000e-01 : f32
      %590 = vector.broadcast %cst_228 : f32 to vector<8x128xf32>
      %591 = arith.mulf %590, %589 : vector<8x128xf32>
      %592 = math.tanh %591 : vector<8x128xf32>
      %cst_229 = arith.constant 5.000000e-01 : f32
      %593 = vector.broadcast %cst_229 : f32 to vector<8x128xf32>
      %594 = arith.mulf %593, %592 : vector<8x128xf32>
      %cst_230 = arith.constant 5.000000e-01 : f32
      %595 = vector.broadcast %cst_230 : f32 to vector<8x128xf32>
      %596 = arith.addf %594, %595 : vector<8x128xf32>
      %597 = vector.extract_strided_slice %588 {offsets = [0, 128], sizes = [8, 128], strides = [1, 1]} : vector<8x512xf32> to vector<8x128xf32>
      %cst_231 = arith.constant 5.000000e-01 : f32
      %598 = vector.broadcast %cst_231 : f32 to vector<8x128xf32>
      %599 = arith.mulf %598, %597 : vector<8x128xf32>
      %600 = math.tanh %599 : vector<8x128xf32>
      %cst_232 = arith.constant 5.000000e-01 : f32
      %601 = vector.broadcast %cst_232 : f32 to vector<8x128xf32>
      %602 = arith.mulf %601, %600 : vector<8x128xf32>
      %cst_233 = arith.constant 5.000000e-01 : f32
      %603 = vector.broadcast %cst_233 : f32 to vector<8x128xf32>
      %604 = arith.addf %602, %603 : vector<8x128xf32>
      %605 = vector.extract_strided_slice %588 {offsets = [0, 256], sizes = [8, 128], strides = [1, 1]} : vector<8x512xf32> to vector<8x128xf32>
      %606 = math.tanh %605 : vector<8x128xf32>
      %607 = vector.extract_strided_slice %588 {offsets = [0, 384], sizes = [8, 128], strides = [1, 1]} : vector<8x512xf32> to vector<8x128xf32>
      %cst_234 = arith.constant 5.000000e-01 : f32
      %608 = vector.broadcast %cst_234 : f32 to vector<8x128xf32>
      %609 = arith.mulf %608, %607 : vector<8x128xf32>
      %610 = math.tanh %609 : vector<8x128xf32>
      %cst_235 = arith.constant 5.000000e-01 : f32
      %611 = vector.broadcast %cst_235 : f32 to vector<8x128xf32>
      %612 = arith.mulf %611, %610 : vector<8x128xf32>
      %cst_236 = arith.constant 5.000000e-01 : f32
      %613 = vector.broadcast %cst_236 : f32 to vector<8x128xf32>
      %614 = arith.addf %612, %613 : vector<8x128xf32>
      %615 = arith.mulf %604, %576 : vector<8x128xf32>
      %616 = arith.mulf %596, %606 : vector<8x128xf32>
      %617 = arith.addf %615, %616 : vector<8x128xf32>
      %618 = math.tanh %617 : vector<8x128xf32>
      %619 = arith.mulf %614, %618 : vector<8x128xf32>
      %620 = arith.index_cast %c6_i32_224 : i32 to index
      %c0_237 = arith.constant 0 : index
      %c0_238 = arith.constant 0 : index
      %621 = vector.load %arg15[%620, %c0_237, %c0_238] : memref<8x8x128xf32, #tpu.memory_space<vmem>>, vector<1x8x128xf32>
      %622 = vector.shape_cast %621 : vector<1x8x128xf32> to vector<8x128xf32>
      %623 = vector.shape_cast %619 : vector<8x128xf32> to vector<1x8x128xf32>
      tpu.vector_store %arg15[%620, %c0_237, %c0_238], %623 {strides = array<i32>} : memref<8x8x128xf32, #tpu.memory_space<vmem>>, vector<1x8x128xf32>,
      %c7_i32_239 = arith.constant 7 : i32
      %624 = arith.index_cast %c7_i32_239 : i32 to index
      %c0_240 = arith.constant 0 : index
      %c0_241 = arith.constant 0 : index
      %625 = vector.load %arg14[%624, %c0_240, %c0_241] : memref<8x8x512xf32, #tpu.memory_space<vmem>>, vector<1x8x512xf32>
      %626 = vector.shape_cast %625 : vector<1x8x512xf32> to vector<8x512xf32>
      %627 = arith.truncf %619 : vector<8x128xf32> to vector<8x128xbf16>
      %cst_242 = arith.constant dense<0.000000e+00> : vector<8x512xf32>
      %628 = tpu.matmul %627, %336, %cst_242 {dimension_numbers = #tpu.dot_dimension_numbers<[1], [0], [0], [1], [0, 0, 1, 1], [], []>} : vector<8x128xbf16>, vector<128x512xbf16>, vector<8x512xf32> -> vector<8x512xf32>
      %629 = arith.addf %626, %628 : vector<8x512xf32>
      %630 = vector.extract_strided_slice %629 {offsets = [0, 0], sizes = [8, 128], strides = [1, 1]} : vector<8x512xf32> to vector<8x128xf32>
      %cst_243 = arith.constant 5.000000e-01 : f32
      %631 = vector.broadcast %cst_243 : f32 to vector<8x128xf32>
      %632 = arith.mulf %631, %630 : vector<8x128xf32>
      %633 = math.tanh %632 : vector<8x128xf32>
      %cst_244 = arith.constant 5.000000e-01 : f32
      %634 = vector.broadcast %cst_244 : f32 to vector<8x128xf32>
      %635 = arith.mulf %634, %633 : vector<8x128xf32>
      %cst_245 = arith.constant 5.000000e-01 : f32
      %636 = vector.broadcast %cst_245 : f32 to vector<8x128xf32>
      %637 = arith.addf %635, %636 : vector<8x128xf32>
      %638 = vector.extract_strided_slice %629 {offsets = [0, 128], sizes = [8, 128], strides = [1, 1]} : vector<8x512xf32> to vector<8x128xf32>
      %cst_246 = arith.constant 5.000000e-01 : f32
      %639 = vector.broadcast %cst_246 : f32 to vector<8x128xf32>
      %640 = arith.mulf %639, %638 : vector<8x128xf32>
      %641 = math.tanh %640 : vector<8x128xf32>
      %cst_247 = arith.constant 5.000000e-01 : f32
      %642 = vector.broadcast %cst_247 : f32 to vector<8x128xf32>
      %643 = arith.mulf %642, %641 : vector<8x128xf32>
      %cst_248 = arith.constant 5.000000e-01 : f32
      %644 = vector.broadcast %cst_248 : f32 to vector<8x128xf32>
      %645 = arith.addf %643, %644 : vector<8x128xf32>
      %646 = vector.extract_strided_slice %629 {offsets = [0, 256], sizes = [8, 128], strides = [1, 1]} : vector<8x512xf32> to vector<8x128xf32>
      %647 = math.tanh %646 : vector<8x128xf32>
      %648 = vector.extract_strided_slice %629 {offsets = [0, 384], sizes = [8, 128], strides = [1, 1]} : vector<8x512xf32> to vector<8x128xf32>
      %cst_249 = arith.constant 5.000000e-01 : f32
      %649 = vector.broadcast %cst_249 : f32 to vector<8x128xf32>
      %650 = arith.mulf %649, %648 : vector<8x128xf32>
      %651 = math.tanh %650 : vector<8x128xf32>
      %cst_250 = arith.constant 5.000000e-01 : f32
      %652 = vector.broadcast %cst_250 : f32 to vector<8x128xf32>
      %653 = arith.mulf %652, %651 : vector<8x128xf32>
      %cst_251 = arith.constant 5.000000e-01 : f32
      %654 = vector.broadcast %cst_251 : f32 to vector<8x128xf32>
      %655 = arith.addf %653, %654 : vector<8x128xf32>
      %656 = arith.mulf %645, %617 : vector<8x128xf32>
      %657 = arith.mulf %637, %647 : vector<8x128xf32>
      %658 = arith.addf %656, %657 : vector<8x128xf32>
      %659 = math.tanh %658 : vector<8x128xf32>
      %660 = arith.mulf %655, %659 : vector<8x128xf32>
      %661 = arith.index_cast %c7_i32_239 : i32 to index
      %c0_252 = arith.constant 0 : index
      %c0_253 = arith.constant 0 : index
      %662 = vector.load %arg15[%661, %c0_252, %c0_253] : memref<8x8x128xf32, #tpu.memory_space<vmem>>, vector<1x8x128xf32>
      %663 = vector.shape_cast %662 : vector<1x8x128xf32> to vector<8x128xf32>
      %664 = vector.shape_cast %660 : vector<8x128xf32> to vector<1x8x128xf32>
      tpu.vector_store %arg15[%661, %c0_252, %c0_253], %664 {strides = array<i32>} : memref<8x8x128xf32, #tpu.memory_space<vmem>>, vector<1x8x128xf32>,
      %c8_i32_254 = arith.constant 8 : i32
      %c0_255 = arith.constant 0 : index
      %c0_256 = arith.constant 0 : index
      %c0_257 = arith.constant 0 : index
      %665 = vector.load %arg15[%c0_255, %c0_256, %c0_257] : memref<8x8x128xf32, #tpu.memory_space<vmem>>, vector<8x8x128xf32>
      %666 = vector.shape_cast %665 : vector<8x8x128xf32> to vector<64x128xf32>
      %667 = arith.truncf %666 : vector<64x128xf32> to vector<64x128xbf16>
      %c0_258 = arith.constant 0 : index
      %c0_259 = arith.constant 0 : index
      %668 = vector.load %arg9[%c0_258, %c0_259] : memref<128x128xbf16, #tpu.memory_space<vmem>>, vector<128x128xbf16>
      %cst_260 = arith.constant dense<0.000000e+00> : vector<64x128xf32>
      %669 = tpu.matmul %667, %668, %cst_260 {dimension_numbers = #tpu.dot_dimension_numbers<[1], [0], [0], [1], [0, 0, 1, 1], [], []>} : vector<64x128xbf16>, vector<128x128xbf16>, vector<64x128xf32> -> vector<64x128xf32>
      %c0_261 = arith.constant 0 : index
      %c0_262 = arith.constant 0 : index
      %670 = vector.load %arg10[%c0_261, %c0_262] : memref<1x128xf32, #tpu.memory_space<vmem>>, vector<1x128xf32>
      %671 = vector.broadcast %670 : vector<1x128xf32> to vector<64x128xf32>
      %672 = arith.addf %669, %671 : vector<64x128xf32>
      %cst_263 = arith.constant 0.000000e+00 : f32
      %673 = vector.broadcast %cst_263 : f32 to vector<64x128xf32>
      %674 = arith.maximumf %672, %673 : vector<64x128xf32>
      %675 = arith.truncf %674 : vector<64x128xf32> to vector<64x128xbf16>
      %c0_264 = arith.constant 0 : index
      %c0_265 = arith.constant 0 : index
      %676 = vector.load %arg16[%c0_264, %c0_265] : memref<64x128xbf16, #tpu.memory_space<vmem>>, vector<64x128xbf16>
      tpu.vector_store %arg16[%c0_264, %c0_265], %675 {strides = array<i32>} : memref<64x128xbf16, #tpu.memory_space<vmem>>, vector<64x128xbf16>,
    } else {
    }
    %c0 = arith.constant 0 : index
    %c0_1 = arith.constant 0 : index
    %3 = vector.load %arg16[%c0, %c0_1] : memref<64x128xbf16, #tpu.memory_space<vmem>>, vector<64x128xbf16>
    %c0_2 = arith.constant 0 : index
    %c0_3 = arith.constant 0 : index
    %4 = vector.load %arg11[%c0_2, %c0_3] : memref<128x128xbf16, #tpu.memory_space<vmem>>, vector<128x128xbf16>
    %cst = arith.constant dense<0.000000e+00> : vector<64x128xf32>
    %5 = tpu.matmul %3, %4, %cst {dimension_numbers = #tpu.dot_dimension_numbers<[1], [0], [0], [1], [0, 0, 1, 1], [], []>} : vector<64x128xbf16>, vector<128x128xbf16>, vector<64x128xf32> -> vector<64x128xf32>
    %c0_4 = arith.constant 0 : index
    %c0_5 = arith.constant 0 : index
    %6 = vector.load %arg12[%c0_4, %c0_5] : memref<1x128xf32, #tpu.memory_space<vmem>>, vector<1x128xf32>
    %7 = vector.broadcast %6 : vector<1x128xf32> to vector<64x128xf32>
    %8 = arith.addf %5, %7 : vector<64x128xf32>
    %c0_6 = arith.constant 0 : index
    %c0_7 = arith.constant 0 : index
    %9 = vector.load %arg13[%c0_6, %c0_7] : memref<64x128xf32, #tpu.memory_space<vmem>>, vector<64x128xf32>
    tpu.vector_store %arg13[%c0_6, %c0_7], %8 {strides = array<i32>} : memref<64x128xf32, #tpu.memory_space<vmem>>, vector<64x128xf32>,
    return
  }
  func.func @transform_0(%arg0: i32) -> (i32, i32, i32) {
    %c0_i32 = arith.constant 0 : i32
    %c0_i32_0 = arith.constant 0 : i32
    %c0_i32_1 = arith.constant 0 : i32
    %c0_i32_2 = arith.constant 0 : i32
    return %c0_i32, %c0_i32_0, %c0_i32_1 : i32, i32, i32
  }
  func.func @transform_1(%arg0: i32) -> (i32, i32, i32) {
    %c0_i32 = arith.constant 0 : i32
    %c0_i32_0 = arith.constant 0 : i32
    %c0_i32_1 = arith.constant 0 : i32
    %c0_i32_2 = arith.constant 0 : i32
    return %c0_i32, %c0_i32_0, %c0_i32_1 : i32, i32, i32
  }
  func.func @transform_2(%arg0: i32) -> (i32, i32) {
    %c0_i32 = arith.constant 0 : i32
    %c0_i32_0 = arith.constant 0 : i32
    %c0_i32_1 = arith.constant 0 : i32
    return %c0_i32, %c0_i32_0 : i32, i32
  }
  func.func @transform_3(%arg0: i32) -> (i32, i32) {
    %c0_i32 = arith.constant 0 : i32
    %c0_i32_0 = arith.constant 0 : i32
    %c0_i32_1 = arith.constant 0 : i32
    return %c0_i32, %c0_i32_0 : i32, i32
  }
  func.func @transform_4(%arg0: i32) -> (i32, i32) {
    %c0_i32 = arith.constant 0 : i32
    %c0_i32_0 = arith.constant 0 : i32
    %c0_i32_1 = arith.constant 0 : i32
    return %c0_i32, %c0_i32_0 : i32, i32
  }
  func.func @transform_5(%arg0: i32) -> (i32, i32) {
    %c0_i32 = arith.constant 0 : i32
    %c0_i32_0 = arith.constant 0 : i32
    %c0_i32_1 = arith.constant 0 : i32
    return %c0_i32, %c0_i32_0 : i32, i32
  }
  func.func @transform_6(%arg0: i32) -> (i32, i32) {
    %c0_i32 = arith.constant 0 : i32
    %c0_i32_0 = arith.constant 0 : i32
    %c0_i32_1 = arith.constant 0 : i32
    return %c0_i32, %c0_i32_0 : i32, i32
  }
  func.func @transform_7(%arg0: i32) -> (i32, i32) {
    %c0_i32 = arith.constant 0 : i32
    %c0_i32_0 = arith.constant 0 : i32
    %c0_i32_1 = arith.constant 0 : i32
    return %c0_i32, %c0_i32_0 : i32, i32
  }
  func.func @transform_8(%arg0: i32) -> (i32, i32) {
    %c0_i32 = arith.constant 0 : i32
    %c0_i32_0 = arith.constant 0 : i32
    %c0_i32_1 = arith.constant 0 : i32
    return %c0_i32, %c0_i32_0 : i32, i32
  }
  func.func @transform_9(%arg0: i32) -> (i32, i32) {
    %c0_i32 = arith.constant 0 : i32
    %c0_i32_0 = arith.constant 0 : i32
    %c0_i32_1 = arith.constant 0 : i32
    return %c0_i32, %c0_i32_0 : i32, i32
  }
  func.func @transform_10(%arg0: i32) -> (i32, i32) {
    %c0_i32 = arith.constant 0 : i32
    %c0_i32_0 = arith.constant 0 : i32
    return %c0_i32, %arg0 : i32, i32
  }
  func.func @transform_11(%arg0: i32) -> (i32, i32) {
    %c0_i32 = arith.constant 0 : i32
    %c0_i32_0 = arith.constant 0 : i32
    return %c0_i32, %arg0 : i32, i32
  }
  func.func @transform_12(%arg0: i32) -> (i32, i32) {
    %c0_i32 = arith.constant 0 : i32
    %c0_i32_0 = arith.constant 0 : i32
    return %c0_i32, %arg0 : i32, i32
  }
}

</mosaic_0001>

<bundles_post_ra>
// kernel: translation_model_forward.1
= control target key start
LH: loop header
LB: loop body
LE: loop exit
PB: predicated region body
PF: predicated region fallthrough
CT: control target
= control target key end

     0   :  { %s4842_s21 = smov 0   ;;  %s4844_s22 = smov 0   ;;  %s6710_s0 = inlined_call_operand.vmem [shape: f32[8,8,128], index: 0, kind: input, shape index: {}]   ;;  %s6711_s1 = inlined_call_operand.vmem [shape: f32[8,8,128], index: 1, kind: input, shape index: {}]   ;;  %s6712_s2 = inlined_call_operand.vmem [shape: bf16[128,512], index: 2, kind: input, shape index: {}]   ;;  %s6713_s3 = inlined_call_operand.vmem [shape: bf16[128,512], index: 3, kind: input, shape index: {}]   ;;  %s6714_s4 = inlined_call_operand.vmem [shape: f32[1,512], index: 4, kind: input, shape index: {}]   ;;  %s6715_s5 = inlined_call_operand.vmem [shape: bf16[128,512], index: 5, kind: input, shape index: {}]   ;;  %s6716_s6 = inlined_call_operand.vmem [shape: bf16[128,512], index: 6, kind: input, shape index: {}]   ;;  %s6717_s7 = inlined_call_operand.vmem [shape: f32[1,512], index: 7, kind: input, shape index: {}]   ;;  %s6718_s8 = inlined_call_operand.vmem [shape: bf16[128,128], index: 8, kind: input, shape index: {}]   ;;  %s6719_s9 = inlined_call_operand.vmem [shape: f32[1,128], index: 9, kind: input, shape index: {}]   ;;  %s6720_s10 = inlined_call_operand.vmem [shape: bf16[128,384], index: 10, kind: input, shape index: {}]   ;;  %s6721_s11 = inlined_call_operand.vmem [shape: f32[1,384], index: 11, kind: input, shape index: {}]   ;;  %s6722_s12 = inlined_call_operand.vmem [shape: f32[64,384], index: 12, kind: output, shape index: {}]  }
   0x1   :  { %s4846_s23 = smov 0  }
   0x2 LB: > { %s4858_s24 = sadd.s32 4294967295, %s4774_s23   ;;  %s4861_s25 = sadd.s32 1, %s4774_s23   ;;  %s4774_s23 = sphi %s4846_s23, %s6818_s23   ;;  %s4770_s22 = sphi %s4844_s22, %s6817_s22   ;;  %s4766_s21 = sphi %s4842_s21, %s6816_s21  }
   0x3   : > { %s236_s26 = ssub.s32 %s4774_s23, %s4861_s25  ;;  %s239_s27 = sadd.s32 1, %s4770_s22 }
   0x4   : > { %p237_p0 = scmp.eq.s32.totalorder %s236_s26, 0  ;;  %p246_p1 = scmp.ne.s32.totalorder %s4770_s22, %s4766_s21 }
   0x5   : > { %p247_p2 = scmp.eq.s32.totalorder %s4774_s23, 0  ;;  %p302_p3 = scmp.eq.s32.totalorder %s4858_s24, 2 }
   0x6   : > { %s4871_s28 = scalar_select %p237_p0, %s4770_s22, %s239_s27  }
   0x7   : > { %p248_p4 = por %p247_p2, %p246_p1  ;;  %p4873_p5 = por %p302_p3, %p246_p1 }
   0x8   : > { %p4003_p6 = scmp.ge.s32.totalorder %s4774_s23, 3 }
   0xa   : > { %354 = sbr.rel (%p4003_p6) target bundleno = 29 (0x1d), region = 56 }
   0xf   : > { %357 = sbr.rel (!%p248_p4) target bundleno = 29 (0x1d), region = 60  ;;  %s359_s30 = sand.u32 (%p248_p4), 1, %s4770_s22  }
  0x10   : > { %s4005_s13 = sshll.u32 (%p248_p4), %s4774_s23, 2  ;;  %s4004_s14 = sshll.u32 (%p248_p4), %s359_s30, 6 }
  0x11   : > { %s4883_s17 = scalar_lea.vmem (%p248_p4), %s6720_s10, %s4005_s13  ;;  %s361_s18 = scalar_lea.vmem (%p248_p4), [#allocation5], %s4004_s14 }
  0x12   : > { %v380_v0 = vld [vmem:[%s4883_s17] sm:$0xf] (%p248_p4)  ;;  %v382_v1 = vld [vmem:[%s4883_s17 + $0xc] sm:$0xf] (%p248_p4)  ;;  %v384_v2 = vld [vmem:[%s4883_s17 + $0x18] sm:$0xf] (%p248_p4) }
  0x13   : > { %381 = vst [vmem:[%s361_s18] sm:$0xf] (%p248_p4), %v380_v0  ;;  %383 = vst [vmem:[%s361_s18 + $0x4] sm:$0xf] (%p248_p4), %v382_v1  ;;  %v386_v3 = vld [vmem:[%s4883_s17 + $0x24] sm:$0xf] (%p248_p4) }
  0x14   : > { %v388_v4 = vld [vmem:[%s4883_s17 + $0x30] sm:$0xf]  ;;  %385 = vst [vmem:[%s361_s18 + $0x8] sm:$0xf] %v384_v2  ;;  %387 = vst [vmem:[%s361_s18 + $0xc] sm:$0xf] %v386_v3 }
  0x15   : > { %389 = vst [vmem:[%s361_s18 + $0x10] sm:$0xf] %v388_v4  ;;  %v390_v5 = vld [vmem:[%s4883_s17 + $0x3c] sm:$0xf]  ;;  %v392_v6 = vld [vmem:[%s4883_s17 + $0x48] sm:$0xf] }
  0x16   : > { %v394_v7 = vld [vmem:[%s4883_s17 + $0x54] sm:$0xf]  ;;  %391 = vst [vmem:[%s361_s18 + $0x14] sm:$0xf] %v390_v5  ;;  %393 = vst [vmem:[%s361_s18 + $0x18] sm:$0xf] %v392_v6 }
  0x17   : > { %395 = vst [vmem:[%s361_s18 + $0x1c] sm:$0xf] %v394_v7  ;;  %v396_v8 = vld [vmem:[%s4883_s17 + $0x60] sm:$0xf]  ;;  %v398_v9 = vld [vmem:[%s4883_s17 + $0x6c] sm:$0xf] }
  0x18   : > { %v400_v10 = vld [vmem:[%s4883_s17 + $0x78] sm:$0xf]  ;;  %397 = vst [vmem:[%s361_s18 + $0x20] sm:$0xf] %v396_v8  ;;  %399 = vst [vmem:[%s361_s18 + $0x24] sm:$0xf] %v398_v9 }
  0x19   : > { %401 = vst [vmem:[%s361_s18 + $0x28] sm:$0xf] %v400_v10  ;;  %v402_v11 = vld [vmem:[%s4883_s17 + $0x84] sm:$0xf]  ;;  %v404_v12 = vld [vmem:[%s4883_s17 + $0x90] sm:$0xf] }
  0x1a   : > { %v406_v13 = vld [vmem:[%s4883_s17 + $0x9c] sm:$0xf]  ;;  %403 = vst [vmem:[%s361_s18 + $0x2c] sm:$0xf] %v402_v11  ;;  %405 = vst [vmem:[%s361_s18 + $0x30] sm:$0xf] %v404_v12 }
  0x1b   : > { %407 = vst [vmem:[%s361_s18 + $0x34] sm:$0xf] %v406_v13  ;;  %v408_v14 = vld [vmem:[%s4883_s17 + $0xa8] sm:$0xf]  ;;  %v410_v15 = vld [vmem:[%s4883_s17 + $0xb4] sm:$0xf] }
  0x1c   : > { %409 = vst [vmem:[%s361_s18 + $0x38] sm:$0xf] %v408_v14  ;;  %411 = vst [vmem:[%s361_s18 + $0x3c] sm:$0xf] %v410_v15 }
  0x1d PF: > { %p4006_p7 = scmp.ge.s32.totalorder %s4774_s23, 1  ;;  %p472_p8 = scmp.lt.s32.totalorder %s4774_s23, 4 }
  0x1f   : > { %p473_p9 = pnand %p4006_p7, %p472_p8 }
  0x20   : > { %s479_s19 = sand.u32 (!%p473_p9), 1, %s4766_s21   ;;  %p522_p10 = scmp.lt.s32.totalorder (!%p473_p9), %s4858_s24, 2 }
  0x21   : > { %476 = sbr.rel (%p473_p9) target bundleno = 4408 (0x1138), region = 105  ;;  %s4007_s20 = sshll.u32 (!%p473_p9), %s479_s19, 6 }
  0x22   : > { %s4912_s14 = scalar_lea.vmem (!%p473_p9), [#allocation5], %s4007_s20  ;;  %s4914_s15 = scalar_lea.vmem (!%p473_p9), [#allocation6], %s4007_s20 }
  0x23   : > { %p4009_p11 = scmp.ne.s32.totalorder (!%p473_p9), %s4858_s24, 0 }
  0x26   : > { %s4906_s26 = scalar_select %p522_p10, %s4858_s24, 2 }
  0x27   : > { %529 = sbr.rel (%p4009_p11) target bundleno = 4164 (0x1044), region = 113 }
  0x2c   : > { %v4316_v16 = vld [vmem:[%s6712_s2 + $0xe4] ss:$16 sps:$4 sm:$0xff]   ;;  %v4318_v17 = vld [vmem:[%s6712_s2 + $0xe0] ss:$16 sps:$4 sm:$0xff]   ;;  %v6725_v18 = vmov 0   ;;  %v566_v49 = vld [vmem:[%s6710_s0 + $0x8] sm:$0xff] }
  0x2d   : > { %790 = vmatprep.mubr.bf16.mxu1 %v6725_v18  ;;  %1167 = vmatprep.mubr.bf16.mxu0 %v6725_v18  ;;  %v4928_v19 = vld [vmem:[%s6713_s3 + $0xe4] ss:$16 sps:$4 sm:$0xff]   ;;  %v4933_v20 = vld [vmem:[%s6713_s3 + $0xe0] ss:$16 sps:$4 sm:$0xff]   ;;  %v4366_v50 = vld [vmem:[%s6712_s2 + $0xec] ss:$16 sps:$4 sm:$0xff]  }
  0x2e   : > { %758 = vmatprep.subr.bf16.mxu1 %v4316_v16  ;;  %v4322_v21 = vld [vmem:[%s6712_s2 + $0xc4] ss:$16 sps:$4 sm:$0xff]   ;;  %v4324_v22 = vld [vmem:[%s6712_s2 + $0xc0] ss:$16 sps:$4 sm:$0xff]   ;;  %1135 = vmatprep.subr.bf16.mxu0 %v4928_v19  ;;  %v4364_v53 = vld [vmem:[%s6712_s2 + $0xe8] ss:$16 sps:$4 sm:$0xff]  }
  0x2f   : > { %759 = vmatpush1.bf16.msra.mxu1 %v4318_v17  ;;  %v4945_v23 = vld [vmem:[%s6713_s3 + $0xc4] ss:$16 sps:$4 sm:$0xff]   ;;  %1136 = vmatpush1.bf16.msra.mxu0 %v4933_v20  ;;  %v4951_v24 = vld [vmem:[%s6713_s3 + $0xc0] ss:$16 sps:$4 sm:$0xff]   ;;  %v4369_v54 = vld [vmem:[%s6712_s2 + $0xcc] ss:$16 sps:$4 sm:$0xff]  }
  0x30   : > { %760 = vmatprep.subr.bf16.mxu1 %v4322_v21  ;;  %1137 = vmatprep.subr.bf16.mxu0 %v4945_v23  ;;  %v4328_v25 = vld [vmem:[%s6712_s2 + $0xa4] ss:$16 sps:$4 sm:$0xff]   ;;  %v4330_v26 = vld [vmem:[%s6712_s2 + $0xa0] ss:$16 sps:$4 sm:$0xff]   ;;  %v4367_v55 = vld [vmem:[%s6712_s2 + $0xc8] ss:$16 sps:$4 sm:$0xff]  }
  0x31   : > { %v4963_v27 = vld [vmem:[%s6713_s3 + $0xa4] ss:$16 sps:$4 sm:$0xff]   ;;  %v4972_v29 = vld [vmem:[%s6713_s3 + $0xa0] ss:$16 sps:$4 sm:$0xff]   ;;  %v568_v57 = vld [vmem:[%s6710_s0 + $0x18] sm:$0xff] }
  0x32   : > { %v4334_v28 = vld [vmem:[%s6712_s2 + $0x84] ss:$16 sps:$4 sm:$0xff]   ;;  %v4336_v31 = vld [vmem:[%s6712_s2 + $0x80] ss:$16 sps:$4 sm:$0xff]   ;;  %v4372_v58 = vld [vmem:[%s6712_s2 + $0xac] ss:$16 sps:$4 sm:$0xff]  }
  0x33   : > { %761 = vmatpush1.bf16.msra.mxu1 %v4324_v22  ;;  %1138 = vmatpush1.bf16.msra.mxu0 %v4951_v24  ;;  %v4978_v30 = vld [vmem:[%s6713_s3 + $0x84] ss:$16 sps:$4 sm:$0xff]   ;;  %v4990_v33 = vld [vmem:[%s6713_s3 + $0x80] ss:$16 sps:$4 sm:$0xff]   ;;  %v4370_v60 = vld [vmem:[%s6712_s2 + $0xa8] ss:$16 sps:$4 sm:$0xff]  }
  0x34   : > { %762 = vmatprep.subr.bf16.mxu1 %v4328_v25  ;;  %1139 = vmatprep.subr.bf16.mxu0 %v4963_v27  ;;  %v4340_v32 = vld [vmem:[%s6712_s2 + $0x64] ss:$16 sps:$4 sm:$0xff]   ;;  %v4342_v35 = vld [vmem:[%s6712_s2 + $0x60] ss:$16 sps:$4 sm:$0xff]   ;;  %v4375_v61 = vld [vmem:[%s6712_s2 + $0x8c] ss:$16 sps:$4 sm:$0xff]  }
  0x35   : > { %v4996_v34 = vld [vmem:[%s6713_s3 + $0x64] ss:$16 sps:$4 sm:$0xff]   ;;  %v5008_v37 = vld [vmem:[%s6713_s3 + $0x60] ss:$16 sps:$4 sm:$0xff]   ;;  %v4373_v62 = vld [vmem:[%s6712_s2 + $0x88] ss:$16 sps:$4 sm:$0xff]  }
  0x36   : > { %v4346_v36 = vld [vmem:[%s6712_s2 + $0x44] ss:$16 sps:$4 sm:$0xff]   ;;  %v4348_v39 = vld [vmem:[%s6712_s2 + $0x40] ss:$16 sps:$4 sm:$0xff]   ;;  %v570_v0 = vld [vmem:[%s6710_s0 + $0x28] sm:$0xff] }
  0x37   : > { %763 = vmatpush1.bf16.msra.mxu1 %v4330_v26  ;;  %1140 = vmatpush1.bf16.msra.mxu0 %v4972_v29  ;;  %v5014_v38 = vld [vmem:[%s6713_s3 + $0x44] ss:$16 sps:$4 sm:$0xff]   ;;  %v5026_v41 = vld [vmem:[%s6713_s3 + $0x40] ss:$16 sps:$4 sm:$0xff]   ;;  %v4378_v1 = vld [vmem:[%s6712_s2 + $0x6c] ss:$16 sps:$4 sm:$0xff]  }
  0x38   : > { %764 = vmatprep.subr.bf16.mxu1 %v4334_v28  ;;  %1141 = vmatprep.subr.bf16.mxu0 %v4978_v30  ;;  %v4352_v40 = vld [vmem:[%s6712_s2 + $0x24] ss:$16 sps:$4 sm:$0xff]   ;;  %v4354_v43 = vld [vmem:[%s6712_s2 + $0x20] ss:$16 sps:$4 sm:$0xff]   ;;  %v4376_v2 = vld [vmem:[%s6712_s2 + $0x68] ss:$16 sps:$4 sm:$0xff]  }
  0x39   : > { %v5032_v42 = vld [vmem:[%s6713_s3 + $0x24] ss:$16 sps:$4 sm:$0xff]   ;;  %v5044_v45 = vld [vmem:[%s6713_s3 + $0x20] ss:$16 sps:$4 sm:$0xff]   ;;  %v4381_v4 = vld [vmem:[%s6712_s2 + $0x4c] ss:$16 sps:$4 sm:$0xff]  }
  0x3a   : > { %v4358_v44 = vld [vmem:[%s6712_s2 + $0x4] ss:$16 sps:$4 sm:$0xff]   ;;  %v4360_v46 = vld [vmem:[%s6712_s2] ss:$16 sps:$4 sm:$0xff]   ;;  %v4379_v5 = vld [vmem:[%s6712_s2 + $0x48] ss:$16 sps:$4 sm:$0xff]  }
  0x3b   : > { %765 = vmatpush1.bf16.msra.mxu1 %v4336_v31  ;;  %1142 = vmatpush1.bf16.msra.mxu0 %v4990_v33  ;;  %v5053_v47 = vld [vmem:[%s6713_s3 + $0x4] ss:$16 sps:$4 sm:$0xff]   ;;  %v5068_v51 = vld [vmem:[%s6713_s3] ss:$16 sps:$4 sm:$0xff]   ;;  %v572_v7 = vld [vmem:[%s6710_s0 + $0x38] sm:$0xff] }
  0x3c   : > { %766 = vmatprep.subr.bf16.mxu1 %v4340_v32  ;;  %1143 = vmatprep.subr.bf16.mxu0 %v4996_v34  ;;  %v565_v48 = vld [vmem:[%s6710_s0] sm:$0xff]  ;;  %v567_v56 = vld [vmem:[%s6710_s0 + $0x10] sm:$0xff]  ;;  %v4384_v8 = vld [vmem:[%s6712_s2 + $0x2c] ss:$16 sps:$4 sm:$0xff]  }
  0x3d   : > { %v5071_v52 = vpack.c.bf16 %v566_v49, %v565_v48  ;;  %v5098_v59 = vpack.c.bf16 %v568_v57, %v567_v56  ;;  %v569_v63 = vld [vmem:[%s6710_s0 + $0x20] sm:$0xff]  ;;  %v571_v6 = vld [vmem:[%s6710_s0 + $0x30] sm:$0xff]  ;;  %v4382_v9 = vld [vmem:[%s6712_s2 + $0x28] ss:$16 sps:$4 sm:$0xff]  }
  0x3e   : > { %v575_v3 = vpack.c.bf16 %v570_v0, %v569_v63  ;;  %v576_v10 = vpack.c.bf16 %v572_v7, %v571_v6  ;;  %v4387_v11 = vld [vmem:[%s6712_s2 + $0xc] ss:$16 sps:$4 sm:$0xff]   ;;  %v4385_v12 = vld [vmem:[%s6712_s2 + $0x8] ss:$16 sps:$4 sm:$0xff]   ;;  %v562_v48 = vld [vmem:[%s6714_s4] sm:$0xf] }
  0x3f   : > { %767 = vmatpush1.bf16.msra.mxu1 %v4342_v35  ;;  %1144 = vmatpush1.bf16.msra.mxu0 %v5008_v37  ;;  %v5161_v13 = vld [vmem:[%s6713_s3 + $0xec] ss:$16 sps:$4 sm:$0xff]   ;;  %v5168_v14 = vld [vmem:[%s6713_s3 + $0xe8] ss:$16 sps:$4 sm:$0xff]  }
  0x40   : > { %768 = vmatprep.subr.bf16.mxu1 %v4346_v36  ;;  %1145 = vmatprep.subr.bf16.mxu0 %v5014_v38  ;;  %v5174_v15 = vld [vmem:[%s6713_s3 + $0xcc] ss:$16 sps:$4 sm:$0xff]   ;;  %v5181_v16 = vld [vmem:[%s6713_s3 + $0xc8] ss:$16 sps:$4 sm:$0xff]  }
  0x41   : > { %v5188_v17 = vld [vmem:[%s6713_s3 + $0xac] ss:$16 sps:$4 sm:$0xff]   ;;  %v5197_v21 = vld [vmem:[%s6713_s3 + $0xa8] ss:$16 sps:$4 sm:$0xff]  }
  0x42   : > { %v5204_v22 = vld [vmem:[%s6713_s3 + $0x8c] ss:$16 sps:$4 sm:$0xff]   ;;  %v5211_v25 = vld [vmem:[%s6713_s3 + $0x88] ss:$16 sps:$4 sm:$0xff]  }
  0x43   : > { %769 = vmatpush1.bf16.msra.mxu1 %v4348_v39  ;;  %1146 = vmatpush1.bf16.msra.mxu0 %v5026_v41  ;;  %v5218_v26 = vld [vmem:[%s6713_s3 + $0x6c] ss:$16 sps:$4 sm:$0xff]   ;;  %v5224_v28 = vld [vmem:[%s6713_s3 + $0x68] ss:$16 sps:$4 sm:$0xff]  }
  0x44   : > { %770 = vmatprep.subr.bf16.mxu1 %v4352_v40  ;;  %1147 = vmatprep.subr.bf16.mxu0 %v5032_v42  ;;  %v5230_v31 = vld [vmem:[%s6713_s3 + $0x4c] ss:$16 sps:$4 sm:$0xff]   ;;  %v5236_v32 = vld [vmem:[%s6713_s3 + $0x48] ss:$16 sps:$4 sm:$0xff]  }
  0x45   : > { %v5243_v35 = vld [vmem:[%s6713_s3 + $0x2c] ss:$16 sps:$4 sm:$0xff]   ;;  %v5249_v36 = vld [vmem:[%s6713_s3 + $0x28] ss:$16 sps:$4 sm:$0xff]  }
  0x46   : > { %v5255_v39 = vld [vmem:[%s6713_s3 + $0xc] ss:$16 sps:$4 sm:$0xff]   ;;  %v5261_v40 = vld [vmem:[%s6713_s3 + $0x8] ss:$16 sps:$4 sm:$0xff]  }
  0x47   : > { %771 = vmatpush1.bf16.msra.mxu1 %v4354_v43  ;;  %1148 = vmatpush1.bf16.msra.mxu0 %v5044_v45  ;;  %v578_v43 = vlaneseq }
  0x48   : > { %772 = vmatprep.subr.bf16.mxu1 %v4358_v44  ;;  %1149 = vmatprep.subr.bf16.mxu0 %v5053_v47 }
  0x49   : > { %v5285_v44 = vshrl.u32 %v578_v43, 7 }
  0x4b   : > { %773 = vmatpush1.bf16.msra.mxu1 %v4360_v46  ;;  %1150 = vmatpush1.bf16.msra.mxu0 %v5068_v51  ;;  %6732 = vst [vmem:[#allocation7_spill] sm:$0xff] %v5285_v44  ;;  %v6724_v46 = vsub.s32 0, %v5285_v44 }
  0x4c   : > { %831 = vmatprep.subr.bf16.mxu1 %v4366_v50  ;;  %1245 = vmatprep.subr.bf16.mxu0 %v4928_v19  ;;  %v6723_v50 = vsub.s32 1, %v5285_v44 }
  0x4e   : > { %791 = vmatmul.mubr.bf16.vlgmr.msra.gmra.mxu1 %v5071_v52  ;;  %1168 = vmatmul.mubr.bf16.vlgmr.msra.gmra.mxu0 %v6725_v18  ;;  %v585_v57 = vrot.slane %v562_v48, %v6723_v50 }
  0x4f   : > { %832 = vmatpush1.bf16.msra.mxu1 %v4364_v53  ;;  %800 = vmatprep.mubr.bf16.mxu1 %v6725_v18 }
  0x50   : > { %833 = vmatprep.subr.bf16.mxu1 %v4369_v54  ;;  %1246 = vmatpush1.bf16.msra.mxu0 %v4933_v20  ;;  %v581_v54 = vrot.slane %v562_v48, %v6724_v46 }
  0x51   : > { %1277 = vmatprep.mubr.bf16.mxu0 %v6725_v18  ;;  %1247 = vmatprep.subr.bf16.mxu0 %v4945_v23 }
  0x53   : > { %834 = vmatpush1.bf16.msra.mxu1 %v4367_v55 }
  0x54   : > { %835 = vmatprep.subr.bf16.mxu1 %v4372_v58  ;;  %1248 = vmatpush1.bf16.msra.mxu0 %v4951_v24 }
  0x55   : > { %1249 = vmatprep.subr.bf16.mxu0 %v4963_v27 }
  0x56   : > { %801 = vmatmul.mubr.bf16.gmra.mxu1 %v5098_v59 }
  0x57   : > { %836 = vmatpush1.bf16.msra.mxu1 %v4370_v60  ;;  %810 = vmatprep.mubr.bf16.mxu1 %v6725_v18 }
  0x58   : > { %837 = vmatprep.subr.bf16.mxu1 %v4375_v61  ;;  %1250 = vmatpush1.bf16.msra.mxu0 %v4972_v29 }
  0x59   : > { %1251 = vmatprep.subr.bf16.mxu0 %v4978_v30 }
  0x5b   : > { %838 = vmatpush1.bf16.msra.mxu1 %v4373_v62 }
  0x5c   : > { %839 = vmatprep.subr.bf16.mxu1 %v4378_v1  ;;  %1252 = vmatpush1.bf16.msra.mxu0 %v4990_v33 }
  0x5d   : > { %1253 = vmatprep.subr.bf16.mxu0 %v4996_v34 }
  0x5e   : > { %811 = vmatmul.mubr.bf16.gmra.mxu1 %v575_v3 }
  0x5f   : > { %840 = vmatpush1.bf16.msra.mxu1 %v4376_v2  ;;  %820 = vmatprep.mubr.bf16.mxu1 %v6725_v18 }
  0x60   : > { %841 = vmatprep.subr.bf16.mxu1 %v4381_v4  ;;  %1254 = vmatpush1.bf16.msra.mxu0 %v5008_v37 }
  0x61   : > { %1255 = vmatprep.subr.bf16.mxu0 %v5014_v38 }
  0x63   : > { %842 = vmatpush1.bf16.msra.mxu1 %v4379_v5 }
  0x64   : > { %843 = vmatprep.subr.bf16.mxu1 %v4384_v8  ;;  %1256 = vmatpush1.bf16.msra.mxu0 %v5026_v41 }
  0x65   : > { %1257 = vmatprep.subr.bf16.mxu0 %v5032_v42 }
  0x66   : > { %821 = vmatmul.mubr.bf16.gmra.mxu1 %v576_v10 }
  0x67   : > { %844 = vmatpush1.bf16.msra.mxu1 %v4382_v9  ;;  %863 = vmatprep.mubr.bf16.mxu1 %v6725_v18 }
  0x68   : > { %845 = vmatprep.subr.bf16.mxu1 %v4387_v11  ;;  %1258 = vmatpush1.bf16.msra.mxu0 %v5044_v45 }
  0x69   : > { %1259 = vmatprep.subr.bf16.mxu0 %v5053_v47 }
  0x6b   : > { %846 = vmatpush1.bf16.msra.mxu1 %v4385_v12 }
  0x6c   : > { %1176 = vmatprep.subr.bf16.mxu1 %v5161_v13  ;;  %1260 = vmatpush1.bf16.msra.mxu0 %v5068_v51 }
  0x6d   : > { %1355 = vmatprep.subr.bf16.mxu0 %v4928_v19 }
  0x6e   : > { %864 = vmatmul.mubr.bf16.vlgmr.msra.gmra.mxu1 %v5071_v52 }
  0x6f   : > { %1177 = vmatpush1.bf16.msra.mxu1 %v5168_v14  ;;  %873 = vmatprep.mubr.bf16.mxu1 %v6725_v18 }
  0x70   : > { %1178 = vmatprep.subr.bf16.mxu1 %v5174_v15 }
  0x73   : > { %1179 = vmatpush1.bf16.msra.mxu1 %v5181_v16 }
  0x74   : > { %1180 = vmatprep.subr.bf16.mxu1 %v5188_v17 }
  0x76   : > { %874 = vmatmul.mubr.bf16.gmra.mxu1 %v5098_v59 }
  0x77   : > { %1181 = vmatpush1.bf16.msra.mxu1 %v5197_v21  ;;  %883 = vmatprep.mubr.bf16.mxu1 %v6725_v18 }
  0x78   : > { %1182 = vmatprep.subr.bf16.mxu1 %v5204_v22 }
  0x7b   : > { %1183 = vmatpush1.bf16.msra.mxu1 %v5211_v25 }
  0x7c   : > { %1184 = vmatprep.subr.bf16.mxu1 %v5218_v26 }
  0x7e   : > { %884 = vmatmul.mubr.bf16.gmra.mxu1 %v575_v3 }
  0x7f   : > { %1185 = vmatpush1.bf16.msra.mxu1 %v5224_v28  ;;  %893 = vmatprep.mubr.bf16.mxu1 %v6725_v18 }
  0x80   : > { %1186 = vmatprep.subr.bf16.mxu1 %v5230_v31 }
  0x83   : > { %1187 = vmatpush1.bf16.msra.mxu1 %v5236_v32 }
  0x84   : > { %1188 = vmatprep.subr.bf16.mxu1 %v5243_v35 }
  0x86   : > { %894 = vmatmul.mubr.bf16.gmra.mxu1 %v576_v10 }
  0x87   : > { %1189 = vmatpush1.bf16.msra.mxu1 %v5249_v36  ;;  %1208 = vmatprep.mubr.bf16.mxu1 %v6725_v18 }
  0x88   : > { %1190 = vmatprep.subr.bf16.mxu1 %v5255_v39 }
  0x8b   : > { %1191 = vmatpush1.bf16.msra.mxu1 %v5261_v40 }
  0x8c   : > { %1286 = vmatprep.subr.bf16.mxu1 %v5161_v13 }
  0x8e   : > { %1209 = vmatmul.mubr.bf16.vlgmr.msra.gmra.mxu1 %v6725_v18 }
  0x8f   : > { %1287 = vmatpush1.bf16.msra.mxu1 %v5168_v14  ;;  %1318 = vmatprep.mubr.bf16.mxu1 %v6725_v18 }
  0x90   : > { %1288 = vmatprep.subr.bf16.mxu1 %v5174_v15 }
  0x93   : > { %1289 = vmatpush1.bf16.msra.mxu1 %v5181_v16 }
  0x94   : > { %1290 = vmatprep.subr.bf16.mxu1 %v5188_v17 }
  0x97   : > { %1291 = vmatpush1.bf16.msra.mxu1 %v5197_v21 }
  0x98   : > { %1292 = vmatprep.subr.bf16.mxu1 %v5204_v22 }
  0x9b   : > { %1293 = vmatpush1.bf16.msra.mxu1 %v5211_v25 }
  0x9c   : > { %1294 = vmatprep.subr.bf16.mxu1 %v5218_v26 }
  0x9f   : > { %1295 = vmatpush1.bf16.msra.mxu1 %v5224_v28 }
  0xa0   : > { %1296 = vmatprep.subr.bf16.mxu1 %v5230_v31 }
  0xa3   : > { %1297 = vmatpush1.bf16.msra.mxu1 %v5236_v32 }
  0xa4   : > { %1298 = vmatprep.subr.bf16.mxu1 %v5243_v35 }
  0xa7   : > { %1299 = vmatpush1.bf16.msra.mxu1 %v5249_v36 }
  0xa8   : > { %1300 = vmatprep.subr.bf16.mxu1 %v5255_v39 }
  0xab   : > { %1301 = vmatpush1.bf16.msra.mxu1 %v5261_v40 }
  0xac   : > { %1396 = vmatprep.subr.bf16.mxu1 %v5161_v13 }
 0x10e   : > { %v792_v49 = vpop.f32.mrf.mxu1  ;;  %v1169_v53 = vpop.f32.mrf.mxu0 }
 0x110   : > { %v794_v52 = vpop.f32.mrf.mxu1  ;;  %v1171_v56 = vpop.f32.mrf.mxu0 }
 0x112   : > { %v796_v55 = vpop.f32.mrf.mxu1  ;;  %v1173_v60 = vpop.f32.mrf.mxu0 }
 0x113   : > { %v5296_v58 = vadd.f32 %v796_v55, %v581_v54 }
 0x114   : > { %v798_v59 = vpop.f32.mrf.mxu1  ;;  %v1174_v63 = vpop.f32.mrf.mxu0 }
 0x115   : > { %v5298_v61 = vadd.f32 %v798_v59, %v585_v57 }
 0x116   : > { %v802_v62 = vpop.f32.mrf.mxu1 }
 0x117   : > { %v5300_v0 = vadd.f32 %v802_v62, %v581_v54 }
 0x118   : > { %v804_v1 = vpop.f32.mrf.mxu1 }
 0x119   : > { %v5302_v2 = vadd.f32 %v804_v1, %v585_v57 }
 0x11a   : > { %v806_v3 = vpop.f32.mrf.mxu1 }
 0x11b   : > { %v5304_v4 = vadd.f32 %v806_v3, %v581_v54 }
 0x11c   : > { %v808_v5 = vpop.f32.mrf.mxu1 }
 0x11d   : > { %6733 = vst [vmem:[#allocation8_spill] sm:$0xff] %v5304_v4  ;;  %v5306_v6 = vadd.f32 %v808_v5, %v585_v57 }
 0x11e   : > { %v812_v7 = vpop.f32.mrf.mxu1 }
 0x11f   : > { %6734 = vst [vmem:[#allocation9_spill] sm:$0xff] %v5306_v6  ;;  %v5308_v8 = vadd.f32 %v812_v7, %v581_v54 }
 0x120   : > { %v814_v9 = vpop.f32.mrf.mxu1 }
 0x121   : > { %6735 = vst [vmem:[#allocation10_spill] sm:$0xff] %v5308_v8  ;;  %v5310_v10 = vadd.f32 %v814_v9, %v585_v57  ;;  %v6727_v9 = vsub.s32 2, %v5285_v44  ;;  %v793_v8 = vadd.f32 %v792_v49, %v581_v54 }
 0x122   : > { %v816_v11 = vpop.f32.mrf.mxu1 }
 0x123   : > { %6736 = vst [vmem:[#allocation11_spill] sm:$0xff] %v5310_v10  ;;  %v5312_v12 = vadd.f32 %v816_v11, %v581_v54  ;;  %v6728_v11 = vsub.s32 3, %v5285_v44  ;;  %v1217_v44 = vadd.f32 %v1169_v53, %v793_v8 }
 0x124   : > { %v818_v43 = vpop.f32.mrf.mxu1 }
 0x125   : > { %6737 = vst [vmem:[#allocation12_spill] sm:$0xff] %v5312_v12  ;;  %v5314_v55 = vadd.f32 %v818_v43, %v585_v57  ;;  %v589_v43 = vrot.slane %v562_v48, %v6727_v9  ;;  %v795_v12 = vadd.f32 %v794_v52, %v585_v57  ;;  %v1221_v52 = vmul.f32 0.5, %v1217_v44 }
 0x126   : > { %v822_v59 = vpop.f32.mrf.mxu1 }
 0x127   : > { %6738 = vst [vmem:[#allocation13_spill] sm:$0xff] %v5314_v55  ;;  %v5316_v60 = vadd.f32 %v822_v59, %v581_v54 }
 0x128   : > { %v824_v62 = vpop.f32.mrf.mxu1 }
 0x129   : > { %6739 = vst [vmem:[#allocation14_spill] sm:$0xff] %v5316_v60  ;;  %v5318_v63 = vadd.f32 %v824_v62, %v585_v57  ;;  %v593_v62 = vrot.slane %v562_v48, %v6728_v11 }
 0x12a   : > { %v826_v1 = vpop.f32.mrf.mxu1 }
 0x12b   : > { %6740 = vst [vmem:[#allocation15_spill] sm:$0xff] %v5318_v63  ;;  %v5320_v3 = vadd.f32 %v826_v1, %v581_v54 }
 0x12c   : > { %v828_v5 = vpop.f32.mrf.mxu1 }
 0x12d   : > { %6741 = vst [vmem:[#allocation16_spill] sm:$0xff] %v5320_v3  ;;  %v5322_v7 = vadd.f32 %v828_v5, %v585_v57 }
 0x12e   : > { %v865_v50 = vpop.f32.mrf.mxu1 }
 0x12f   : > { %6742 = vst [vmem:[#allocation17_spill] sm:$0xff] %v5322_v7 }
 0x130   : > { %v867_v46 = vpop.f32.mrf.mxu1 }
 0x132   : > { %v869_v59 = vpop.f32.mrf.mxu1 }
 0x133   : > { %v5330_v18 = vadd.f32 %v869_v59, %v589_v43  ;;  %v1218_v59 = vadd.f32 %v1171_v56, %v795_v12 }
 0x134   : > { %v871_v1 = vpop.f32.mrf.mxu1 }
 0x135   : > { %v5332_v3 = vadd.f32 %v871_v1, %v593_v62 }
 0x136   : > { %v875_v5 = vpop.f32.mrf.mxu1 }
 0x137   : > { %v5334_v7 = vadd.f32 %v875_v5, %v589_v43 }
 0x138   : > { %v877_v63 = vpop.f32.mrf.mxu1 }
 0x139   : > { %6743 = vst [vmem:[#allocation18_spill] sm:$0xff] %v5334_v7  ;;  %v5336_v60 = vadd.f32 %v877_v63, %v593_v62  ;;  %v1225_v7 = vmul.f32 0.5, %v1218_v59 }
 0x13a   : > { %v879_v55 = vpop.f32.mrf.mxu1 }
 0x13b   : > { %6744 = vst [vmem:[#allocation19_spill] sm:$0xff] %v5336_v60  ;;  %v5338_v10 = vadd.f32 %v879_v55, %v589_v43  ;;  %4516 = vtanh.f32 %v1225_v7 }
 0x13c   : > { %v881_v9 = vpop.f32.mrf.mxu1  ;;  %4518 = vtanh.f32 %v1221_v52 }
 0x13d   : > { %v5340_v6 = vadd.f32 %v881_v9, %v593_v62  ;;  %v866_v9 = vadd.f32 %v865_v50, %v589_v43 }
 0x13e   : > { %v885_v48 = vpop.f32.mrf.mxu1 }
 0x13f   : > { %v5342_v11 = vadd.f32 %v885_v48, %v589_v43 }
 0x140   : > { %v887_v1 = vpop.f32.mrf.mxu1 }
 0x141   : > { %v5344_v4 = vadd.f32 %v887_v1, %v593_v62 }
 0x142   : > { %v889_v5 = vpop.f32.mrf.mxu1 }
 0x143   : > { %v5346_v63 = vadd.f32 %v889_v5, %v589_v43 }
 0x144   : > { %v891_v60 = vpop.f32.mrf.mxu1 }
 0x145   : > { %6745 = vst [vmem:[#allocation20_spill] sm:$0xff] %v5346_v63  ;;  %v5348_v57 = vadd.f32 %v891_v60, %v593_v62  ;;  %v868_v60 = vadd.f32 %v867_v46, %v593_v62 }
 0x146   : > { %v895_v55 = vpop.f32.mrf.mxu1 }
 0x147   : > { %6746 = vst [vmem:[#allocation21_spill] sm:$0xff] %v5348_v57  ;;  %v5350_v49 = vadd.f32 %v895_v55, %v589_v43 }
 0x148   : > { %v897_v54 = vpop.f32.mrf.mxu1  ;;  %v4517_v55 = vpop.eup %4516 }
 0x149   : > { %6747 = vst [vmem:[#allocation22_spill] sm:$0xff] %v5350_v49  ;;  %v5352_v56 = vadd.f32 %v897_v54, %v593_v62  ;;  %v4519_v57 = vpop.eup %4518  ;;  %v1227_v52 = vmul.f32 0.5, %v4517_v55 }
 0x14a   : > { %v899_v12 = vpop.f32.mrf.mxu1 }
 0x14b   : > { %6748 = vst [vmem:[#allocation23_spill] sm:$0xff] %v5352_v56  ;;  %v5354_v53 = vadd.f32 %v899_v12, %v589_v43  ;;  %v1223_v56 = vmul.f32 0.5, %v4519_v57  ;;  %v1228_v63 = vadd.f32 0.5, %v1227_v52 }
 0x14c   : > { %v901_v8 = vpop.f32.mrf.mxu1 }
 0x14d   : > { %6749 = vst [vmem:[#allocation24_spill] sm:$0xff] %v5354_v53  ;;  %v5356_v48 = vadd.f32 %v901_v8, %v593_v62  ;;  %v1224_v12 = vadd.f32 0.5, %v1223_v56  ;;  %v1234_v50 = vmul.f32 0.0, %v1228_v63  ;;  %v6750_v63 = vmov 0  }
 0x14e   : > { %v1210_v59 = vpop.f32.mrf.mxu1 }
 0x14f   : > { %v1219_v1 = vadd.f32 %v1210_v59, %v866_v9 }
 0x150   : > { %v1212_v44 = vpop.f32.mrf.mxu1 }
 0x151   : > { %4520 = vtanh.f32 %v1219_v1  ;;  %v1220_v7 = vadd.f32 %v1212_v44, %v868_v60 }
 0x152   : > { %v1214_v5 = vpop.f32.mrf.mxu1 }
 0x153   : > { %v1230_v54 = vmul.f32 0.5, %v1220_v7 }
 0x154   : > { %v1215_v49 = vpop.f32.mrf.mxu1 }
 0x155   : > { %4522 = vtanh.f32 %v1230_v54 }
 0x15e   : > { %v4521_v53 = vpop.eup %4520 }
 0x15f   : > { %v1235_v43 = vmul.f32 %v4521_v53, %v1224_v12 }
 0x161   : > { %v5358_v8 = vadd.f32 %v1235_v43, %v1234_v50 }
 0x162   : > { %v4523_v46 = vpop.eup %4522 }
 0x163   : > { %4524 = vtanh.f32 %v5358_v8  ;;  %v1232_v62 = vmul.f32 0.5, %v4523_v46 }
 0x165   : > { %v1233_v9 = vadd.f32 0.5, %v1232_v62 }
 0x170   : > { %v4525_v59 = vpop.eup %4524 }
 0x171   : > { %v1238_v1 = vmul.f32 %v4525_v59, %v1233_v9 }
 0x173   : > { %v1244_v49 = vpack.c.bf16 %v1238_v1, %v1238_v1 }
 0x175   : > { %1278 = vmatmul.mubr.bf16.vlgmr.msra.gmra.mxu0 %v1244_v49  ;;  %1319 = vmatmul.mubr.bf16.vlgmr.msra.gmra.mxu1 %v1244_v49 }
 0x176   : > { %1356 = vmatpush1.bf16.msra.mxu0 %v4933_v20  ;;  %1397 = vmatpush1.bf16.msra.mxu1 %v5168_v14 }
 0x177   : > { %1357 = vmatprep.subr.bf16.mxu0 %v4945_v23  ;;  %1398 = vmatprep.subr.bf16.mxu1 %v5174_v15 }
 0x178   : > { %1387 = vmatprep.mubr.bf16.mxu0 %v6750_v63  ;;  %1428 = vmatprep.mubr.bf16.mxu1 %v6750_v63 }
 0x17a   : > { %1358 = vmatpush1.bf16.msra.mxu0 %v4951_v24  ;;  %1399 = vmatpush1.bf16.msra.mxu1 %v5181_v16 }
 0x17b   : > { %1359 = vmatprep.subr.bf16.mxu0 %v4963_v27  ;;  %1400 = vmatprep.subr.bf16.mxu1 %v5188_v17 }
 0x17e   : > { %1360 = vmatpush1.bf16.msra.mxu0 %v4972_v29  ;;  %1401 = vmatpush1.bf16.msra.mxu1 %v5197_v21 }
 0x17f   : > { %1361 = vmatprep.subr.bf16.mxu0 %v4978_v30  ;;  %1402 = vmatprep.subr.bf16.mxu1 %v5204_v22 }
 0x182   : > { %1362 = vmatpush1.bf16.msra.mxu0 %v4990_v33  ;;  %1403 = vmatpush1.bf16.msra.mxu1 %v5211_v25 }
 0x183   : > { %1363 = vmatprep.subr.bf16.mxu0 %v4996_v34  ;;  %1404 = vmatprep.subr.bf16.mxu1 %v5218_v26 }
 0x186   : > { %1364 = vmatpush1.bf16.msra.mxu0 %v5008_v37  ;;  %1405 = vmatpush1.bf16.msra.mxu1 %v5224_v28 }
 0x187   : > { %1365 = vmatprep.subr.bf16.mxu0 %v5014_v38  ;;  %1406 = vmatprep.subr.bf16.mxu1 %v5230_v31 }
 0x18a   : > { %1366 = vmatpush1.bf16.msra.mxu0 %v5026_v41  ;;  %1407 = vmatpush1.bf16.msra.mxu1 %v5236_v32 }
 0x18b   : > { %1367 = vmatprep.subr.bf16.mxu0 %v5032_v42  ;;  %1408 = vmatprep.subr.bf16.mxu1 %v5243_v35 }
 0x18e   : > { %1368 = vmatpush1.bf16.msra.mxu0 %v5044_v45  ;;  %1409 = vmatpush1.bf16.msra.mxu1 %v5249_v36 }
 0x18f   : > { %1369 = vmatprep.subr.bf16.mxu0 %v5053_v47  ;;  %1410 = vmatprep.subr.bf16.mxu1 %v5255_v39 }
 0x192   : > { %1370 = vmatpush1.bf16.msra.mxu0 %v5068_v51  ;;  %1411 = vmatpush1.bf16.msra.mxu1 %v5261_v40 }
 0x193   : > { %1465 = vmatprep.subr.bf16.mxu0 %v4928_v19  ;;  %1506 = vmatprep.subr.bf16.mxu1 %v5161_v13 }
 0x235   : > { %v1279_v20 = vpop.f32.mrf.mxu0  ;;  %v1320_v57 = vpop.f32.mrf.mxu1 }
 0x236   : > { %v1327_v56 = vadd.f32 %v1279_v20, %v5296_v58  ;;  %v1329_v52 = vadd.f32 %v1320_v57, %v5330_v18 }
 0x237   : > { %v1281_v53 = vpop.f32.mrf.mxu0  ;;  %v1322_v44 = vpop.f32.mrf.mxu1 }
 0x238   : > { %v1331_v60 = vmul.f32 0.5, %v1327_v56  ;;  %v1328_v5 = vadd.f32 %v1281_v53, %v5298_v61  ;;  %v1330_v19 = vadd.f32 %v1322_v44, %v5332_v3 }
 0x239   : > { %v1283_v7 = vpop.f32.mrf.mxu0  ;;  %v1324_v55 = vpop.f32.mrf.mxu1 }
 0x23a   : > { %4526 = vtanh.f32 %v1331_v60  ;;  %v1335_v54 = vmul.f32 0.5, %v1328_v5  ;;  %v1340_v43 = vmul.f32 0.5, %v1330_v19  ;;  %v5406_v5 = vld [vmem:[%s6713_s3 + $0xe0] ss:$16 sps:$4 sm:$0xff]  }
 0x23b   : > { %v1284_v12 = vpop.f32.mrf.mxu0  ;;  %v1325_v50 = vpop.f32.mrf.mxu1  ;;  %v6752_v7 = vld [vmem:[#allocation19_spill] sm:$0xff] }
 0x23c   : > { %4528 = vtanh.f32 %v1335_v54 }
 0x23d   : > { %4530 = vtanh.f32 %v1329_v52 }
 0x23e   : > { %4532 = vtanh.f32 %v1340_v43 }
 0x247   : > { %v4527_v46 = vpop.eup %4526 }
 0x248   : > { %v1333_v58 = vmul.f32 0.5, %v4527_v46 }
 0x249   : > { %v4529_v62 = vpop.eup %4528 }
 0x24a   : > { %v1334_v9 = vadd.f32 0.5, %v1333_v58  ;;  %v1337_v59 = vmul.f32 0.5, %v4529_v62  ;;  %v4531_v61 = vpop.eup %4530 }
 0x24b   : > { %v4533_v57 = vpop.eup %4532 }
 0x24c   : > { %v1338_v1 = vadd.f32 0.5, %v1337_v59  ;;  %v1345_v49 = vmul.f32 %v4531_v61, %v1334_v9  ;;  %v1342_v56 = vmul.f32 0.5, %v4533_v57  ;;  %v5469_v57 = vld [vmem:[%s6713_s3 + $0xc0] ss:$16 sps:$4 sm:$0xff]  }
 0x24e   : > { %v1344_v20 = vmul.f32 %v1338_v1, %v5358_v8  ;;  %v1343_v53 = vadd.f32 0.5, %v1342_v56  ;;  %v5476_v56 = vld [vmem:[%s6713_s3 + $0xa4] ss:$16 sps:$4 sm:$0xff]  }
 0x250   : > { %v5400_v18 = vadd.f32 %v1345_v49, %v1344_v20 }
 0x252   : > { %4534 = vtanh.f32 %v5400_v18 }
 0x25f   : > { %v4535_v3 = vpop.eup %4534 }
 0x260   : > { %v1348_v44 = vmul.f32 %v4535_v3, %v1343_v53  ;;  %v5483_v53 = vld [vmem:[%s6713_s3 + $0xa0] ss:$16 sps:$4 sm:$0xff]   ;;  %v5490_v3 = vld [vmem:[%s6713_s3 + $0x84] ss:$16 sps:$4 sm:$0xff]  }
 0x262   : > { %v1354_v60 = vpack.c.bf16 %v1348_v44, %v1348_v44  ;;  %v5497_v44 = vld [vmem:[%s6713_s3 + $0x80] ss:$16 sps:$4 sm:$0xff]  }
 0x264   : > { %1388 = vmatmul.mubr.bf16.vlgmr.msra.gmra.mxu0 %v1354_v60  ;;  %1429 = vmatmul.mubr.bf16.vlgmr.msra.gmra.mxu1 %v1354_v60  ;;  %v5504_v60 = vld [vmem:[%s6713_s3 + $0x64] ss:$16 sps:$4 sm:$0xff]  }
 0x265   : > { %1466 = vmatpush1.bf16.msra.mxu0 %v5406_v5  ;;  %1507 = vmatpush1.bf16.msra.mxu1 %v5168_v14 }
 0x266   : > { %1467 = vmatprep.subr.bf16.mxu0 %v4945_v23  ;;  %1508 = vmatprep.subr.bf16.mxu1 %v5174_v15  ;;  %v5443_v23 = vld [vmem:[%s6713_s3 + $0xe4] ss:$16 sps:$4 sm:$0xff]  }
 0x267   : > { %1497 = vmatprep.mubr.bf16.mxu0 %v6750_v63  ;;  %1538 = vmatprep.mubr.bf16.mxu1 %v6750_v63 }
 0x269   : > { %1468 = vmatpush1.bf16.msra.mxu0 %v4951_v24  ;;  %1509 = vmatpush1.bf16.msra.mxu1 %v5181_v16 }
 0x26a   : > { %1469 = vmatprep.subr.bf16.mxu0 %v4963_v27  ;;  %1510 = vmatprep.subr.bf16.mxu1 %v5188_v17 }
 0x26d   : > { %1470 = vmatpush1.bf16.msra.mxu0 %v4972_v29  ;;  %1511 = vmatpush1.bf16.msra.mxu1 %v5197_v21 }
 0x26e   : > { %1471 = vmatprep.subr.bf16.mxu0 %v4978_v30  ;;  %1512 = vmatprep.subr.bf16.mxu1 %v5204_v22 }
 0x271   : > { %1472 = vmatpush1.bf16.msra.mxu0 %v4990_v33  ;;  %1513 = vmatpush1.bf16.msra.mxu1 %v5211_v25 }
 0x272   : > { %1473 = vmatprep.subr.bf16.mxu0 %v4996_v34  ;;  %1514 = vmatprep.subr.bf16.mxu1 %v5218_v26 }
 0x275   : > { %1474 = vmatpush1.bf16.msra.mxu0 %v5008_v37  ;;  %1515 = vmatpush1.bf16.msra.mxu1 %v5224_v28 }
 0x276   : > { %1475 = vmatprep.subr.bf16.mxu0 %v5014_v38  ;;  %1516 = vmatprep.subr.bf16.mxu1 %v5230_v31 }
 0x279   : > { %1476 = vmatpush1.bf16.msra.mxu0 %v5026_v41  ;;  %1517 = vmatpush1.bf16.msra.mxu1 %v5236_v32 }
 0x27a   : > { %1477 = vmatprep.subr.bf16.mxu0 %v5032_v42  ;;  %1518 = vmatprep.subr.bf16.mxu1 %v5243_v35  ;;  %v6751_v42 = vld [vmem:[#allocation18_spill] sm:$0xff] }
 0x27d   : > { %1478 = vmatpush1.bf16.msra.mxu0 %v5044_v45  ;;  %1519 = vmatpush1.bf16.msra.mxu1 %v5249_v36 }
 0x27e   : > { %1479 = vmatprep.subr.bf16.mxu0 %v5053_v47  ;;  %1520 = vmatprep.subr.bf16.mxu1 %v5255_v39 }
 0x281   : > { %1480 = vmatpush1.bf16.msra.mxu0 %v5068_v51  ;;  %1521 = vmatpush1.bf16.msra.mxu1 %v5261_v40 }
 0x282   : > { %1575 = vmatprep.subr.bf16.mxu0 %v5443_v23  ;;  %1616 = vmatprep.subr.bf16.mxu1 %v5161_v13 }
 0x324   : > { %v1389_v24 = vpop.f32.mrf.mxu0  ;;  %v1430_v27 = vpop.f32.mrf.mxu1 }
 0x325   : > { %v1437_v29 = vadd.f32 %v1389_v24, %v5300_v0  ;;  %v1439_v45 = vadd.f32 %v1430_v27, %v6751_v42  ;;  %v5511_v24 = vld [vmem:[%s6713_s3 + $0x60] ss:$16 sps:$4 sm:$0xff]   ;;  %v5518_v27 = vld [vmem:[%s6713_s3 + $0x44] ss:$16 sps:$4 sm:$0xff]   ;;  %v6753_v42 = vld [vmem:[#allocation8_spill] sm:$0xff] }
 0x326   : > { %v1391_v30 = vpop.f32.mrf.mxu0  ;;  %v1432_v33 = vpop.f32.mrf.mxu1 }
 0x327   : > { %v1441_v34 = vmul.f32 0.5, %v1437_v29  ;;  %v1438_v37 = vadd.f32 %v1391_v30, %v5302_v2  ;;  %v1440_v55 = vadd.f32 %v1432_v33, %v6752_v7  ;;  %v5525_v29 = vld [vmem:[%s6713_s3 + $0x40] ss:$16 sps:$4 sm:$0xff]   ;;  %v5532_v30 = vld [vmem:[%s6713_s3 + $0x24] ss:$16 sps:$4 sm:$0xff]  }
 0x328   : > { %v1393_v38 = vpop.f32.mrf.mxu0  ;;  %v1434_v41 = vpop.f32.mrf.mxu1  ;;  %v5539_v33 = vld [vmem:[%s6713_s3 + $0x20] ss:$16 sps:$4 sm:$0xff]  }
 0x329   : > { %4536 = vtanh.f32 %v1441_v34  ;;  %v1445_v47 = vmul.f32 0.5, %v1438_v37  ;;  %v1450_v52 = vmul.f32 0.5, %v1440_v55  ;;  %v5546_v34 = vld [vmem:[%s6713_s3 + $0x4] ss:$16 sps:$4 sm:$0xff]   ;;  %v5553_v37 = vld [vmem:[%s6713_s3] ss:$16 sps:$4 sm:$0xff]  }
 0x32a   : > { %v1394_v51 = vpop.f32.mrf.mxu0  ;;  %v1435_v8 = vpop.f32.mrf.mxu1  ;;  %v6754_v7 = vld [vmem:[#allocation9_spill] sm:$0xff] }
 0x32b   : > { %4538 = vtanh.f32 %v1445_v47 }
 0x32c   : > { %4540 = vtanh.f32 %v1439_v45 }
 0x32d   : > { %4542 = vtanh.f32 %v1450_v52 }
 0x336   : > { %v4537_v54 = vpop.eup %4536 }
 0x337   : > { %v1443_v0 = vmul.f32 0.5, %v4537_v54 }
 0x338   : > { %v4539_v12 = vpop.eup %4538 }
 0x339   : > { %v1444_v50 = vadd.f32 0.5, %v1443_v0  ;;  %v1447_v19 = vmul.f32 0.5, %v4539_v12  ;;  %v4541_v2 = vpop.eup %4540 }
 0x33a   : > { %v4543_v9 = vpop.eup %4542 }
 0x33b   : > { %v1448_v43 = vadd.f32 0.5, %v1447_v19  ;;  %v1455_v46 = vmul.f32 %v4541_v2, %v1444_v50  ;;  %v1452_v59 = vmul.f32 0.5, %v4543_v9 }
 0x33d   : > { %v1454_v58 = vmul.f32 %v1448_v43, %v5400_v18  ;;  %v1453_v61 = vadd.f32 0.5, %v1452_v59  ;;  %v5460_v18 = vld [vmem:[%s6713_s3 + $0xc4] ss:$16 sps:$4 sm:$0xff]  }
 0x33f   : > { %v5452_v62 = vadd.f32 %v1455_v46, %v1454_v58 }
 0x341   : > { %4544 = vtanh.f32 %v5452_v62 }
 0x34e   : > { %v4545_v1 = vpop.eup %4544 }
 0x34f   : > { %v1458_v49 = vmul.f32 %v4545_v1, %v1453_v61 }
 0x351   : > { %v1464_v20 = vpack.c.bf16 %v1458_v49, %v1458_v49 }
 0x353   : > { %1498 = vmatmul.mubr.bf16.vlgmr.msra.gmra.mxu0 %v1464_v20  ;;  %1539 = vmatmul.mubr.bf16.vlgmr.msra.gmra.mxu1 %v1464_v20 }
 0x354   : > { %1576 = vmatpush1.bf16.msra.mxu0 %v5406_v5  ;;  %1617 = vmatpush1.bf16.msra.mxu1 %v5168_v14 }
 0x355   : > { %1577 = vmatprep.subr.bf16.mxu0 %v5460_v18  ;;  %1618 = vmatprep.subr.bf16.mxu1 %v5174_v15 }
 0x356   : > { %1607 = vmatprep.mubr.bf16.mxu0 %v6750_v63  ;;  %1648 = vmatprep.mubr.bf16.mxu1 %v6750_v63 }
 0x358   : > { %1578 = vmatpush1.bf16.msra.mxu0 %v5469_v57  ;;  %1619 = vmatpush1.bf16.msra.mxu1 %v5181_v16 }
 0x359   : > { %1579 = vmatprep.subr.bf16.mxu0 %v5476_v56  ;;  %1620 = vmatprep.subr.bf16.mxu1 %v5188_v17 }
 0x35c   : > { %1580 = vmatpush1.bf16.msra.mxu0 %v5483_v53  ;;  %1621 = vmatpush1.bf16.msra.mxu1 %v5197_v21 }
 0x35d   : > { %1581 = vmatprep.subr.bf16.mxu0 %v5490_v3  ;;  %1622 = vmatprep.subr.bf16.mxu1 %v5204_v22 }
 0x360   : > { %1582 = vmatpush1.bf16.msra.mxu0 %v5497_v44  ;;  %1623 = vmatpush1.bf16.msra.mxu1 %v5211_v25 }
 0x361   : > { %1583 = vmatprep.subr.bf16.mxu0 %v5504_v60  ;;  %1624 = vmatprep.subr.bf16.mxu1 %v5218_v26 }
 0x364   : > { %1584 = vmatpush1.bf16.msra.mxu0 %v5511_v24  ;;  %1625 = vmatpush1.bf16.msra.mxu1 %v5224_v28 }
 0x365   : > { %1585 = vmatprep.subr.bf16.mxu0 %v5518_v27  ;;  %1626 = vmatprep.subr.bf16.mxu1 %v5230_v31 }
 0x368   : > { %1586 = vmatpush1.bf16.msra.mxu0 %v5525_v29  ;;  %1627 = vmatpush1.bf16.msra.mxu1 %v5236_v32 }
 0x369   : > { %1587 = vmatprep.subr.bf16.mxu0 %v5532_v30  ;;  %1628 = vmatprep.subr.bf16.mxu1 %v5243_v35 }
 0x36c   : > { %1588 = vmatpush1.bf16.msra.mxu0 %v5539_v33  ;;  %1629 = vmatpush1.bf16.msra.mxu1 %v5249_v36 }
 0x36d   : > { %1589 = vmatprep.subr.bf16.mxu0 %v5546_v34  ;;  %1630 = vmatprep.subr.bf16.mxu1 %v5255_v39 }
 0x370   : > { %1590 = vmatpush1.bf16.msra.mxu0 %v5553_v37  ;;  %1631 = vmatpush1.bf16.msra.mxu1 %v5261_v40 }
 0x371   : > { %1685 = vmatprep.subr.bf16.mxu0 %v5443_v23  ;;  %1726 = vmatprep.subr.bf16.mxu1 %v5161_v13 }
 0x413   : > { %v1499_v38 = vpop.f32.mrf.mxu0  ;;  %v1540_v41 = vpop.f32.mrf.mxu1 }
 0x414   : > { %v1547_v45 = vadd.f32 %v1499_v38, %v6753_v42  ;;  %v1549_v0 = vadd.f32 %v1540_v41, %v5338_v10 }
 0x415   : > { %v1501_v47 = vpop.f32.mrf.mxu0  ;;  %v1542_v51 = vpop.f32.mrf.mxu1 }
 0x416   : > { %v1551_v8 = vmul.f32 0.5, %v1547_v45  ;;  %v1548_v55 = vadd.f32 %v1501_v47, %v6754_v7  ;;  %v1550_v2 = vadd.f32 %v1542_v51, %v5340_v6  ;;  %v6755_v7 = vld [vmem:[#allocation10_spill] sm:$0xff] }
 0x417   : > { %v1503_v52 = vpop.f32.mrf.mxu0  ;;  %v1544_v54 = vpop.f32.mrf.mxu1 }
 0x418   : > { %4546 = vtanh.f32 %v1551_v8  ;;  %v1555_v12 = vmul.f32 0.5, %v1548_v55  ;;  %v1560_v43 = vmul.f32 0.5, %v1550_v2 }
 0x419   : > { %v1504_v50 = vpop.f32.mrf.mxu0  ;;  %v1545_v19 = vpop.f32.mrf.mxu1 }
 0x41a   : > { %4548 = vtanh.f32 %v1555_v12  ;;  %v6756_v12 = vld [vmem:[#allocation11_spill] sm:$0xff] }
 0x41b   : > { %4550 = vtanh.f32 %v1549_v0 }
 0x41c   : > { %4552 = vtanh.f32 %v1560_v43 }
 0x425   : > { %v4547_v46 = vpop.eup %4546 }
 0x426   : > { %v1553_v58 = vmul.f32 0.5, %v4547_v46 }
 0x427   : > { %v4549_v9 = vpop.eup %4548 }
 0x428   : > { %v1554_v59 = vadd.f32 0.5, %v1553_v58  ;;  %v1557_v61 = vmul.f32 0.5, %v4549_v9  ;;  %v4551_v1 = vpop.eup %4550 }
 0x429   : > { %v4553_v41 = vpop.eup %4552 }
 0x42a   : > { %v1558_v49 = vadd.f32 0.5, %v1557_v61  ;;  %v1565_v20 = vmul.f32 %v4551_v1, %v1554_v59  ;;  %v1562_v42 = vmul.f32 0.5, %v4553_v41 }
 0x42c   : > { %v1564_v38 = vmul.f32 %v1558_v49, %v5452_v62  ;;  %v1563_v45 = vadd.f32 0.5, %v1562_v42 }
 0x42e   : > { %v5564_v10 = vadd.f32 %v1565_v20, %v1564_v38 }
 0x430   : > { %4554 = vtanh.f32 %v5564_v10 }
 0x43d   : > { %v4555_v6 = vpop.eup %4554 }
 0x43e   : > { %v1568_v47 = vmul.f32 %v4555_v6, %v1563_v45 }
 0x440   : > { %v1574_v51 = vpack.c.bf16 %v1568_v47, %v1568_v47 }
 0x442   : > { %1608 = vmatmul.mubr.bf16.vlgmr.msra.gmra.mxu0 %v1574_v51  ;;  %1649 = vmatmul.mubr.bf16.vlgmr.msra.gmra.mxu1 %v1574_v51 }
 0x443   : > { %1686 = vmatpush1.bf16.msra.mxu0 %v5406_v5  ;;  %1727 = vmatpush1.bf16.msra.mxu1 %v5168_v14 }
 0x444   : > { %1687 = vmatprep.subr.bf16.mxu0 %v5460_v18  ;;  %1728 = vmatprep.subr.bf16.mxu1 %v5174_v15 }
 0x445   : > { %1717 = vmatprep.mubr.bf16.mxu0 %v6750_v63  ;;  %1758 = vmatprep.mubr.bf16.mxu1 %v6750_v63 }
 0x447   : > { %1688 = vmatpush1.bf16.msra.mxu0 %v5469_v57  ;;  %1729 = vmatpush1.bf16.msra.mxu1 %v5181_v16 }
 0x448   : > { %1689 = vmatprep.subr.bf16.mxu0 %v5476_v56  ;;  %1730 = vmatprep.subr.bf16.mxu1 %v5188_v17 }
 0x44b   : > { %1690 = vmatpush1.bf16.msra.mxu0 %v5483_v53  ;;  %1731 = vmatpush1.bf16.msra.mxu1 %v5197_v21 }
 0x44c   : > { %1691 = vmatprep.subr.bf16.mxu0 %v5490_v3  ;;  %1732 = vmatprep.subr.bf16.mxu1 %v5204_v22 }
 0x44f   : > { %1692 = vmatpush1.bf16.msra.mxu0 %v5497_v44  ;;  %1733 = vmatpush1.bf16.msra.mxu1 %v5211_v25 }
 0x450   : > { %1693 = vmatprep.subr.bf16.mxu0 %v5504_v60  ;;  %1734 = vmatprep.subr.bf16.mxu1 %v5218_v26 }
 0x453   : > { %1694 = vmatpush1.bf16.msra.mxu0 %v5511_v24  ;;  %1735 = vmatpush1.bf16.msra.mxu1 %v5224_v28 }
 0x454   : > { %1695 = vmatprep.subr.bf16.mxu0 %v5518_v27  ;;  %1736 = vmatprep.subr.bf16.mxu1 %v5230_v31 }
 0x457   : > { %1696 = vmatpush1.bf16.msra.mxu0 %v5525_v29  ;;  %1737 = vmatpush1.bf16.msra.mxu1 %v5236_v32 }
 0x458   : > { %1697 = vmatprep.subr.bf16.mxu0 %v5532_v30  ;;  %1738 = vmatprep.subr.bf16.mxu1 %v5243_v35 }
 0x45b   : > { %1698 = vmatpush1.bf16.msra.mxu0 %v5539_v33  ;;  %1739 = vmatpush1.bf16.msra.mxu1 %v5249_v36 }
 0x45c   : > { %1699 = vmatprep.subr.bf16.mxu0 %v5546_v34  ;;  %1740 = vmatprep.subr.bf16.mxu1 %v5255_v39 }
 0x45f   : > { %1700 = vmatpush1.bf16.msra.mxu0 %v5553_v37  ;;  %1741 = vmatpush1.bf16.msra.mxu1 %v5261_v40 }
 0x460   : > { %1795 = vmatprep.subr.bf16.mxu0 %v5443_v23  ;;  %1836 = vmatprep.subr.bf16.mxu1 %v5161_v13 }
 0x502   : > { %v1609_v62 = vpop.f32.mrf.mxu0  ;;  %v1650_v8 = vpop.f32.mrf.mxu1 }
 0x503   : > { %v1657_v55 = vadd.f32 %v1609_v62, %v6755_v7  ;;  %v1659_v43 = vadd.f32 %v1650_v8, %v5342_v11 }
 0x504   : > { %v1611_v52 = vpop.f32.mrf.mxu0  ;;  %v1652_v54 = vpop.f32.mrf.mxu1 }
 0x505   : > { %v1661_v0 = vmul.f32 0.5, %v1657_v55  ;;  %v1658_v50 = vadd.f32 %v1611_v52, %v6756_v12  ;;  %v1660_v13 = vadd.f32 %v1652_v54, %v5344_v4  ;;  %v6760_v55 = vld [vmem:[#allocation21_spill] sm:$0xff] }
 0x506   : > { %v1613_v19 = vpop.f32.mrf.mxu0  ;;  %v1654_v2 = vpop.f32.mrf.mxu1 }
 0x507   : > { %4556 = vtanh.f32 %v1661_v0  ;;  %v1665_v46 = vmul.f32 0.5, %v1658_v50  ;;  %v1670_v59 = vmul.f32 0.5, %v1660_v13 }
 0x508   : > { %v1614_v58 = vpop.f32.mrf.mxu0  ;;  %v1655_v9 = vpop.f32.mrf.mxu1 }
 0x509   : > { %4558 = vtanh.f32 %v1665_v46 }
 0x50a   : > { %4560 = vtanh.f32 %v1659_v43 }
 0x50b   : > { %4562 = vtanh.f32 %v1670_v59 }
 0x514   : > { %v4557_v61 = vpop.eup %4556 }
 0x515   : > { %v1663_v1 = vmul.f32 0.5, %v4557_v61 }
 0x516   : > { %v4559_v49 = vpop.eup %4558 }
 0x517   : > { %v1664_v20 = vadd.f32 0.5, %v1663_v1  ;;  %v1667_v38 = vmul.f32 0.5, %v4559_v49  ;;  %v4561_v41 = vpop.eup %4560 }
 0x518   : > { %v4563_v47 = vpop.eup %4562 }
 0x519   : > { %v1668_v42 = vadd.f32 0.5, %v1667_v38  ;;  %v1675_v45 = vmul.f32 %v4561_v41, %v1664_v20  ;;  %v1672_v51 = vmul.f32 0.5, %v4563_v47  ;;  %v4693_v41 = vld [vmem:[%s6713_s3 + $0xe8] ss:$16 sps:$4 sm:$0xff]  }
 0x51a   : > { %v6761_v47 = vld [vmem:[#allocation14_spill] sm:$0xff] }
 0x51b   : > { %v1674_v6 = vmul.f32 %v1668_v42, %v5564_v10  ;;  %v1673_v62 = vadd.f32 0.5, %v1672_v51  ;;  %v4694_v42 = vld [vmem:[%s6713_s3 + $0xcc] ss:$16 sps:$4 sm:$0xff]  }
 0x51d   : > { %v5606_v11 = vadd.f32 %v1675_v45, %v1674_v6  ;;  %v4697_v45 = vld [vmem:[%s6713_s3 + $0xa8] ss:$16 sps:$4 sm:$0xff]  }
 0x51f   : > { %4564 = vtanh.f32 %v5606_v11 }
 0x52c   : > { %v4565_v4 = vpop.eup %4564 }
 0x52d   : > { %v1678_v8 = vmul.f32 %v4565_v4, %v1673_v62 }
 0x52f   : > { %v1684_v7 = vpack.c.bf16 %v1678_v8, %v1678_v8  ;;  %v6762_v8 = vld [vmem:[#allocation15_spill] sm:$0xff] }
 0x531   : > { %1718 = vmatmul.mubr.bf16.vlgmr.msra.gmra.mxu0 %v1684_v7  ;;  %1759 = vmatmul.mubr.bf16.vlgmr.msra.gmra.mxu1 %v1684_v7 }
 0x532   : > { %1796 = vmatpush1.bf16.msra.mxu0 %v5406_v5  ;;  %1837 = vmatpush1.bf16.msra.mxu1 %v5168_v14  ;;  %v4692_v14 = vld [vmem:[%s6713_s3 + $0xec] ss:$16 sps:$4 sm:$0xff]  }
 0x533   : > { %1797 = vmatprep.subr.bf16.mxu0 %v5460_v18  ;;  %1838 = vmatprep.subr.bf16.mxu1 %v5174_v15 }
 0x534   : > { %1827 = vmatprep.mubr.bf16.mxu0 %v6750_v63  ;;  %1868 = vmatprep.mubr.bf16.mxu1 %v6750_v63 }
 0x536   : > { %1798 = vmatpush1.bf16.msra.mxu0 %v5469_v57  ;;  %1839 = vmatpush1.bf16.msra.mxu1 %v5181_v16 }
 0x537   : > { %1799 = vmatprep.subr.bf16.mxu0 %v5476_v56  ;;  %1840 = vmatprep.subr.bf16.mxu1 %v5188_v17  ;;  %v6757_v17 = vld [vmem:[#allocation12_spill] sm:$0xff] }
 0x53a   : > { %1800 = vmatpush1.bf16.msra.mxu0 %v5483_v53  ;;  %1841 = vmatpush1.bf16.msra.mxu1 %v5197_v21 }
 0x53b   : > { %1801 = vmatprep.subr.bf16.mxu0 %v5490_v3  ;;  %1842 = vmatprep.subr.bf16.mxu1 %v5204_v22 }
 0x53e   : > { %1802 = vmatpush1.bf16.msra.mxu0 %v5497_v44  ;;  %1843 = vmatpush1.bf16.msra.mxu1 %v5211_v25 }
 0x53f   : > { %1803 = vmatprep.subr.bf16.mxu0 %v5504_v60  ;;  %1844 = vmatprep.subr.bf16.mxu1 %v5218_v26 }
 0x542   : > { %1804 = vmatpush1.bf16.msra.mxu0 %v5511_v24  ;;  %1845 = vmatpush1.bf16.msra.mxu1 %v5224_v28  ;;  %v6758_v28 = vld [vmem:[#allocation13_spill] sm:$0xff] }
 0x543   : > { %1805 = vmatprep.subr.bf16.mxu0 %v5518_v27  ;;  %1846 = vmatprep.subr.bf16.mxu1 %v5230_v31 }
 0x546   : > { %1806 = vmatpush1.bf16.msra.mxu0 %v5525_v29  ;;  %1847 = vmatpush1.bf16.msra.mxu1 %v5236_v32 }
 0x547   : > { %1807 = vmatprep.subr.bf16.mxu0 %v5532_v30  ;;  %1848 = vmatprep.subr.bf16.mxu1 %v5243_v35 }
 0x54a   : > { %1808 = vmatpush1.bf16.msra.mxu0 %v5539_v33  ;;  %1849 = vmatpush1.bf16.msra.mxu1 %v5249_v36  ;;  %v6759_v36 = vld [vmem:[#allocation20_spill] sm:$0xff] }
 0x54b   : > { %1809 = vmatprep.subr.bf16.mxu0 %v5546_v34  ;;  %1850 = vmatprep.subr.bf16.mxu1 %v5255_v39 }
 0x54e   : > { %1810 = vmatpush1.bf16.msra.mxu0 %v5553_v37  ;;  %1851 = vmatpush1.bf16.msra.mxu1 %v5261_v40 }
 0x54f   : > { %1905 = vmatprep.subr.bf16.mxu0 %v5443_v23  ;;  %1946 = vmatprep.subr.bf16.mxu1 %v4692_v14 }
 0x5f1   : > { %v1719_v15 = vpop.f32.mrf.mxu0  ;;  %v1760_v16 = vpop.f32.mrf.mxu1 }
 0x5f2   : > { %v1767_v21 = vadd.f32 %v1719_v15, %v6757_v17  ;;  %v1769_v39 = vadd.f32 %v1760_v16, %v6759_v36  ;;  %v6763_v16 = vld [vmem:[#allocation22_spill] sm:$0xff] }
 0x5f3   : > { %v1721_v22 = vpop.f32.mrf.mxu0  ;;  %v1762_v25 = vpop.f32.mrf.mxu1 }
 0x5f4   : > { %v1771_v26 = vmul.f32 0.5, %v1767_v21  ;;  %v1768_v31 = vadd.f32 %v1721_v22, %v6758_v28  ;;  %v1770_v52 = vadd.f32 %v1762_v25, %v6760_v55 }
 0x5f5   : > { %v1723_v32 = vpop.f32.mrf.mxu0  ;;  %v1764_v35 = vpop.f32.mrf.mxu1 }
 0x5f6   : > { %4566 = vtanh.f32 %v1771_v26  ;;  %v1775_v40 = vmul.f32 0.5, %v1768_v31  ;;  %v1780_v54 = vmul.f32 0.5, %v1770_v52  ;;  %v6764_v26 = vld [vmem:[#allocation23_spill] sm:$0xff] }
 0x5f7   : > { %v1724_v23 = vpop.f32.mrf.mxu0  ;;  %v1765_v10 = vpop.f32.mrf.mxu1 }
 0x5f8   : > { %4568 = vtanh.f32 %v1775_v40 }
 0x5f9   : > { %4570 = vtanh.f32 %v1769_v39 }
 0x5fa   : > { %4572 = vtanh.f32 %v1780_v54 }
 0x603   : > { %v4567_v0 = vpop.eup %4566 }
 0x604   : > { %v1773_v12 = vmul.f32 0.5, %v4567_v0 }
 0x605   : > { %v4569_v50 = vpop.eup %4568 }
 0x606   : > { %v1774_v19 = vadd.f32 0.5, %v1773_v12  ;;  %v1777_v2 = vmul.f32 0.5, %v4569_v50  ;;  %v4571_v43 = vpop.eup %4570 }
 0x607   : > { %v4573_v59 = vpop.eup %4572 }
 0x608   : > { %v1778_v46 = vadd.f32 0.5, %v1777_v2  ;;  %v1785_v58 = vmul.f32 %v4571_v43, %v1774_v19  ;;  %v1782_v61 = vmul.f32 0.5, %v4573_v59  ;;  %v4412_v43 = vld [vmem:[%s6715_s5 + $0xe0] ss:$16 sps:$4 sm:$0xff]  }
 0x609   : > { %v4415_v59 = vld [vmem:[%s6715_s5 + $0xc0] ss:$16 sps:$4 sm:$0xff]  }
 0x60a   : > { %v1784_v9 = vmul.f32 %v1778_v46, %v5606_v11  ;;  %v1783_v1 = vadd.f32 0.5, %v1782_v61  ;;  %v4418_v46 = vld [vmem:[%s6715_s5 + $0xe8] ss:$16 sps:$4 sm:$0xff]  }
 0x60b   : > { %v4424_v61 = vld [vmem:[%s6715_s5 + $0xc8] ss:$16 sps:$4 sm:$0xff]  }
 0x60c   : > { %v5650_v13 = vadd.f32 %v1785_v58, %v1784_v9  ;;  %v4417_v9 = vld [vmem:[%s6715_s5 + $0xc4] ss:$16 sps:$4 sm:$0xff]  }
 0x60e   : > { %4574 = vtanh.f32 %v5650_v13 }
 0x61b   : > { %v4575_v49 = vpop.eup %4574 }
 0x61c   : > { %v1788_v20 = vmul.f32 %v4575_v49, %v1783_v1  ;;  %v4423_v1 = vld [vmem:[%s6715_s5 + $0xa4] ss:$16 sps:$4 sm:$0xff]   ;;  %v4432_v49 = vld [vmem:[%s6715_s5 + $0xac] ss:$16 sps:$4 sm:$0xff]  }
 0x61e   : > { %v1794_v38 = vpack.c.bf16 %v1788_v20, %v1788_v20  ;;  %v4421_v20 = vld [vmem:[%s6715_s5 + $0xa0] ss:$16 sps:$4 sm:$0xff]  }
 0x620   : > { %1828 = vmatmul.mubr.bf16.vlgmr.msra.gmra.mxu0 %v1794_v38  ;;  %1869 = vmatmul.mubr.bf16.vlgmr.msra.gmra.mxu1 %v1794_v38  ;;  %v4430_v38 = vld [vmem:[%s6715_s5 + $0xa8] ss:$16 sps:$4 sm:$0xff]  }
 0x621   : > { %1906 = vmatpush1.bf16.msra.mxu0 %v5406_v5  ;;  %1947 = vmatpush1.bf16.msra.mxu1 %v4693_v41  ;;  %v4695_v5 = vld [vmem:[%s6713_s3 + $0xc8] ss:$16 sps:$4 sm:$0xff]   ;;  %v4429_v41 = vld [vmem:[%s6715_s5 + $0x84] ss:$16 sps:$4 sm:$0xff]  }
 0x622   : > { %1907 = vmatprep.subr.bf16.mxu0 %v5460_v18  ;;  %1948 = vmatprep.subr.bf16.mxu1 %v4694_v42  ;;  %v4696_v18 = vld [vmem:[%s6713_s3 + $0xac] ss:$16 sps:$4 sm:$0xff]  }
 0x623   : > { %1937 = vmatprep.mubr.bf16.mxu0 %v6750_v63  ;;  %1978 = vmatprep.mubr.bf16.mxu1 %v6750_v63  ;;  %v4438_v42 = vld [vmem:[%s6715_s5 + $0x8c] ss:$16 sps:$4 sm:$0xff]  }
 0x625   : > { %1908 = vmatpush1.bf16.msra.mxu0 %v5469_v57  ;;  %1949 = vmatpush1.bf16.msra.mxu1 %v4695_v5  ;;  %v4698_v57 = vld [vmem:[%s6713_s3 + $0x8c] ss:$16 sps:$4 sm:$0xff]   ;;  %v4427_v5 = vld [vmem:[%s6715_s5 + $0x80] ss:$16 sps:$4 sm:$0xff]  }
 0x626   : > { %1909 = vmatprep.subr.bf16.mxu0 %v5476_v56  ;;  %1950 = vmatprep.subr.bf16.mxu1 %v4696_v18  ;;  %v4699_v56 = vld [vmem:[%s6713_s3 + $0x88] ss:$16 sps:$4 sm:$0xff]  }
 0x627   : > { %v4436_v18 = vld [vmem:[%s6715_s5 + $0x88] ss:$16 sps:$4 sm:$0xff]  }
 0x629   : > { %1910 = vmatpush1.bf16.msra.mxu0 %v5483_v53  ;;  %1951 = vmatpush1.bf16.msra.mxu1 %v4697_v45  ;;  %v4700_v53 = vld [vmem:[%s6713_s3 + $0x6c] ss:$16 sps:$4 sm:$0xff]   ;;  %v4435_v45 = vld [vmem:[%s6715_s5 + $0x64] ss:$16 sps:$4 sm:$0xff]  }
 0x62a   : > { %1911 = vmatprep.subr.bf16.mxu0 %v5490_v3  ;;  %1952 = vmatprep.subr.bf16.mxu1 %v4698_v57  ;;  %v4701_v3 = vld [vmem:[%s6713_s3 + $0x68] ss:$16 sps:$4 sm:$0xff]   ;;  %v4444_v57 = vld [vmem:[%s6715_s5 + $0x6c] ss:$16 sps:$4 sm:$0xff]  }
 0x62d   : > { %1912 = vmatpush1.bf16.msra.mxu0 %v5497_v44  ;;  %1953 = vmatpush1.bf16.msra.mxu1 %v4699_v56  ;;  %v4702_v44 = vld [vmem:[%s6713_s3 + $0x4c] ss:$16 sps:$4 sm:$0xff]   ;;  %v4433_v56 = vld [vmem:[%s6715_s5 + $0x60] ss:$16 sps:$4 sm:$0xff]  }
 0x62e   : > { %1913 = vmatprep.subr.bf16.mxu0 %v5504_v60  ;;  %1954 = vmatprep.subr.bf16.mxu1 %v4700_v53  ;;  %v4703_v60 = vld [vmem:[%s6713_s3 + $0x48] ss:$16 sps:$4 sm:$0xff]  }
 0x62f   : > { %v4442_v53 = vld [vmem:[%s6715_s5 + $0x68] ss:$16 sps:$4 sm:$0xff]  }
 0x631   : > { %1914 = vmatpush1.bf16.msra.mxu0 %v5511_v24  ;;  %1955 = vmatpush1.bf16.msra.mxu1 %v4701_v3  ;;  %v4704_v24 = vld [vmem:[%s6713_s3 + $0x2c] ss:$16 sps:$4 sm:$0xff]   ;;  %v4441_v3 = vld [vmem:[%s6715_s5 + $0x44] ss:$16 sps:$4 sm:$0xff]  }
 0x632   : > { %1915 = vmatprep.subr.bf16.mxu0 %v5518_v27  ;;  %1956 = vmatprep.subr.bf16.mxu1 %v4702_v44  ;;  %v4705_v27 = vld [vmem:[%s6713_s3 + $0x28] ss:$16 sps:$4 sm:$0xff]   ;;  %v4439_v44 = vld [vmem:[%s6715_s5 + $0x40] ss:$16 sps:$4 sm:$0xff]  }
 0x635   : > { %1916 = vmatpush1.bf16.msra.mxu0 %v5525_v29  ;;  %1957 = vmatpush1.bf16.msra.mxu1 %v4703_v60  ;;  %v4706_v29 = vld [vmem:[%s6713_s3 + $0xc] ss:$16 sps:$4 sm:$0xff]   ;;  %v4447_v60 = vld [vmem:[%s6715_s5 + $0x24] ss:$16 sps:$4 sm:$0xff]  }
 0x636   : > { %1917 = vmatprep.subr.bf16.mxu0 %v5532_v30  ;;  %1958 = vmatprep.subr.bf16.mxu1 %v4704_v24  ;;  %v4707_v30 = vld [vmem:[%s6713_s3 + $0x8] ss:$16 sps:$4 sm:$0xff]   ;;  %v4445_v24 = vld [vmem:[%s6715_s5 + $0x20] ss:$16 sps:$4 sm:$0xff]  }
 0x639   : > { %1918 = vmatpush1.bf16.msra.mxu0 %v5539_v33  ;;  %1959 = vmatpush1.bf16.msra.mxu1 %v4705_v27  ;;  %v4414_v33 = vld [vmem:[%s6715_s5 + $0xe4] ss:$16 sps:$4 sm:$0xff]   ;;  %v4450_v27 = vld [vmem:[%s6715_s5 + $0x4c] ss:$16 sps:$4 sm:$0xff]  }
 0x63a   : > { %1919 = vmatprep.subr.bf16.mxu0 %v5546_v34  ;;  %1960 = vmatprep.subr.bf16.mxu1 %v4706_v29  ;;  %v4420_v34 = vld [vmem:[%s6715_s5 + $0xec] ss:$16 sps:$4 sm:$0xff]   ;;  %v4448_v29 = vld [vmem:[%s6715_s5 + $0x48] ss:$16 sps:$4 sm:$0xff]  }
 0x63d   : > { %1920 = vmatpush1.bf16.msra.mxu0 %v5553_v37  ;;  %1961 = vmatpush1.bf16.msra.mxu1 %v4707_v30  ;;  %v4453_v30 = vld [vmem:[%s6715_s5 + $0x4] ss:$16 sps:$4 sm:$0xff]  }
 0x63e   : > { %2236 = vmatprep.subr.bf16.mxu0 %v4414_v33  ;;  %2309 = vmatprep.subr.bf16.mxu1 %v4420_v34  ;;  %v4451_v33 = vld [vmem:[%s6715_s5] ss:$16 sps:$4 sm:$0xff]   ;;  %v4456_v34 = vld [vmem:[%s6715_s5 + $0x2c] ss:$16 sps:$4 sm:$0xff]  }
 0x6e0   : > { %v1829_v6 = vpop.f32.mrf.mxu0  ;;  %v1870_v11 = vpop.f32.mrf.mxu1 }
 0x6e1   : > { %v1877_v51 = vadd.f32 %v1829_v6, %v6761_v47  ;;  %v1879_v17 = vadd.f32 %v1870_v11, %v6763_v16  ;;  %v4454_v6 = vld [vmem:[%s6715_s5 + $0x28] ss:$16 sps:$4 sm:$0xff]   ;;  %v2043_v11 = vld [vmem:[%s6711_s1] sm:$0xff] }
 0x6e2   : > { %v1831_v37 = vpop.f32.mrf.mxu0  ;;  %v1872_v62 = vpop.f32.mrf.mxu1  ;;  %v2044_v47 = vld [vmem:[%s6711_s1 + $0x8] sm:$0xff]  ;;  %v2046_v16 = vld [vmem:[%s6711_s1 + $0x18] sm:$0xff] }
 0x6e3   : > { %v1881_v4 = vmul.f32 0.5, %v1877_v51  ;;  %v1878_v7 = vadd.f32 %v1831_v37, %v6762_v8  ;;  %v1880_v28 = vadd.f32 %v1872_v62, %v6764_v26  ;;  %v2051_v51 = vpack.c.bf16 %v2044_v47, %v2043_v11  ;;  %v4459_v37 = vld [vmem:[%s6715_s5 + $0xc] ss:$16 sps:$4 sm:$0xff]   ;;  %v4457_v62 = vld [vmem:[%s6715_s5 + $0x8] ss:$16 sps:$4 sm:$0xff]  }
 0x6e4   : > { %v1833_v14 = vpop.f32.mrf.mxu0  ;;  %v1874_v15 = vpop.f32.mrf.mxu1  ;;  %v5836_v8 = vld [vmem:[%s6716_s6 + $0xec] ss:$16 sps:$4 sm:$0xff]   ;;  %v5877_v26 = vld [vmem:[%s6716_s6 + $0xc8] ss:$16 sps:$4 sm:$0xff]  }
 0x6e5   : > { %4576 = vtanh.f32 %v1881_v4  ;;  %v1885_v21 = vmul.f32 0.5, %v1878_v7  ;;  %v1890_v31 = vmul.f32 0.5, %v1880_v28  ;;  %v5831_v4 = vld [vmem:[%s6716_s6 + $0xe4] ss:$16 sps:$4 sm:$0xff]   ;;  %v5841_v7 = vld [vmem:[%s6716_s6 + $0xe0] ss:$16 sps:$4 sm:$0xff]  }
 0x6e6   : > { %v1834_v22 = vpop.f32.mrf.mxu0  ;;  %v1875_v25 = vpop.f32.mrf.mxu1  ;;  %v5846_v14 = vld [vmem:[%s6716_s6 + $0xe8] ss:$16 sps:$4 sm:$0xff]   ;;  %v2045_v15 = vld [vmem:[%s6711_s1 + $0x10] sm:$0xff] }
 0x6e7   : > { %4578 = vtanh.f32 %v1885_v21  ;;  %v5861_v21 = vld [vmem:[%s6716_s6 + $0xc4] ss:$16 sps:$4 sm:$0xff]   ;;  %v5866_v22 = vld [vmem:[%s6716_s6 + $0xcc] ss:$16 sps:$4 sm:$0xff]   ;;  %v5872_v25 = vld [vmem:[%s6716_s6 + $0xc0] ss:$16 sps:$4 sm:$0xff]  }
 0x6e8   : > { %4580 = vtanh.f32 %v1879_v17  ;;  %v2052_v17 = vpack.c.bf16 %v2046_v16, %v2045_v15  ;;  %v5887_v28 = vld [vmem:[%s6716_s6 + $0xa4] ss:$16 sps:$4 sm:$0xff]  }
 0x6e9   : > { %4582 = vtanh.f32 %v1890_v31  ;;  %v5892_v31 = vld [vmem:[%s6716_s6 + $0xac] ss:$16 sps:$4 sm:$0xff]  }
 0x6f2   : > { %v4577_v32 = vpop.eup %4576 }
 0x6f3   : > { %v1883_v35 = vmul.f32 0.5, %v4577_v32  ;;  %v5897_v32 = vld [vmem:[%s6716_s6 + $0xa0] ss:$16 sps:$4 sm:$0xff]  }
 0x6f4   : > { %v4579_v36 = vpop.eup %4578 }
 0x6f5   : > { %v1884_v39 = vadd.f32 0.5, %v1883_v35  ;;  %v1887_v40 = vmul.f32 0.5, %v4579_v36  ;;  %v4581_v23 = vpop.eup %4580  ;;  %v5902_v35 = vld [vmem:[%s6716_s6 + $0xa8] ss:$16 sps:$4 sm:$0xff]   ;;  %v2047_v36 = vld [vmem:[%s6711_s1 + $0x20] sm:$0xff] }
 0x6f6   : > { %v4583_v0 = vpop.eup %4582 }
 0x6f7   : > { %v1888_v10 = vadd.f32 0.5, %v1887_v40  ;;  %v1895_v55 = vmul.f32 %v4581_v23, %v1884_v39  ;;  %v1892_v12 = vmul.f32 0.5, %v4583_v0  ;;  %v2048_v39 = vld [vmem:[%s6711_s1 + $0x28] sm:$0xff]  ;;  %v5917_v23 = vld [vmem:[%s6716_s6 + $0x84] ss:$16 sps:$4 sm:$0xff]  }
 0x6f8   : > { %v2053_v40 = vpack.c.bf16 %v2048_v39, %v2047_v36  ;;  %v5943_v0 = vld [vmem:[%s6716_s6 + $0x64] ss:$16 sps:$4 sm:$0xff]  }
 0x6f9   : > { %v1894_v52 = vmul.f32 %v1888_v10, %v5650_v13  ;;  %v1893_v50 = vadd.f32 0.5, %v1892_v12  ;;  %v4426_v13 = vld [vmem:[%s6715_s5 + $0xcc] ss:$16 sps:$4 sm:$0xff]  }
 0x6fa   : > { %v5922_v10 = vld [vmem:[%s6716_s6 + $0x8c] ss:$16 sps:$4 sm:$0xff]  }
 0x6fb   : > { %v5726_v54 = vadd.f32 %v1895_v55, %v1894_v52  ;;  %v5928_v55 = vld [vmem:[%s6716_s6 + $0x80] ss:$16 sps:$4 sm:$0xff]   ;;  %v5933_v52 = vld [vmem:[%s6716_s6 + $0x88] ss:$16 sps:$4 sm:$0xff]   ;;  %v5948_v12 = vld [vmem:[%s6716_s6 + $0x6c] ss:$16 sps:$4 sm:$0xff]  }
 0x6fd   : > { %4584 = vtanh.f32 %v5726_v54 }
 0x70a   : > { %v4585_v19 = vpop.eup %4584 }
 0x70b   : > { %v1898_v2 = vmul.f32 %v4585_v19, %v1893_v50  ;;  %v5953_v50 = vld [vmem:[%s6716_s6 + $0x60] ss:$16 sps:$4 sm:$0xff]   ;;  %v5958_v19 = vld [vmem:[%s6716_s6 + $0x68] ss:$16 sps:$4 sm:$0xff]  }
 0x70d   : > { %v1904_v58 = vpack.c.bf16 %v1898_v2, %v1898_v2  ;;  %v2049_v2 = vld [vmem:[%s6711_s1 + $0x30] sm:$0xff] }
 0x70f   : > { %1938 = vmatmul.mubr.bf16.vlgmr.msra.gmra.mxu0 %v1904_v58  ;;  %1979 = vmatmul.mubr.bf16.vlgmr.msra.gmra.mxu1 %v1904_v58  ;;  %v5973_v58 = vld [vmem:[%s6716_s6 + $0x44] ss:$16 sps:$4 sm:$0xff]  }
 0x710   : > { %2237 = vmatpush1.bf16.msra.mxu0 %v4412_v43  ;;  %2310 = vmatpush1.bf16.msra.mxu1 %v4418_v46  ;;  %v2050_v43 = vld [vmem:[%s6711_s1 + $0x38] sm:$0xff] }
 0x711   : > { %2238 = vmatprep.subr.bf16.mxu0 %v4417_v9  ;;  %2311 = vmatprep.subr.bf16.mxu1 %v4426_v13  ;;  %v2054_v46 = vpack.c.bf16 %v2050_v43, %v2049_v2  ;;  %v5978_v9 = vld [vmem:[%s6716_s6 + $0x4c] ss:$16 sps:$4 sm:$0xff]   ;;  %v5984_v13 = vld [vmem:[%s6716_s6 + $0x40] ss:$16 sps:$4 sm:$0xff]  }
 0x712   : > { %2268 = vmatprep.mubr.bf16.mxu0 %v6750_v63  ;;  %2341 = vmatprep.mubr.bf16.mxu1 %v6750_v63 }
 0x714   : > { %2239 = vmatpush1.bf16.msra.mxu0 %v4415_v59  ;;  %2312 = vmatpush1.bf16.msra.mxu1 %v4424_v61  ;;  %v5989_v59 = vld [vmem:[%s6716_s6 + $0x48] ss:$16 sps:$4 sm:$0xff]   ;;  %v5999_v61 = vld [vmem:[%s6716_s6 + $0x24] ss:$16 sps:$4 sm:$0xff]  }
 0x715   : > { %2240 = vmatprep.subr.bf16.mxu0 %v4423_v1  ;;  %2313 = vmatprep.subr.bf16.mxu1 %v4432_v49  ;;  %v6004_v1 = vld [vmem:[%s6716_s6 + $0x2c] ss:$16 sps:$4 sm:$0xff]   ;;  %v6009_v49 = vld [vmem:[%s6716_s6 + $0x20] ss:$16 sps:$4 sm:$0xff]  }
 0x718   : > { %2241 = vmatpush1.bf16.msra.mxu0 %v4421_v20  ;;  %2314 = vmatpush1.bf16.msra.mxu1 %v4430_v38  ;;  %v6014_v20 = vld [vmem:[%s6716_s6 + $0x28] ss:$16 sps:$4 sm:$0xff]   ;;  %v6023_v38 = vld [vmem:[%s6716_s6 + $0x4] ss:$16 sps:$4 sm:$0xff]  }
 0x719   : > { %2242 = vmatprep.subr.bf16.mxu0 %v4429_v41  ;;  %2315 = vmatprep.subr.bf16.mxu1 %v4438_v42  ;;  %v6028_v41 = vld [vmem:[%s6716_s6 + $0xc] ss:$16 sps:$4 sm:$0xff]   ;;  %v6034_v42 = vld [vmem:[%s6716_s6] ss:$16 sps:$4 sm:$0xff]  }
 0x71c   : > { %2243 = vmatpush1.bf16.msra.mxu0 %v4427_v5  ;;  %2316 = vmatpush1.bf16.msra.mxu1 %v4436_v18  ;;  %v6039_v5 = vld [vmem:[%s6716_s6 + $0x8] ss:$16 sps:$4 sm:$0xff]  }
 0x71d   : > { %2244 = vmatprep.subr.bf16.mxu0 %v4435_v45  ;;  %2317 = vmatprep.subr.bf16.mxu1 %v4444_v57  ;;  %v6765_v57 = vld [vmem:[#allocation16_spill] sm:$0xff] }
 0x720   : > { %2245 = vmatpush1.bf16.msra.mxu0 %v4433_v56  ;;  %2318 = vmatpush1.bf16.msra.mxu1 %v4442_v53 }
 0x721   : > { %2246 = vmatprep.subr.bf16.mxu0 %v4441_v3  ;;  %2319 = vmatprep.subr.bf16.mxu1 %v4450_v27 }
 0x724   : > { %2247 = vmatpush1.bf16.msra.mxu0 %v4439_v44  ;;  %2320 = vmatpush1.bf16.msra.mxu1 %v4448_v29 }
 0x725   : > { %2248 = vmatprep.subr.bf16.mxu0 %v4447_v60  ;;  %2321 = vmatprep.subr.bf16.mxu1 %v4456_v34  ;;  %v6766_v60 = vld [vmem:[#allocation17_spill] sm:$0xff] }
 0x728   : > { %2249 = vmatpush1.bf16.msra.mxu0 %v4445_v24  ;;  %2322 = vmatpush1.bf16.msra.mxu1 %v4454_v6 }
 0x729   : > { %2250 = vmatprep.subr.bf16.mxu0 %v4453_v30  ;;  %2323 = vmatprep.subr.bf16.mxu1 %v4459_v37  ;;  %v6767_v30 = vld [vmem:[#allocation24_spill] sm:$0xff] }
 0x72c   : > { %2251 = vmatpush1.bf16.msra.mxu0 %v4451_v33  ;;  %2324 = vmatpush1.bf16.msra.mxu1 %v4457_v62 }
 0x72d   : > { %2611 = vmatprep.subr.bf16.mxu0 %v5831_v4  ;;  %2652 = vmatprep.subr.bf16.mxu1 %v5836_v8 }
 0x72f   : > { %2269 = vmatmul.mubr.bf16.vlgmr.msra.gmra.mxu0 %v2051_v51  ;;  %2342 = vmatmul.mubr.bf16.vlgmr.msra.gmra.mxu1 %v2051_v51 }
 0x730   : > { %2278 = vmatprep.mubr.bf16.mxu0 %v6750_v63  ;;  %2612 = vmatpush1.bf16.msra.mxu0 %v5841_v7 }
 0x731   : > { %2653 = vmatpush1.bf16.msra.mxu1 %v5846_v14  ;;  %2351 = vmatprep.mubr.bf16.mxu1 %v6750_v63 }
 0x732   : > { %2613 = vmatprep.subr.bf16.mxu0 %v5861_v21  ;;  %2654 = vmatprep.subr.bf16.mxu1 %v5866_v22 }
 0x734   : > { %2614 = vmatpush1.bf16.msra.mxu0 %v5872_v25 }
 0x735   : > { %2655 = vmatpush1.bf16.msra.mxu1 %v5877_v26  ;;  %2615 = vmatprep.subr.bf16.mxu0 %v5887_v28 }
 0x736   : > { %2656 = vmatprep.subr.bf16.mxu1 %v5892_v31 }
 0x737   : > { %2279 = vmatmul.mubr.bf16.gmra.mxu0 %v2052_v17  ;;  %2352 = vmatmul.mubr.bf16.gmra.mxu1 %v2052_v17 }
 0x738   : > { %2288 = vmatprep.mubr.bf16.mxu0 %v6750_v63  ;;  %2616 = vmatpush1.bf16.msra.mxu0 %v5897_v32 }
 0x739   : > { %2657 = vmatpush1.bf16.msra.mxu1 %v5902_v35  ;;  %2361 = vmatprep.mubr.bf16.mxu1 %v6750_v63 }
 0x73a   : > { %2617 = vmatprep.subr.bf16.mxu0 %v5917_v23  ;;  %2658 = vmatprep.subr.bf16.mxu1 %v5922_v10 }
 0x73c   : > { %2618 = vmatpush1.bf16.msra.mxu0 %v5928_v55 }
 0x73d   : > { %2659 = vmatpush1.bf16.msra.mxu1 %v5933_v52  ;;  %2619 = vmatprep.subr.bf16.mxu0 %v5943_v0 }
 0x73e   : > { %2660 = vmatprep.subr.bf16.mxu1 %v5948_v12 }
 0x73f   : > { %2289 = vmatmul.mubr.bf16.gmra.mxu0 %v2053_v40  ;;  %2362 = vmatmul.mubr.bf16.gmra.mxu1 %v2053_v40 }
 0x740   : > { %2298 = vmatprep.mubr.bf16.mxu0 %v6750_v63  ;;  %2620 = vmatpush1.bf16.msra.mxu0 %v5953_v50 }
 0x741   : > { %2661 = vmatpush1.bf16.msra.mxu1 %v5958_v19  ;;  %2371 = vmatprep.mubr.bf16.mxu1 %v6750_v63 }
 0x742   : > { %2621 = vmatprep.subr.bf16.mxu0 %v5973_v58  ;;  %2662 = vmatprep.subr.bf16.mxu1 %v5978_v9 }
 0x744   : > { %2622 = vmatpush1.bf16.msra.mxu0 %v5984_v13 }
 0x745   : > { %2663 = vmatpush1.bf16.msra.mxu1 %v5989_v59  ;;  %2623 = vmatprep.subr.bf16.mxu0 %v5999_v61 }
 0x746   : > { %2664 = vmatprep.subr.bf16.mxu1 %v6004_v1 }
 0x747   : > { %2299 = vmatmul.mubr.bf16.gmra.mxu0 %v2054_v46  ;;  %2372 = vmatmul.mubr.bf16.gmra.mxu1 %v2054_v46 }
 0x748   : > { %2643 = vmatprep.mubr.bf16.mxu0 %v6750_v63  ;;  %2624 = vmatpush1.bf16.msra.mxu0 %v6009_v49 }
 0x749   : > { %2665 = vmatpush1.bf16.msra.mxu1 %v6014_v20  ;;  %2684 = vmatprep.mubr.bf16.mxu1 %v6750_v63 }
 0x74a   : > { %2625 = vmatprep.subr.bf16.mxu0 %v6023_v38  ;;  %2666 = vmatprep.subr.bf16.mxu1 %v6028_v41 }
 0x74c   : > { %2626 = vmatpush1.bf16.msra.mxu0 %v6034_v42 }
 0x74d   : > { %2667 = vmatpush1.bf16.msra.mxu1 %v6039_v5  ;;  %2721 = vmatprep.subr.bf16.mxu0 %v5831_v4 }
 0x74e   : > { %2762 = vmatprep.subr.bf16.mxu1 %v5836_v8 }
 0x7cf   : > { %v1939_v18 = vpop.f32.mrf.mxu0  ;;  %v1980_v45 = vpop.f32.mrf.mxu1 }
 0x7d0   : > { %v1987_v56 = vadd.f32 %v1939_v18, %v6765_v57  ;;  %v1989_v33 = vadd.f32 %v1980_v45, %v6767_v30 }
 0x7d1   : > { %v1941_v53 = vpop.f32.mrf.mxu0  ;;  %v1982_v3 = vpop.f32.mrf.mxu1 }
 0x7d2   : > { %v1991_v44 = vmul.f32 0.5, %v1987_v56  ;;  %v1988_v24 = vadd.f32 %v1941_v53, %v6766_v60  ;;  %v1990_v47 = vadd.f32 %v1982_v3, %v5356_v48  ;;  %v6768_v3 = vld [vmem:[#allocation7_spill] sm:$0xff] }
 0x7d3   : > { %v1943_v27 = vpop.f32.mrf.mxu0  ;;  %v1984_v29 = vpop.f32.mrf.mxu1 }
 0x7d4   : > { %4586 = vtanh.f32 %v1991_v44  ;;  %v1995_v34 = vmul.f32 0.5, %v1988_v24  ;;  %v2000_v51 = vmul.f32 0.5, %v1990_v47  ;;  %v6769_v44 = vsub.s32 0, %v6768_v3 }
 0x7d5   : > { %v1944_v6 = vpop.f32.mrf.mxu0  ;;  %v1985_v11 = vpop.f32.mrf.mxu1  ;;  %v6770_v27 = vsub.s32 1, %v6768_v3 }
 0x7d6   : > { %4588 = vtanh.f32 %v1995_v34  ;;  %v6771_v11 = vsub.s32 2, %v6768_v3 }
 0x7d7   : > { %4590 = vtanh.f32 %v1989_v33 }
 0x7d8   : > { %4592 = vtanh.f32 %v2000_v51 }
 0x7e1   : > { %v4587_v37 = vpop.eup %4586 }
 0x7e2   : > { %v1993_v62 = vmul.f32 0.5, %v4587_v37 }
 0x7e3   : > { %v4589_v15 = vpop.eup %4588 }
 0x7e4   : > { %v1994_v16 = vadd.f32 0.5, %v1993_v62  ;;  %v1997_v17 = vmul.f32 0.5, %v4589_v15  ;;  %v4591_v36 = vpop.eup %4590  ;;  %v6772_v62 = vsub.s32 3, %v6768_v3 }
 0x7e5   : > { %v4593_v46 = vpop.eup %4592 }
 0x7e6   : > { %v1998_v39 = vadd.f32 0.5, %v1997_v17  ;;  %v2005_v40 = vmul.f32 %v4591_v36, %v1994_v16  ;;  %v2002_v18 = vmul.f32 0.5, %v4593_v46 }
 0x7e8   : > { %v2004_v2 = vmul.f32 %v1998_v39, %v5726_v54  ;;  %v2003_v45 = vadd.f32 0.5, %v2002_v18  ;;  %v2041_v54 = vld [vmem:[%s6717_s7] sm:$0xf] }
 0x7e9   : > { %v6092_v60 = vrot.slane %v2041_v54, %v6769_v44  ;;  %v6100_v29 = vrot.slane %v2041_v54, %v6770_v27  ;;  %v6111_v47 = vrot.slane %v2041_v54, %v6771_v11  ;;  %v6120_v15 = vrot.slane %v2041_v54, %v6772_v62 }
 0x7ea   : > { %v6052_v43 = vadd.f32 %v2005_v40, %v2004_v2 }
 0x7ec   : > { %4594 = vtanh.f32 %v6052_v43 }
 0x7ef   : > { %v6088_v53 = vpop.f32.mrf.mxu0  ;;  %v6107_v34 = vpop.f32.mrf.mxu1 }
 0x7f1   : > { %v6094_v24 = vpop.f32.mrf.mxu0  ;;  %v6116_v37 = vpop.f32.mrf.mxu1 }
 0x7f3   : > { %v2274_v30 = vpop.f32.mrf.mxu0  ;;  %v2347_v36 = vpop.f32.mrf.mxu1 }
 0x7f4   : > { %v6105_v33 = vadd.f32 %v2274_v30, %v6092_v60  ;;  %v6126_v39 = vadd.f32 %v2347_v36, %v6111_v47 }
 0x7f5   : > { %v2276_v6 = vpop.f32.mrf.mxu0  ;;  %v2349_v46 = vpop.f32.mrf.mxu1 }
 0x7f6   : > { %v6114_v51 = vadd.f32 %v2276_v6, %v6100_v29  ;;  %v6132_v18 = vadd.f32 %v2349_v46, %v6120_v15 }
 0x7f7   : > { %v2280_v16 = vpop.f32.mrf.mxu0 }
 0x7f8   : > { %v6123_v17 = vadd.f32 %v2280_v16, %v6092_v60 }
 0x7f9   : > { %v4595_v48 = vpop.eup %4594  ;;  %v2282_v40 = vpop.f32.mrf.mxu0 }
 0x7fa   : > { %v2008_v57 = vmul.f32 %v4595_v48, %v2003_v45  ;;  %v6129_v2 = vadd.f32 %v2282_v40, %v6100_v29 }
 0x7fb   : > { %v2284_v45 = vpop.f32.mrf.mxu0 }
 0x7fc   : > { %v2450_v56 = vpack.c.bf16 %v2008_v57, %v2008_v57  ;;  %v6135_v48 = vadd.f32 %v2284_v45, %v6092_v60  ;;  %v2353_v57 = vpop.f32.mrf.mxu1 }
 0x7fd   : > { %v2286_v54 = vpop.f32.mrf.mxu0 }
 0x7fe   : > { %2644 = vmatmul.mubr.bf16.vlgmr.msra.gmra.mxu0 %v2450_v56  ;;  %2685 = vmatmul.mubr.bf16.vlgmr.msra.gmra.mxu1 %v2450_v56  ;;  %6773 = vst [vmem:[#allocation18_spill] sm:$0xff] %v6135_v48  ;;  %v6138_v56 = vadd.f32 %v2353_v57, %v6111_v47  ;;  %v6141_v3 = vadd.f32 %v2286_v54, %v6100_v29  ;;  %v2355_v44 = vpop.f32.mrf.mxu1 }
 0x7ff   : > { %2722 = vmatpush1.bf16.msra.mxu0 %v5841_v7  ;;  %2763 = vmatpush1.bf16.msra.mxu1 %v5846_v14  ;;  %v6144_v27 = vadd.f32 %v2355_v44, %v6120_v15  ;;  %v2290_v30 = vpop.f32.mrf.mxu0 }
 0x800   : > { %2723 = vmatprep.subr.bf16.mxu0 %v5861_v21  ;;  %2764 = vmatprep.subr.bf16.mxu1 %v5866_v22  ;;  %6774 = vst [vmem:[#allocation19_spill] sm:$0xff] %v6141_v3  ;;  %v6147_v6 = vadd.f32 %v2290_v30, %v6092_v60  ;;  %v2357_v11 = vpop.f32.mrf.mxu1 }
 0x801   : > { %2753 = vmatprep.mubr.bf16.mxu0 %v6750_v63  ;;  %2794 = vmatprep.mubr.bf16.mxu1 %v6750_v63  ;;  %6775 = vst [vmem:[#allocation8_spill] sm:$0xff] %v6144_v27  ;;  %v6150_v62 = vadd.f32 %v2357_v11, %v6111_v47  ;;  %v2292_v16 = vpop.f32.mrf.mxu0 }
 0x802   : > { %6776 = vst [vmem:[#allocation9_spill] sm:$0xff] %v6147_v6  ;;  %v6153_v36 = vadd.f32 %v2292_v16, %v6100_v29  ;;  %v2359_v40 = vpop.f32.mrf.mxu1 }
 0x803   : > { %2724 = vmatpush1.bf16.msra.mxu0 %v5872_v25  ;;  %2765 = vmatpush1.bf16.msra.mxu1 %v5877_v26  ;;  %6777 = vst [vmem:[#allocation10_spill] sm:$0xff] %v6150_v62  ;;  %v6156_v46 = vadd.f32 %v2359_v40, %v6120_v15  ;;  %v2294_v45 = vpop.f32.mrf.mxu0 }
 0x804   : > { %2725 = vmatprep.subr.bf16.mxu0 %v5887_v28  ;;  %2766 = vmatprep.subr.bf16.mxu1 %v5892_v31  ;;  %6778 = vst [vmem:[#allocation11_spill] sm:$0xff] %v6153_v36  ;;  %v6159_v57 = vadd.f32 %v2294_v45, %v6092_v60  ;;  %v2363_v54 = vpop.f32.mrf.mxu1 }
 0x805   : > { %6779 = vst [vmem:[#allocation12_spill] sm:$0xff] %v6156_v46  ;;  %v6162_v44 = vadd.f32 %v2363_v54, %v6111_v47  ;;  %v2296_v30 = vpop.f32.mrf.mxu0 }
 0x806   : > { %6780 = vst [vmem:[#allocation13_spill] sm:$0xff] %v6159_v57  ;;  %v6165_v11 = vadd.f32 %v2296_v30, %v6100_v29  ;;  %v2365_v6 = vpop.f32.mrf.mxu1 }
 0x807   : > { %2726 = vmatpush1.bf16.msra.mxu0 %v5897_v32  ;;  %2767 = vmatpush1.bf16.msra.mxu1 %v5902_v35  ;;  %6781 = vst [vmem:[#allocation20_spill] sm:$0xff] %v6162_v44  ;;  %v6168_v16 = vadd.f32 %v2365_v6, %v6120_v15  ;;  %v2300_v36 = vpop.f32.mrf.mxu0 }
 0x808   : > { %2727 = vmatprep.subr.bf16.mxu0 %v5917_v23  ;;  %2768 = vmatprep.subr.bf16.mxu1 %v5922_v10  ;;  %6782 = vst [vmem:[#allocation21_spill] sm:$0xff] %v6165_v11  ;;  %v6171_v40 = vadd.f32 %v2300_v36, %v6092_v60  ;;  %v2367_v46 = vpop.f32.mrf.mxu1 }
 0x809   : > { %6783 = vst [vmem:[#allocation14_spill] sm:$0xff] %v6168_v16  ;;  %v6174_v45 = vadd.f32 %v2367_v46, %v6111_v47  ;;  %v2302_v57 = vpop.f32.mrf.mxu0 }
 0x80a   : > { %6784 = vst [vmem:[#allocation15_spill] sm:$0xff] %v6171_v40  ;;  %v6177_v54 = vadd.f32 %v2302_v57, %v6100_v29  ;;  %v2369_v44 = vpop.f32.mrf.mxu1 }
 0x80b   : > { %2728 = vmatpush1.bf16.msra.mxu0 %v5928_v55  ;;  %2769 = vmatpush1.bf16.msra.mxu1 %v5933_v52  ;;  %6785 = vst [vmem:[#allocation22_spill] sm:$0xff] %v6174_v45  ;;  %v6180_v30 = vadd.f32 %v2369_v44, %v6120_v15  ;;  %v2304_v11 = vpop.f32.mrf.mxu0 }
 0x80c   : > { %2729 = vmatprep.subr.bf16.mxu0 %v5943_v0  ;;  %2770 = vmatprep.subr.bf16.mxu1 %v5948_v12  ;;  %6786 = vst [vmem:[#allocation23_spill] sm:$0xff] %v6177_v54  ;;  %v6183_v6 = vadd.f32 %v2304_v11, %v6092_v60  ;;  %v2373_v16 = vpop.f32.mrf.mxu1  ;;  %v2271_v11 = vadd.f32 %v6088_v53, %v6092_v60 }
 0x80d   : > { %6787 = vst [vmem:[#allocation16_spill] sm:$0xff] %v6180_v30  ;;  %v6186_v36 = vadd.f32 %v2373_v16, %v6111_v47  ;;  %v6196_v44 = vpop.f32.mrf.mxu0  ;;  %v2273_v16 = vadd.f32 %v6094_v24, %v6100_v29  ;;  %v2346_v60 = vadd.f32 %v6116_v37, %v6120_v15 }
 0x80e   : > { %6788 = vst [vmem:[#allocation17_spill] sm:$0xff] %v6183_v6  ;;  %v2375_v40 = vpop.f32.mrf.mxu1  ;;  %6793 = vst [vmem:[#allocation27_spill] sm:$0xff] %v6196_v44 }
 0x80f   : > { %2730 = vmatpush1.bf16.msra.mxu0 %v5953_v50  ;;  %2771 = vmatpush1.bf16.msra.mxu1 %v5958_v19  ;;  %6789 = vst [vmem:[#allocation24_spill] sm:$0xff] %v6186_v36  ;;  %v6189_v46 = vadd.f32 %v2375_v40, %v6120_v15 }
 0x810   : > { %2731 = vmatprep.subr.bf16.mxu0 %v5973_v58  ;;  %2772 = vmatprep.subr.bf16.mxu1 %v5978_v9  ;;  %v2377_v45 = vpop.f32.mrf.mxu1 }
 0x811   : > { %6790 = vst [vmem:[#allocation7_spill] sm:$0xff] %v6189_v46  ;;  %v6192_v57 = vadd.f32 %v2377_v45, %v6111_v47 }
 0x812   : > { %v6194_v54 = vpop.f32.mrf.mxu1 }
 0x813   : > { %2732 = vmatpush1.bf16.msra.mxu0 %v5984_v13  ;;  %2773 = vmatpush1.bf16.msra.mxu1 %v5989_v59  ;;  %6791 = vst [vmem:[#allocation25_spill] sm:$0xff] %v6192_v57  ;;  %6792 = vst [vmem:[#allocation26_spill] sm:$0xff] %v6194_v54  ;;  %v2344_v54 = vadd.f32 %v6107_v34, %v6111_v47 }
 0x814   : > { %2733 = vmatprep.subr.bf16.mxu0 %v5999_v61  ;;  %2774 = vmatprep.subr.bf16.mxu1 %v6004_v1 }
 0x817   : > { %2734 = vmatpush1.bf16.msra.mxu0 %v6009_v49  ;;  %2775 = vmatpush1.bf16.msra.mxu1 %v6014_v20 }
 0x818   : > { %2735 = vmatprep.subr.bf16.mxu0 %v6023_v38  ;;  %2776 = vmatprep.subr.bf16.mxu1 %v6028_v41 }
 0x81b   : > { %2736 = vmatpush1.bf16.msra.mxu0 %v6034_v42  ;;  %2777 = vmatpush1.bf16.msra.mxu1 %v6039_v5 }
 0x81c   : > { %2832 = vmatprep.subr.bf16.mxu0 %v5831_v4  ;;  %2873 = vmatprep.subr.bf16.mxu1 %v5836_v8 }
 0x8be   : > { %v2645_v6 = vpop.f32.mrf.mxu0  ;;  %v2686_v30 = vpop.f32.mrf.mxu1 }
 0x8bf   : > { %v2693_v36 = vadd.f32 %v2645_v6, %v2271_v11  ;;  %v2695_v53 = vadd.f32 %v2686_v30, %v2344_v54 }
 0x8c0   : > { %v2647_v62 = vpop.f32.mrf.mxu0  ;;  %v2688_v40 = vpop.f32.mrf.mxu1 }
 0x8c1   : > { %v2697_v46 = vmul.f32 0.5, %v2693_v36  ;;  %v2694_v3 = vadd.f32 %v2647_v62, %v2273_v16  ;;  %v2696_v24 = vadd.f32 %v2688_v40, %v2346_v60 }
 0x8c2   : > { %v2649_v48 = vpop.f32.mrf.mxu0  ;;  %v2690_v45 = vpop.f32.mrf.mxu1 }
 0x8c3   : > { %4596 = vtanh.f32 %v2697_v46  ;;  %v2701_v57 = vmul.f32 0.5, %v2694_v3  ;;  %v2706_v6 = vmul.f32 0.5, %v2696_v24 }
 0x8c4   : > { %v2650_v44 = vpop.f32.mrf.mxu0  ;;  %v2691_v27 = vpop.f32.mrf.mxu1 }
 0x8c5   : > { %4598 = vtanh.f32 %v2701_v57 }
 0x8c6   : > { %4600 = vtanh.f32 %v2695_v53 }
 0x8c7   : > { %4602 = vtanh.f32 %v2706_v6 }
 0x8d0   : > { %v4597_v11 = vpop.eup %4596 }
 0x8d1   : > { %v2699_v36 = vmul.f32 0.5, %v4597_v11 }
 0x8d2   : > { %v4599_v62 = vpop.eup %4598 }
 0x8d3   : > { %v2700_v48 = vadd.f32 0.5, %v2699_v36  ;;  %v2703_v16 = vmul.f32 0.5, %v4599_v62  ;;  %v4601_v34 = vpop.eup %4600 }
 0x8d4   : > { %v4603_v54 = vpop.eup %4602 }
 0x8d5   : > { %v2704_v45 = vadd.f32 0.5, %v2703_v16  ;;  %v2711_v3 = vmul.f32 %v4601_v34, %v2700_v48  ;;  %v2708_v37 = vmul.f32 0.5, %v4603_v54 }
 0x8d7   : > { %v2710_v47 = vmul.f32 %v2704_v45, %v6052_v43  ;;  %v2709_v30 = vadd.f32 0.5, %v2708_v37 }
 0x8d9   : > { %v6207_v27 = vadd.f32 %v2711_v3, %v2710_v47 }
 0x8db   : > { %4604 = vtanh.f32 %v6207_v27 }
 0x8e8   : > { %v4605_v46 = vpop.eup %4604 }
 0x8e9   : > { %v6210_v57 = vmul.f32 %v4605_v46, %v2709_v30 }
 0x8eb   : > { %v2720_v44 = vpack.c.bf16 %v6210_v57, %v6210_v57 }
 0x8ed   : > { %2754 = vmatmul.mubr.bf16.vlgmr.msra.gmra.mxu0 %v2720_v44  ;;  %2795 = vmatmul.mubr.bf16.vlgmr.msra.gmra.mxu1 %v2720_v44 }
 0x8ee   : > { %2833 = vmatpush1.bf16.msra.mxu0 %v5841_v7  ;;  %2874 = vmatpush1.bf16.msra.mxu1 %v5846_v14 }
 0x8ef   : > { %2834 = vmatprep.subr.bf16.mxu0 %v5861_v21  ;;  %2875 = vmatprep.subr.bf16.mxu1 %v5866_v22 }
 0x8f0   : > { %2864 = vmatprep.mubr.bf16.mxu0 %v6750_v63  ;;  %2905 = vmatprep.mubr.bf16.mxu1 %v6750_v63 }
 0x8f2   : > { %2835 = vmatpush1.bf16.msra.mxu0 %v5872_v25  ;;  %2876 = vmatpush1.bf16.msra.mxu1 %v5877_v26 }
 0x8f3   : > { %2836 = vmatprep.subr.bf16.mxu0 %v5887_v28  ;;  %2877 = vmatprep.subr.bf16.mxu1 %v5892_v31 }
 0x8f6   : > { %2837 = vmatpush1.bf16.msra.mxu0 %v5897_v32  ;;  %2878 = vmatpush1.bf16.msra.mxu1 %v5902_v35 }
 0x8f7   : > { %2838 = vmatprep.subr.bf16.mxu0 %v5917_v23  ;;  %2879 = vmatprep.subr.bf16.mxu1 %v5922_v10 }
 0x8fa   : > { %2839 = vmatpush1.bf16.msra.mxu0 %v5928_v55  ;;  %2880 = vmatpush1.bf16.msra.mxu1 %v5933_v52 }
 0x8fb   : > { %2840 = vmatprep.subr.bf16.mxu0 %v5943_v0  ;;  %2881 = vmatprep.subr.bf16.mxu1 %v5948_v12 }
 0x8fe   : > { %2841 = vmatpush1.bf16.msra.mxu0 %v5953_v50  ;;  %2882 = vmatpush1.bf16.msra.mxu1 %v5958_v19 }
 0x8ff   : > { %2842 = vmatprep.subr.bf16.mxu0 %v5973_v58  ;;  %2883 = vmatprep.subr.bf16.mxu1 %v5978_v9 }
 0x902   : > { %2843 = vmatpush1.bf16.msra.mxu0 %v5984_v13  ;;  %2884 = vmatpush1.bf16.msra.mxu1 %v5989_v59 }
 0x903   : > { %2844 = vmatprep.subr.bf16.mxu0 %v5999_v61  ;;  %2885 = vmatprep.subr.bf16.mxu1 %v6004_v1 }
 0x906   : > { %2845 = vmatpush1.bf16.msra.mxu0 %v6009_v49  ;;  %2886 = vmatpush1.bf16.msra.mxu1 %v6014_v20 }
 0x907   : > { %2846 = vmatprep.subr.bf16.mxu0 %v6023_v38  ;;  %2887 = vmatprep.subr.bf16.mxu1 %v6028_v41 }
 0x90a   : > { %2847 = vmatpush1.bf16.msra.mxu0 %v6034_v42  ;;  %2888 = vmatpush1.bf16.msra.mxu1 %v6039_v5 }
 0x90b   : > { %2943 = vmatprep.subr.bf16.mxu0 %v5831_v4  ;;  %2984 = vmatprep.subr.bf16.mxu1 %v5836_v8 }
 0x9ad   : > { %v2755_v43 = vpop.f32.mrf.mxu0  ;;  %v2796_v40 = vpop.f32.mrf.mxu1 }
 0x9ae   : > { %v2803_v53 = vadd.f32 %v2755_v43, %v6105_v33  ;;  %v2805_v48 = vadd.f32 %v2796_v40, %v6126_v39 }
 0x9af   : > { %v2757_v60 = vpop.f32.mrf.mxu0  ;;  %v2798_v24 = vpop.f32.mrf.mxu1 }
 0x9b0   : > { %v2807_v6 = vmul.f32 0.5, %v2803_v53  ;;  %v2804_v11 = vadd.f32 %v2757_v60, %v6114_v51  ;;  %v2806_v47 = vadd.f32 %v2798_v24, %v6132_v18 }
 0x9b1   : > { %v2759_v36 = vpop.f32.mrf.mxu0  ;;  %v2800_v62 = vpop.f32.mrf.mxu1 }
 0x9b2   : > { %4606 = vtanh.f32 %v2807_v6  ;;  %v2811_v16 = vmul.f32 0.5, %v2804_v11  ;;  %v2816_v3 = vmul.f32 0.5, %v2806_v47 }
 0x9b3   : > { %v2760_v45 = vpop.f32.mrf.mxu0  ;;  %v2801_v34 = vpop.f32.mrf.mxu1 }
 0x9b4   : > { %4608 = vtanh.f32 %v2811_v16 }
 0x9b5   : > { %4610 = vtanh.f32 %v2805_v48 }
 0x9b6   : > { %4612 = vtanh.f32 %v2816_v3 }
 0x9bf   : > { %v4607_v54 = vpop.eup %4606 }
 0x9c0   : > { %v2809_v33 = vmul.f32 0.5, %v4607_v54 }
 0x9c1   : > { %v4609_v37 = vpop.eup %4608 }
 0x9c2   : > { %v2810_v30 = vadd.f32 0.5, %v2809_v33  ;;  %v2813_v46 = vmul.f32 0.5, %v4609_v37  ;;  %v4611_v51 = vpop.eup %4610 }
 0x9c3   : > { %v4613_v40 = vpop.eup %4612 }
 0x9c4   : > { %v2814_v44 = vadd.f32 0.5, %v2813_v46  ;;  %v2821_v43 = vmul.f32 %v4611_v51, %v2810_v30  ;;  %v2818_v60 = vmul.f32 0.5, %v4613_v40  ;;  %v6794_v46 = vld [vmem:[#allocation8_spill] sm:$0xff] }
 0x9c6   : > { %v2820_v53 = vmul.f32 %v2814_v44, %v6207_v27  ;;  %v2819_v6 = vadd.f32 0.5, %v2818_v60 }
 0x9c8   : > { %v6253_v39 = vadd.f32 %v2821_v43, %v2820_v53 }
 0x9ca   : > { %4614 = vtanh.f32 %v6253_v39 }
 0x9d7   : > { %v4615_v18 = vpop.eup %4614 }
 0x9d8   : > { %v6256_v24 = vmul.f32 %v4615_v18, %v2819_v6 }
 0x9da   : > { %v2831_v11 = vpack.c.bf16 %v6256_v24, %v6256_v24 }
 0x9dc   : > { %2865 = vmatmul.mubr.bf16.vlgmr.msra.gmra.mxu0 %v2831_v11  ;;  %2906 = vmatmul.mubr.bf16.vlgmr.msra.gmra.mxu1 %v2831_v11 }
 0x9dd   : > { %2944 = vmatpush1.bf16.msra.mxu0 %v5841_v7  ;;  %2985 = vmatpush1.bf16.msra.mxu1 %v5846_v14 }
 0x9de   : > { %2945 = vmatprep.subr.bf16.mxu0 %v5861_v21  ;;  %2986 = vmatprep.subr.bf16.mxu1 %v5866_v22 }
 0x9df   : > { %2975 = vmatprep.mubr.bf16.mxu0 %v6750_v63  ;;  %3016 = vmatprep.mubr.bf16.mxu1 %v6750_v63 }
 0x9e1   : > { %2946 = vmatpush1.bf16.msra.mxu0 %v5872_v25  ;;  %2987 = vmatpush1.bf16.msra.mxu1 %v5877_v26 }
 0x9e2   : > { %2947 = vmatprep.subr.bf16.mxu0 %v5887_v28  ;;  %2988 = vmatprep.subr.bf16.mxu1 %v5892_v31 }
 0x9e5   : > { %2948 = vmatpush1.bf16.msra.mxu0 %v5897_v32  ;;  %2989 = vmatpush1.bf16.msra.mxu1 %v5902_v35 }
 0x9e6   : > { %2949 = vmatprep.subr.bf16.mxu0 %v5917_v23  ;;  %2990 = vmatprep.subr.bf16.mxu1 %v5922_v10 }
 0x9e9   : > { %2950 = vmatpush1.bf16.msra.mxu0 %v5928_v55  ;;  %2991 = vmatpush1.bf16.msra.mxu1 %v5933_v52 }
 0x9ea   : > { %2951 = vmatprep.subr.bf16.mxu0 %v5943_v0  ;;  %2992 = vmatprep.subr.bf16.mxu1 %v5948_v12 }
 0x9ed   : > { %2952 = vmatpush1.bf16.msra.mxu0 %v5953_v50  ;;  %2993 = vmatpush1.bf16.msra.mxu1 %v5958_v19 }
 0x9ee   : > { %2953 = vmatprep.subr.bf16.mxu0 %v5973_v58  ;;  %2994 = vmatprep.subr.bf16.mxu1 %v5978_v9 }
 0x9f1   : > { %2954 = vmatpush1.bf16.msra.mxu0 %v5984_v13  ;;  %2995 = vmatpush1.bf16.msra.mxu1 %v5989_v59 }
 0x9f2   : > { %2955 = vmatprep.subr.bf16.mxu0 %v5999_v61  ;;  %2996 = vmatprep.subr.bf16.mxu1 %v6004_v1 }
 0x9f5   : > { %2956 = vmatpush1.bf16.msra.mxu0 %v6009_v49  ;;  %2997 = vmatpush1.bf16.msra.mxu1 %v6014_v20 }
 0x9f6   : > { %2957 = vmatprep.subr.bf16.mxu0 %v6023_v38  ;;  %2998 = vmatprep.subr.bf16.mxu1 %v6028_v41 }
 0x9f9   : > { %2958 = vmatpush1.bf16.msra.mxu0 %v6034_v42  ;;  %2999 = vmatpush1.bf16.msra.mxu1 %v6039_v5 }
 0x9fa   : > { %3054 = vmatprep.subr.bf16.mxu0 %v5831_v4  ;;  %3095 = vmatprep.subr.bf16.mxu1 %v5836_v8 }
 0xa9c   : > { %v2866_v27 = vpop.f32.mrf.mxu0  ;;  %v2907_v36 = vpop.f32.mrf.mxu1 }
 0xa9d   : > { %v2914_v62 = vadd.f32 %v2866_v27, %v6123_v17  ;;  %v2916_v54 = vadd.f32 %v2907_v36, %v6138_v56 }
 0xa9e   : > { %v2868_v48 = vpop.f32.mrf.mxu0  ;;  %v2909_v16 = vpop.f32.mrf.mxu1 }
 0xa9f   : > { %v2918_v45 = vmul.f32 0.5, %v2914_v62  ;;  %v2915_v34 = vadd.f32 %v2868_v48, %v6129_v2  ;;  %v2917_v51 = vadd.f32 %v2909_v16, %v6794_v46 }
 0xaa0   : > { %v2870_v47 = vpop.f32.mrf.mxu0  ;;  %v2911_v3 = vpop.f32.mrf.mxu1 }
 0xaa1   : > { %4616 = vtanh.f32 %v2918_v45  ;;  %v2922_v33 = vmul.f32 0.5, %v2915_v34  ;;  %v2927_v44 = vmul.f32 0.5, %v2917_v51  ;;  %v6795_v47 = vld [vmem:[#allocation18_spill] sm:$0xff] }
 0xaa2   : > { %v2871_v37 = vpop.f32.mrf.mxu0  ;;  %v2912_v30 = vpop.f32.mrf.mxu1 }
 0xaa3   : > { %4618 = vtanh.f32 %v2922_v33  ;;  %v6796_v30 = vld [vmem:[#allocation19_spill] sm:$0xff] }
 0xaa4   : > { %4620 = vtanh.f32 %v2916_v54 }
 0xaa5   : > { %4622 = vtanh.f32 %v2927_v44 }
 0xaae   : > { %v4617_v43 = vpop.eup %4616 }
 0xaaf   : > { %v2920_v17 = vmul.f32 0.5, %v4617_v43  ;;  %v6797_v43 = vld [vmem:[#allocation10_spill] sm:$0xff] }
 0xab0   : > { %v4619_v53 = vpop.eup %4618 }
 0xab1   : > { %v2921_v40 = vadd.f32 0.5, %v2920_v17  ;;  %v2924_v60 = vmul.f32 0.5, %v4619_v53  ;;  %v4621_v2 = vpop.eup %4620 }
 0xab2   : > { %v4623_v27 = vpop.eup %4622 }
 0xab3   : > { %v2925_v6 = vadd.f32 0.5, %v2924_v60  ;;  %v2932_v18 = vmul.f32 %v4621_v2, %v2921_v40  ;;  %v2929_v36 = vmul.f32 0.5, %v4623_v27 }
 0xab5   : > { %v2931_v11 = vmul.f32 %v2925_v6, %v6253_v39  ;;  %v2930_v62 = vadd.f32 0.5, %v2929_v36 }
 0xab7   : > { %v6299_v56 = vadd.f32 %v2932_v18, %v2931_v11 }
 0xab9   : > { %4624 = vtanh.f32 %v6299_v56 }
 0xac6   : > { %v4625_v48 = vpop.eup %4624 }
 0xac7   : > { %v6302_v16 = vmul.f32 %v4625_v48, %v2930_v62 }
 0xac9   : > { %v2942_v45 = vpack.c.bf16 %v6302_v16, %v6302_v16 }
 0xacb   : > { %2976 = vmatmul.mubr.bf16.vlgmr.msra.gmra.mxu0 %v2942_v45  ;;  %3017 = vmatmul.mubr.bf16.vlgmr.msra.gmra.mxu1 %v2942_v45 }
 0xacc   : > { %3055 = vmatpush1.bf16.msra.mxu0 %v5841_v7  ;;  %3096 = vmatpush1.bf16.msra.mxu1 %v5846_v14 }
 0xacd   : > { %3056 = vmatprep.subr.bf16.mxu0 %v5861_v21  ;;  %3097 = vmatprep.subr.bf16.mxu1 %v5866_v22 }
 0xace   : > { %3086 = vmatprep.mubr.bf16.mxu0 %v6750_v63  ;;  %3127 = vmatprep.mubr.bf16.mxu1 %v6750_v63 }
 0xad0   : > { %3057 = vmatpush1.bf16.msra.mxu0 %v5872_v25  ;;  %3098 = vmatpush1.bf16.msra.mxu1 %v5877_v26 }
 0xad1   : > { %3058 = vmatprep.subr.bf16.mxu0 %v5887_v28  ;;  %3099 = vmatprep.subr.bf16.mxu1 %v5892_v31 }
 0xad4   : > { %3059 = vmatpush1.bf16.msra.mxu0 %v5897_v32  ;;  %3100 = vmatpush1.bf16.msra.mxu1 %v5902_v35 }
 0xad5   : > { %3060 = vmatprep.subr.bf16.mxu0 %v5917_v23  ;;  %3101 = vmatprep.subr.bf16.mxu1 %v5922_v10 }
 0xad8   : > { %3061 = vmatpush1.bf16.msra.mxu0 %v5928_v55  ;;  %3102 = vmatpush1.bf16.msra.mxu1 %v5933_v52 }
 0xad9   : > { %3062 = vmatprep.subr.bf16.mxu0 %v5943_v0  ;;  %3103 = vmatprep.subr.bf16.mxu1 %v5948_v12 }
 0xadc   : > { %3063 = vmatpush1.bf16.msra.mxu0 %v5953_v50  ;;  %3104 = vmatpush1.bf16.msra.mxu1 %v5958_v19 }
 0xadd   : > { %3064 = vmatprep.subr.bf16.mxu0 %v5973_v58  ;;  %3105 = vmatprep.subr.bf16.mxu1 %v5978_v9 }
 0xae0   : > { %3065 = vmatpush1.bf16.msra.mxu0 %v5984_v13  ;;  %3106 = vmatpush1.bf16.msra.mxu1 %v5989_v59 }
 0xae1   : > { %3066 = vmatprep.subr.bf16.mxu0 %v5999_v61  ;;  %3107 = vmatprep.subr.bf16.mxu1 %v6004_v1 }
 0xae4   : > { %3067 = vmatpush1.bf16.msra.mxu0 %v6009_v49  ;;  %3108 = vmatpush1.bf16.msra.mxu1 %v6014_v20 }
 0xae5   : > { %3068 = vmatprep.subr.bf16.mxu0 %v6023_v38  ;;  %3109 = vmatprep.subr.bf16.mxu1 %v6028_v41 }
 0xae8   : > { %3069 = vmatpush1.bf16.msra.mxu0 %v6034_v42  ;;  %3110 = vmatpush1.bf16.msra.mxu1 %v6039_v5 }
 0xae9   : > { %3165 = vmatprep.subr.bf16.mxu0 %v5831_v4  ;;  %3206 = vmatprep.subr.bf16.mxu1 %v5836_v8  ;;  %v6798_v4 = vld [vmem:[#allocation12_spill] sm:$0xff] }
 0xb8b   : > { %v2977_v39 = vpop.f32.mrf.mxu0  ;;  %v3018_v34 = vpop.f32.mrf.mxu1 }
 0xb8c   : > { %v3025_v3 = vadd.f32 %v2977_v39, %v6795_v47  ;;  %v3027_v17 = vadd.f32 %v3018_v34, %v6797_v43 }
 0xb8d   : > { %v2979_v54 = vpop.f32.mrf.mxu0  ;;  %v3020_v33 = vpop.f32.mrf.mxu1 }
 0xb8e   : > { %v3029_v37 = vmul.f32 0.5, %v3025_v3  ;;  %v3026_v46 = vadd.f32 %v2979_v54, %v6796_v30  ;;  %v3028_v8 = vadd.f32 %v3020_v33, %v6798_v4 }
 0xb8f   : > { %v2981_v51 = vpop.f32.mrf.mxu0  ;;  %v3022_v44 = vpop.f32.mrf.mxu1 }
 0xb90   : > { %4626 = vtanh.f32 %v3029_v37  ;;  %v3033_v53 = vmul.f32 0.5, %v3026_v46  ;;  %v3038_v2 = vmul.f32 0.5, %v3028_v8 }
 0xb91   : > { %v2982_v40 = vpop.f32.mrf.mxu0  ;;  %v3023_v60 = vpop.f32.mrf.mxu1 }
 0xb92   : > { %4628 = vtanh.f32 %v3033_v53 }
 0xb93   : > { %4630 = vtanh.f32 %v3027_v17 }
 0xb94   : > { %4632 = vtanh.f32 %v3038_v2 }
 0xb9d   : > { %v4627_v6 = vpop.eup %4626 }
 0xb9e   : > { %v3031_v18 = vmul.f32 0.5, %v4627_v6 }
 0xb9f   : > { %v4629_v11 = vpop.eup %4628 }
 0xba0   : > { %v3032_v27 = vadd.f32 0.5, %v3031_v18  ;;  %v3035_v36 = vmul.f32 0.5, %v4629_v11  ;;  %v4631_v62 = vpop.eup %4630 }
 0xba1   : > { %v4633_v47 = vpop.eup %4632 }
 0xba2   : > { %v3036_v48 = vadd.f32 0.5, %v3035_v36  ;;  %v3043_v45 = vmul.f32 %v4631_v62, %v3032_v27  ;;  %v3040_v3 = vmul.f32 0.5, %v4633_v47  ;;  %v6411_v27 = vld [vmem:[%s6716_s6 + $0xe0] ss:$16 sps:$4 sm:$0xff]   ;;  %v6417_v36 = vld [vmem:[%s6716_s6 + $0xe8] ss:$16 sps:$4 sm:$0xff]  }
 0xba3   : > { %v6423_v62 = vld [vmem:[%s6716_s6 + $0xc4] ss:$16 sps:$4 sm:$0xff]   ;;  %v6455_v47 = vld [vmem:[%s6716_s6 + $0xac] ss:$16 sps:$4 sm:$0xff]  }
 0xba4   : > { %v3042_v39 = vmul.f32 %v3036_v48, %v6299_v56  ;;  %v3041_v54 = vadd.f32 0.5, %v3040_v3  ;;  %v6429_v48 = vld [vmem:[%s6716_s6 + $0xcc] ss:$16 sps:$4 sm:$0xff]   ;;  %v6461_v3 = vld [vmem:[%s6716_s6 + $0xa0] ss:$16 sps:$4 sm:$0xff]  }
 0xba6   : > { %v6345_v34 = vadd.f32 %v3043_v45, %v3042_v39  ;;  %v6437_v45 = vld [vmem:[%s6716_s6 + $0xc0] ss:$16 sps:$4 sm:$0xff]   ;;  %v6443_v39 = vld [vmem:[%s6716_s6 + $0xc8] ss:$16 sps:$4 sm:$0xff]  }
 0xba8   : > { %4634 = vtanh.f32 %v6345_v34 }
 0xbb5   : > { %v4635_v33 = vpop.eup %4634 }
 0xbb6   : > { %v6348_v37 = vmul.f32 %v4635_v33, %v3041_v54  ;;  %v6467_v54 = vld [vmem:[%s6716_s6 + $0xa8] ss:$16 sps:$4 sm:$0xff]   ;;  %v6473_v33 = vld [vmem:[%s6716_s6 + $0x84] ss:$16 sps:$4 sm:$0xff]  }
 0xbb8   : > { %v3053_v30 = vpack.c.bf16 %v6348_v37, %v6348_v37 }
 0xbba   : > { %3087 = vmatmul.mubr.bf16.vlgmr.msra.gmra.mxu0 %v3053_v30  ;;  %3128 = vmatmul.mubr.bf16.vlgmr.msra.gmra.mxu1 %v3053_v30  ;;  %v6479_v30 = vld [vmem:[%s6716_s6 + $0x8c] ss:$16 sps:$4 sm:$0xff]  }
 0xbbb   : > { %3166 = vmatpush1.bf16.msra.mxu0 %v5841_v7  ;;  %3207 = vmatpush1.bf16.msra.mxu1 %v5846_v14  ;;  %v6387_v7 = vld [vmem:[%s6716_s6 + $0xe4] ss:$16 sps:$4 sm:$0xff]   ;;  %v6393_v14 = vld [vmem:[%s6716_s6 + $0xec] ss:$16 sps:$4 sm:$0xff]  }
 0xbbc   : > { %3167 = vmatprep.subr.bf16.mxu0 %v5861_v21  ;;  %3208 = vmatprep.subr.bf16.mxu1 %v5866_v22 }
 0xbbd   : > { %3197 = vmatprep.mubr.bf16.mxu0 %v6750_v63  ;;  %3238 = vmatprep.mubr.bf16.mxu1 %v6750_v63 }
 0xbbf   : > { %3168 = vmatpush1.bf16.msra.mxu0 %v5872_v25  ;;  %3209 = vmatpush1.bf16.msra.mxu1 %v5877_v26  ;;  %v6799_v25 = vld [vmem:[#allocation9_spill] sm:$0xff] }
 0xbc0   : > { %3169 = vmatprep.subr.bf16.mxu0 %v5887_v28  ;;  %3210 = vmatprep.subr.bf16.mxu1 %v5892_v31 }
 0xbc3   : > { %3170 = vmatpush1.bf16.msra.mxu0 %v5897_v32  ;;  %3211 = vmatpush1.bf16.msra.mxu1 %v5902_v35  ;;  %v6800_v35 = vld [vmem:[#allocation11_spill] sm:$0xff] }
 0xbc4   : > { %3171 = vmatprep.subr.bf16.mxu0 %v5917_v23  ;;  %3212 = vmatprep.subr.bf16.mxu1 %v5922_v10 }
 0xbc7   : > { %3172 = vmatpush1.bf16.msra.mxu0 %v5928_v55  ;;  %3213 = vmatpush1.bf16.msra.mxu1 %v5933_v52  ;;  %v6801_v52 = vld [vmem:[#allocation20_spill] sm:$0xff] }
 0xbc8   : > { %3173 = vmatprep.subr.bf16.mxu0 %v5943_v0  ;;  %3214 = vmatprep.subr.bf16.mxu1 %v5948_v12 }
 0xbcb   : > { %3174 = vmatpush1.bf16.msra.mxu0 %v5953_v50  ;;  %3215 = vmatpush1.bf16.msra.mxu1 %v5958_v19 }
 0xbcc   : > { %3175 = vmatprep.subr.bf16.mxu0 %v5973_v58  ;;  %3216 = vmatprep.subr.bf16.mxu1 %v5978_v9  ;;  %v6802_v58 = vld [vmem:[#allocation14_spill] sm:$0xff] }
 0xbcf   : > { %3176 = vmatpush1.bf16.msra.mxu0 %v5984_v13  ;;  %3217 = vmatpush1.bf16.msra.mxu1 %v5989_v59 }
 0xbd0   : > { %3177 = vmatprep.subr.bf16.mxu0 %v5999_v61  ;;  %3218 = vmatprep.subr.bf16.mxu1 %v6004_v1 }
 0xbd3   : > { %3178 = vmatpush1.bf16.msra.mxu0 %v6009_v49  ;;  %3219 = vmatpush1.bf16.msra.mxu1 %v6014_v20 }
 0xbd4   : > { %3179 = vmatprep.subr.bf16.mxu0 %v6023_v38  ;;  %3220 = vmatprep.subr.bf16.mxu1 %v6028_v41 }
 0xbd7   : > { %3180 = vmatpush1.bf16.msra.mxu0 %v6034_v42  ;;  %3221 = vmatpush1.bf16.msra.mxu1 %v6039_v5 }
 0xbd8   : > { %3276 = vmatprep.subr.bf16.mxu0 %v6387_v7  ;;  %3317 = vmatprep.subr.bf16.mxu1 %v6393_v14 }
 0xc7a   : > { %v3088_v21 = vpop.f32.mrf.mxu0  ;;  %v3129_v22 = vpop.f32.mrf.mxu1 }
 0xc7b   : > { %v3136_v26 = vadd.f32 %v3088_v21, %v6799_v25  ;;  %v3138_v0 = vadd.f32 %v3129_v22, %v6801_v52  ;;  %v6485_v21 = vld [vmem:[%s6716_s6 + $0x80] ss:$16 sps:$4 sm:$0xff]   ;;  %v6491_v22 = vld [vmem:[%s6716_s6 + $0x88] ss:$16 sps:$4 sm:$0xff]   ;;  %v6497_v25 = vld [vmem:[%s6716_s6 + $0x64] ss:$16 sps:$4 sm:$0xff]  }
 0xc7c   : > { %v3090_v28 = vpop.f32.mrf.mxu0  ;;  %v3131_v31 = vpop.f32.mrf.mxu1  ;;  %v6803_v52 = vld [vmem:[#allocation13_spill] sm:$0xff] }
 0xc7d   : > { %v3140_v32 = vmul.f32 0.5, %v3136_v26  ;;  %v3137_v23 = vadd.f32 %v3090_v28, %v6800_v35  ;;  %v3139_v9 = vadd.f32 %v3131_v31, %v6802_v58  ;;  %v6503_v26 = vld [vmem:[%s6716_s6 + $0x6c] ss:$16 sps:$4 sm:$0xff]   ;;  %v6509_v28 = vld [vmem:[%s6716_s6 + $0x60] ss:$16 sps:$4 sm:$0xff]  }
 0xc7e   : > { %v3092_v10 = vpop.f32.mrf.mxu0  ;;  %v3133_v55 = vpop.f32.mrf.mxu1  ;;  %v6515_v31 = vld [vmem:[%s6716_s6 + $0x68] ss:$16 sps:$4 sm:$0xff]   ;;  %v6527_v35 = vld [vmem:[%s6716_s6 + $0x4c] ss:$16 sps:$4 sm:$0xff]  }
 0xc7f   : > { %4636 = vtanh.f32 %v3140_v32  ;;  %v3144_v12 = vmul.f32 0.5, %v3137_v23  ;;  %v3149_v13 = vmul.f32 0.5, %v3139_v9  ;;  %v6521_v32 = vld [vmem:[%s6716_s6 + $0x44] ss:$16 sps:$4 sm:$0xff]   ;;  %v6533_v23 = vld [vmem:[%s6716_s6 + $0x40] ss:$16 sps:$4 sm:$0xff]  }
 0xc80   : > { %v3093_v50 = vpop.f32.mrf.mxu0  ;;  %v3134_v19 = vpop.f32.mrf.mxu1  ;;  %v6539_v10 = vld [vmem:[%s6716_s6 + $0x48] ss:$16 sps:$4 sm:$0xff]  }
 0xc81   : > { %4638 = vtanh.f32 %v3144_v12 }
 0xc82   : > { %4640 = vtanh.f32 %v3138_v0 }
 0xc83   : > { %4642 = vtanh.f32 %v3149_v13 }
 0xc8c   : > { %v4637_v59 = vpop.eup %4636 }
 0xc8d   : > { %v3142_v56 = vmul.f32 0.5, %v4637_v59 }
 0xc8e   : > { %v4639_v46 = vpop.eup %4638 }
 0xc8f   : > { %v3143_v51 = vadd.f32 0.5, %v3142_v56  ;;  %v3146_v44 = vmul.f32 0.5, %v4639_v46  ;;  %v4641_v43 = vpop.eup %4640 }
 0xc90   : > { %v4643_v4 = vpop.eup %4642 }
 0xc91   : > { %v3147_v17 = vadd.f32 0.5, %v3146_v44  ;;  %v3154_v53 = vmul.f32 %v4641_v43, %v3143_v51  ;;  %v3151_v8 = vmul.f32 0.5, %v4643_v4 }
 0xc93   : > { %v3153_v40 = vmul.f32 %v3147_v17, %v6345_v34  ;;  %v3152_v2 = vadd.f32 0.5, %v3151_v8  ;;  %v6449_v34 = vld [vmem:[%s6716_s6 + $0xa4] ss:$16 sps:$4 sm:$0xff]  }
 0xc95   : > { %v6401_v60 = vadd.f32 %v3154_v53, %v3153_v40 }
 0xc97   : > { %4644 = vtanh.f32 %v6401_v60 }
 0xca4   : > { %v4645_v6 = vpop.eup %4644 }
 0xca5   : > { %v6404_v18 = vmul.f32 %v4645_v6, %v3152_v2 }
 0xca7   : > { %v3164_v11 = vpack.c.bf16 %v6404_v18, %v6404_v18 }
 0xca9   : > { %3198 = vmatmul.mubr.bf16.vlgmr.msra.gmra.mxu0 %v3164_v11  ;;  %3239 = vmatmul.mubr.bf16.vlgmr.msra.gmra.mxu1 %v3164_v11 }
 0xcaa   : > { %3277 = vmatpush1.bf16.msra.mxu0 %v6411_v27  ;;  %3318 = vmatpush1.bf16.msra.mxu1 %v6417_v36 }
 0xcab   : > { %3278 = vmatprep.subr.bf16.mxu0 %v6423_v62  ;;  %3319 = vmatprep.subr.bf16.mxu1 %v6429_v48 }
 0xcac   : > { %3308 = vmatprep.mubr.bf16.mxu0 %v6750_v63  ;;  %3349 = vmatprep.mubr.bf16.mxu1 %v6750_v63 }
 0xcae   : > { %3279 = vmatpush1.bf16.msra.mxu0 %v6437_v45  ;;  %3320 = vmatpush1.bf16.msra.mxu1 %v6443_v39 }
 0xcaf   : > { %3280 = vmatprep.subr.bf16.mxu0 %v6449_v34  ;;  %3321 = vmatprep.subr.bf16.mxu1 %v6455_v47 }
 0xcb2   : > { %3281 = vmatpush1.bf16.msra.mxu0 %v6461_v3  ;;  %3322 = vmatpush1.bf16.msra.mxu1 %v6467_v54 }
 0xcb3   : > { %3282 = vmatprep.subr.bf16.mxu0 %v6473_v33  ;;  %3323 = vmatprep.subr.bf16.mxu1 %v6479_v30 }
 0xcb6   : > { %3283 = vmatpush1.bf16.msra.mxu0 %v6485_v21  ;;  %3324 = vmatpush1.bf16.msra.mxu1 %v6491_v22 }
 0xcb7   : > { %3284 = vmatprep.subr.bf16.mxu0 %v6497_v25  ;;  %3325 = vmatprep.subr.bf16.mxu1 %v6503_v26 }
 0xcba   : > { %3285 = vmatpush1.bf16.msra.mxu0 %v6509_v28  ;;  %3326 = vmatpush1.bf16.msra.mxu1 %v6515_v31 }
 0xcbb   : > { %3286 = vmatprep.subr.bf16.mxu0 %v6521_v32  ;;  %3327 = vmatprep.subr.bf16.mxu1 %v6527_v35 }
 0xcbe   : > { %3287 = vmatpush1.bf16.msra.mxu0 %v6533_v23  ;;  %3328 = vmatpush1.bf16.msra.mxu1 %v6539_v10 }
 0xcbf   : > { %3288 = vmatprep.subr.bf16.mxu0 %v5999_v61  ;;  %3329 = vmatprep.subr.bf16.mxu1 %v6004_v1 }
 0xcc2   : > { %3289 = vmatpush1.bf16.msra.mxu0 %v6009_v49  ;;  %3330 = vmatpush1.bf16.msra.mxu1 %v6014_v20  ;;  %v6804_v20 = vld [vmem:[#allocation21_spill] sm:$0xff] }
 0xcc3   : > { %3290 = vmatprep.subr.bf16.mxu0 %v6023_v38  ;;  %3331 = vmatprep.subr.bf16.mxu1 %v6028_v41  ;;  %v6805_v41 = vld [vmem:[#allocation22_spill] sm:$0xff] }
 0xcc6   : > { %3291 = vmatpush1.bf16.msra.mxu0 %v6034_v42  ;;  %3332 = vmatpush1.bf16.msra.mxu1 %v6039_v5 }
 0xcc7   : > { %3387 = vmatprep.subr.bf16.mxu0 %v6387_v7  ;;  %3428 = vmatprep.subr.bf16.mxu1 %v6393_v14  ;;  %v6806_v7 = vld [vmem:[#allocation16_spill] sm:$0xff] }
 0xd69   : > { %v3199_v55 = vpop.f32.mrf.mxu0  ;;  %v3240_v61 = vpop.f32.mrf.mxu1 }
 0xd6a   : > { %v3247_v1 = vadd.f32 %v3199_v55, %v6803_v52  ;;  %v3249_v42 = vadd.f32 %v3240_v61, %v6805_v41 }
 0xd6b   : > { %v3201_v0 = vpop.f32.mrf.mxu0  ;;  %v3242_v49 = vpop.f32.mrf.mxu1 }
 0xd6c   : > { %v3251_v12 = vmul.f32 0.5, %v3247_v1  ;;  %v3248_v50 = vadd.f32 %v3201_v0, %v6804_v20  ;;  %v3250_v14 = vadd.f32 %v3242_v49, %v6806_v7  ;;  %v6810_v1 = vld [vmem:[#allocation7_spill] sm:$0xff] }
 0xd6d   : > { %v3203_v38 = vpop.f32.mrf.mxu0  ;;  %v3244_v19 = vpop.f32.mrf.mxu1 }
 0xd6e   : > { %4646 = vtanh.f32 %v3251_v12  ;;  %v3255_v58 = vmul.f32 0.5, %v3248_v50  ;;  %v3260_v13 = vmul.f32 0.5, %v3250_v14 }
 0xd6f   : > { %v3204_v5 = vpop.f32.mrf.mxu0  ;;  %v3245_v9 = vpop.f32.mrf.mxu1 }
 0xd70   : > { %4648 = vtanh.f32 %v3255_v58 }
 0xd71   : > { %4650 = vtanh.f32 %v3249_v42 }
 0xd72   : > { %4652 = vtanh.f32 %v3260_v13 }
 0xd7b   : > { %v4647_v59 = vpop.eup %4646 }
 0xd7c   : > { %v3253_v56 = vmul.f32 0.5, %v4647_v59 }
 0xd7d   : > { %v4649_v46 = vpop.eup %4648 }
 0xd7e   : > { %v3254_v51 = vadd.f32 0.5, %v3253_v56  ;;  %v3257_v44 = vmul.f32 0.5, %v4649_v46  ;;  %v4651_v43 = vpop.eup %4650 }
 0xd7f   : > { %v4653_v8 = vpop.eup %4652 }
 0xd80   : > { %v3258_v17 = vadd.f32 0.5, %v3257_v44  ;;  %v3265_v53 = vmul.f32 %v4651_v43, %v3254_v51  ;;  %v3262_v2 = vmul.f32 0.5, %v4653_v8  ;;  %v4509_v51 = vld [vmem:[%s6718_s8 + $0x30] sm:$0xff]   ;;  %v3501_v44 = vpack.c.bf16 %v6256_v24, %v6210_v57  ;;  %v4510_v43 = vld [vmem:[%s6718_s8 + $0x28] sm:$0xff]   ;;  %v4512_v57 = vld [vmem:[%s6718_s8 + $0x18] sm:$0xff]  }
 0xd81   : > { %v4513_v24 = vld [vmem:[%s6718_s8 + $0x10] sm:$0xff]  }
 0xd82   : > { %v3264_v40 = vmul.f32 %v3258_v17, %v6401_v60  ;;  %v3263_v6 = vadd.f32 0.5, %v3262_v2  ;;  %v4733_v60 = vld [vmem:[%s6716_s6 + $0x2c] ss:$16 sps:$4 sm:$0xff]   ;;  %v4511_v17 = vld [vmem:[%s6718_s8 + $0x20] sm:$0xff]  }
 0xd84   : > { %v6557_v4 = vadd.f32 %v3265_v53, %v3264_v40  ;;  %v4514_v53 = vld [vmem:[%s6718_s8 + $0x8] sm:$0xff]   ;;  %v4515_v40 = vld [vmem:[%s6718_s8] sm:$0xff]  }
 0xd86   : > { %4654 = vtanh.f32 %v6557_v4 }
 0xd93   : > { %v4655_v11 = vpop.eup %4654 }
 0xd94   : > { %v6560_v55 = vmul.f32 %v4655_v11, %v3263_v6  ;;  %v6811_v11 = vld [vmem:[#allocation27_spill] sm:$0xff] }
 0xd96   : > { %v3275_v61 = vpack.c.bf16 %v6560_v55, %v6560_v55  ;;  %v3503_v8 = vpack.c.bf16 %v6560_v55, %v6404_v18 }
 0xd98   : > { %3309 = vmatmul.mubr.bf16.vlgmr.msra.gmra.mxu0 %v3275_v61  ;;  %3350 = vmatmul.mubr.bf16.vlgmr.msra.gmra.mxu1 %v3275_v61  ;;  %v2307_v61 = vadd.f32 %v6811_v11, %v6100_v29 }
 0xd99   : > { %3388 = vmatpush1.bf16.msra.mxu0 %v6411_v27  ;;  %3429 = vmatpush1.bf16.msra.mxu1 %v6417_v36  ;;  %v4734_v27 = vld [vmem:[%s6716_s6 + $0x20] ss:$16 sps:$4 sm:$0xff]   ;;  %v4735_v36 = vld [vmem:[%s6716_s6 + $0x28] ss:$16 sps:$4 sm:$0xff]  }
 0xd9a   : > { %3389 = vmatprep.subr.bf16.mxu0 %v6423_v62  ;;  %3430 = vmatprep.subr.bf16.mxu1 %v6429_v48  ;;  %v4736_v62 = vld [vmem:[%s6716_s6 + $0x4] ss:$16 sps:$4 sm:$0xff]   ;;  %v4737_v48 = vld [vmem:[%s6716_s6 + $0xc] ss:$16 sps:$4 sm:$0xff]  }
 0xd9b   : > { %3419 = vmatprep.mubr.bf16.mxu0 %v6750_v63  ;;  %3460 = vmatprep.mubr.bf16.mxu1 %v6750_v63  ;;  %v4732_v63 = vld [vmem:[%s6716_s6 + $0x24] ss:$16 sps:$4 sm:$0xff]  }
 0xd9d   : > { %3390 = vmatpush1.bf16.msra.mxu0 %v6437_v45  ;;  %3431 = vmatpush1.bf16.msra.mxu1 %v6443_v39  ;;  %v4738_v45 = vld [vmem:[%s6716_s6] ss:$16 sps:$4 sm:$0xff]   ;;  %v4739_v39 = vld [vmem:[%s6716_s6 + $0x8] ss:$16 sps:$4 sm:$0xff]  }
 0xd9e   : > { %3391 = vmatprep.subr.bf16.mxu0 %v6449_v34  ;;  %3432 = vmatprep.subr.bf16.mxu1 %v6455_v47  ;;  %v4508_v34 = vld [vmem:[%s6718_s8 + $0x38] sm:$0xff]  }
 0xda1   : > { %3392 = vmatpush1.bf16.msra.mxu0 %v6461_v3  ;;  %3433 = vmatpush1.bf16.msra.mxu1 %v6467_v54  ;;  %v6807_v54 = vld [vmem:[#allocation15_spill] sm:$0xff] }
 0xda2   : > { %3393 = vmatprep.subr.bf16.mxu0 %v6473_v33  ;;  %3434 = vmatprep.subr.bf16.mxu1 %v6479_v30 }
 0xda5   : > { %3394 = vmatpush1.bf16.msra.mxu0 %v6485_v21  ;;  %3435 = vmatpush1.bf16.msra.mxu1 %v6491_v22 }
 0xda6   : > { %3395 = vmatprep.subr.bf16.mxu0 %v6497_v25  ;;  %3436 = vmatprep.subr.bf16.mxu1 %v6503_v26  ;;  %v6808_v25 = vld [vmem:[#allocation23_spill] sm:$0xff] }
 0xda9   : > { %3396 = vmatpush1.bf16.msra.mxu0 %v6509_v28  ;;  %3437 = vmatpush1.bf16.msra.mxu1 %v6515_v31 }
 0xdaa   : > { %3397 = vmatprep.subr.bf16.mxu0 %v6521_v32  ;;  %3438 = vmatprep.subr.bf16.mxu1 %v6527_v35  ;;  %v6809_v32 = vld [vmem:[#allocation24_spill] sm:$0xff] }
 0xdad   : > { %3398 = vmatpush1.bf16.msra.mxu0 %v6533_v23  ;;  %3439 = vmatpush1.bf16.msra.mxu1 %v6539_v10 }
 0xdae   : > { %3399 = vmatprep.subr.bf16.mxu0 %v4732_v63  ;;  %3440 = vmatprep.subr.bf16.mxu1 %v4733_v60  ;;  %v6812_v63 = vld [vmem:[#allocation17_spill] sm:$0xff] }
 0xdb1   : > { %3400 = vmatpush1.bf16.msra.mxu0 %v4734_v27  ;;  %3441 = vmatpush1.bf16.msra.mxu1 %v4735_v36 }
 0xdb2   : > { %3401 = vmatprep.subr.bf16.mxu0 %v4736_v62  ;;  %3442 = vmatprep.subr.bf16.mxu1 %v4737_v48 }
 0xdb5   : > { %3402 = vmatpush1.bf16.msra.mxu0 %v4738_v45  ;;  %3443 = vmatpush1.bf16.msra.mxu1 %v4739_v39 }
 0xdb6   : > { %4227 = vmatprep.subr.bf16.mxu0 %v4508_v34 }
 0xe58   : > { %v3310_v47 = vpop.f32.mrf.mxu0  ;;  %v3351_v3 = vpop.f32.mrf.mxu1 }
 0xe59   : > { %v3358_v33 = vadd.f32 %v3310_v47, %v6807_v54  ;;  %v3360_v35 = vadd.f32 %v3351_v3, %v6809_v32  ;;  %v6814_v47 = vld [vmem:[#allocation26_spill] sm:$0xff] }
 0xe5a   : > { %v3312_v30 = vpop.f32.mrf.mxu0  ;;  %v3353_v21 = vpop.f32.mrf.mxu1  ;;  %v2380_v3 = vadd.f32 %v6814_v47, %v6120_v15  ;;  %v4138_v15 = vld [vmem:[%s6719_s9] ss:$0 sm:$0xff] }
 0xe5b   : > { %v3362_v22 = vmul.f32 0.5, %v3358_v33  ;;  %v3359_v26 = vadd.f32 %v3312_v30, %v6808_v25  ;;  %v3361_v0 = vadd.f32 %v3353_v21, %v6810_v1 }
 0xe5c   : > { %v3314_v28 = vpop.f32.mrf.mxu0  ;;  %v3355_v31 = vpop.f32.mrf.mxu1 }
 0xe5d   : > { %4656 = vtanh.f32 %v3362_v22  ;;  %v3366_v23 = vmul.f32 0.5, %v3359_v26  ;;  %v3371_v49 = vmul.f32 0.5, %v3361_v0 }
 0xe5e   : > { %v3315_v10 = vpop.f32.mrf.mxu0  ;;  %v3356_v52 = vpop.f32.mrf.mxu1 }
 0xe5f   : > { %4658 = vtanh.f32 %v3366_v23 }
 0xe60   : > { %4660 = vtanh.f32 %v3360_v35 }
 0xe61   : > { %4662 = vtanh.f32 %v3371_v49 }
 0xe6a   : > { %v4657_v12 = vpop.eup %4656 }
 0xe6b   : > { %v3364_v20 = vmul.f32 0.5, %v4657_v12 }
 0xe6c   : > { %v4659_v50 = vpop.eup %4658 }
 0xe6d   : > { %v3365_v38 = vadd.f32 0.5, %v3364_v20  ;;  %v3368_v19 = vmul.f32 0.5, %v4659_v50  ;;  %v4661_v41 = vpop.eup %4660 }
 0xe6e   : > { %v4663_v7 = vpop.eup %4662 }
 0xe6f   : > { %v3369_v42 = vadd.f32 0.5, %v3368_v19  ;;  %v3376_v58 = vmul.f32 %v4661_v41, %v3365_v38  ;;  %v3373_v14 = vmul.f32 0.5, %v4663_v7 }
 0xe71   : > { %v3375_v5 = vmul.f32 %v3369_v42, %v6557_v4  ;;  %v3374_v13 = vadd.f32 0.5, %v3373_v14  ;;  %v3502_v4 = vpack.c.bf16 %v6348_v37, %v6302_v16  ;;  %v6813_v16 = vld [vmem:[#allocation25_spill] sm:$0xff] }
 0xe73   : > { %v6620_v9 = vadd.f32 %v3376_v58, %v3375_v5 }
 0xe75   : > { %4664 = vtanh.f32 %v6620_v9 }
 0xe82   : > { %v4665_v59 = vpop.eup %4664 }
 0xe83   : > { %v6623_v56 = vmul.f32 %v4665_v59, %v3374_v13 }
 0xe85   : > { %v3386_v46 = vpack.c.bf16 %v6623_v56, %v6623_v56 }
 0xe87   : > { %3420 = vmatmul.mubr.bf16.vlgmr.msra.gmra.mxu0 %v3386_v46  ;;  %3461 = vmatmul.mubr.bf16.vlgmr.msra.gmra.mxu1 %v3386_v46 }
 0xe88   : > { %4228 = vmatpush3.bf16.msra.mxu0 %v4508_v34  ;;  %4243 = vmatprep.mubr.bf16.mxu0 %v3501_v44 }
 0xe89   : > { %4229 = vmatprep.subr.bf16.mxu0 %v4509_v51 }
 0xe8c   : > { %4230 = vmatpush3.bf16.msra.mxu0 %v4509_v51 }
 0xe8d   : > { %4231 = vmatprep.subr.bf16.mxu0 %v4510_v43 }
 0xe90   : > { %4232 = vmatpush3.bf16.msra.mxu0 %v4510_v43 }
 0xe91   : > { %4233 = vmatprep.subr.bf16.mxu0 %v4511_v17 }
 0xe94   : > { %4234 = vmatpush3.bf16.msra.mxu0 %v4511_v17 }
 0xe95   : > { %4235 = vmatprep.subr.bf16.mxu0 %v4512_v57 }
 0xe98   : > { %4236 = vmatpush3.bf16.msra.mxu0 %v4512_v57 }
 0xe99   : > { %4237 = vmatprep.subr.bf16.mxu0 %v4513_v24 }
 0xe9c   : > { %4238 = vmatpush3.bf16.msra.mxu0 %v4513_v24 }
 0xe9d   : > { %4239 = vmatprep.subr.bf16.mxu0 %v4514_v53 }
 0xea0   : > { %4240 = vmatpush3.bf16.msra.mxu0 %v4514_v53 }
 0xea1   : > { %4241 = vmatprep.subr.bf16.mxu0 %v4515_v40 }
 0xea4   : > { %4242 = vmatpush3.bf16.msra.mxu0 %v4515_v40 }
 0xea7   : > { %4244 = vmatmul.mubr.bf16.vlgmr.msra.gmra.mxu0 %v3502_v4 }
 0xea8   : > { %4247 = vmatprep.mubr.bf16.mxu0 %v3503_v8 }
 0xf47   : > { %v3421_v2 = vpop.f32.mrf.mxu0  ;;  %v3462_v6 = vpop.f32.mrf.mxu1 }
 0xf48   : > { %v3469_v60 = vadd.f32 %v3421_v2, %v6812_v63  ;;  %v3471_v37 = vadd.f32 %v3462_v6, %v6813_v16 }
 0xf49   : > { %v3423_v27 = vpop.f32.mrf.mxu0  ;;  %v3464_v36 = vpop.f32.mrf.mxu1 }
 0xf4a   : > { %v3473_v62 = vmul.f32 0.5, %v3469_v60  ;;  %v3470_v48 = vadd.f32 %v3423_v27, %v2307_v61  ;;  %v3472_v29 = vadd.f32 %v3464_v36, %v2380_v3 }
 0xf4b   : > { %v3425_v45 = vpop.f32.mrf.mxu0  ;;  %v3466_v39 = vpop.f32.mrf.mxu1 }
 0xf4c   : > { %4666 = vtanh.f32 %v3473_v62  ;;  %v3477_v34 = vmul.f32 0.5, %v3470_v48  ;;  %v3482_v54 = vmul.f32 0.5, %v3472_v29 }
 0xf4d   : > { %v3426_v18 = vpop.f32.mrf.mxu0  ;;  %v3467_v55 = vpop.f32.mrf.mxu1 }
 0xf4e   : > { %4668 = vtanh.f32 %v3477_v34 }
 0xf4f   : > { %4670 = vtanh.f32 %v3471_v37 }
 0xf50   : > { %4672 = vtanh.f32 %v3482_v54 }
 0xf59   : > { %v4667_v33 = vpop.eup %4666 }
 0xf5a   : > { %v3475_v30 = vmul.f32 0.5, %v4667_v33 }
 0xf5b   : > { %v4669_v21 = vpop.eup %4668 }
 0xf5c   : > { %v3476_v22 = vadd.f32 0.5, %v3475_v30  ;;  %v3479_v25 = vmul.f32 0.5, %v4669_v21  ;;  %v4671_v26 = vpop.eup %4670 }
 0xf5d   : > { %v4673_v10 = vpop.eup %4672 }
 0xf5e   : > { %v3480_v28 = vadd.f32 0.5, %v3479_v25  ;;  %v3487_v31 = vmul.f32 %v4671_v26, %v3476_v22  ;;  %v3484_v49 = vmul.f32 0.5, %v4673_v10 }
 0xf60   : > { %v3486_v32 = vmul.f32 %v3480_v28, %v6620_v9  ;;  %v3485_v42 = vadd.f32 0.5, %v3484_v49 }
 0xf62   : > { %v3488_v35 = vadd.f32 %v3487_v31, %v3486_v32 }
 0xf64   : > { %4674 = vtanh.f32 %v3488_v35 }
 0xf67   : > { %v4245_v23 = vpop.f32.mrf.mxu0 }
 0xf68   : > { %v3619_v1 = vadd.f32 %v4245_v23, %v4138_v15 }
 0xf69   : > { %v3610_v52 = vpop.f32.mrf.mxu0 }
 0xf6a   : > { %v3611_v12 = vadd.f32 %v4138_v15, %v3610_v52  ;;  %v3643_v38 = vmax.f32 %v3619_v1, 0.0 }
 0xf6b   : > { %v4246_v0 = vpop.f32.mrf.mxu0 }
 0xf6c   : > { %v3622_v20 = vadd.f32 %v4246_v0, %v4138_v15  ;;  %v3641_v58 = vmax.f32 %v3611_v12, 0.0 }
 0xf6d   : > { %v3613_v50 = vpop.f32.mrf.mxu0 }
 0xf6e   : > { %v3644_v19 = vmax.f32 %v3622_v20, 0.0  ;;  %v3614_v41 = vadd.f32 %v4138_v15, %v3613_v50 }
 0xf70   : > { %v4188_v5 = vpack.c.bf16 %v3644_v19, %v3643_v38  ;;  %v3642_v9 = vmax.f32 %v3614_v41, 0.0 }
 0xf71   : > { %v4675_v7 = vpop.eup %4674 }
 0xf72   : > { %4200 = vst [vmem:[#allocation4 + $0x8] sm:$0xff] %v4188_v5   ;;  %v4183_v14 = vpack.c.bf16 %v3642_v9, %v3641_v58  ;;  %v3490_v13 = vmul.f32 %v4675_v7, %v3485_v42 }
 0xf74   : > { %4184 = vst [vmem:[#allocation4] sm:$0xff] %v4183_v14   ;;  %v3504_v59 = vpack.c.bf16 %v3490_v13, %v6623_v56 }
 0xf76   : > { %4248 = vmatmul.mubr.bf16.gmra.mxu0 %v3504_v59 }
0x1036   : > { %v4249_v46 = vpop.f32.mrf.mxu0 }
0x1037   : > { %v3635_v44 = vadd.f32 %v4249_v46, %v4138_v15 }
0x1038   : > { %v3626_v51 = vpop.f32.mrf.mxu0 }
0x1039   : > { %v3627_v17 = vadd.f32 %v4138_v15, %v3626_v51  ;;  %v3647_v53 = vmax.f32 %v3635_v44, 0.0 }
0x103a   : > { %v4250_v43 = vpop.f32.mrf.mxu0 }
0x103b   : > { %v3638_v57 = vadd.f32 %v4250_v43, %v4138_v15  ;;  %v3645_v8 = vmax.f32 %v3627_v17, 0.0 }
0x103c   : > { %v3629_v24 = vpop.f32.mrf.mxu0 }
0x103d   : > { %v3648_v40 = vmax.f32 %v3638_v57, 0.0  ;;  %v3630_v4 = vadd.f32 %v4138_v15, %v3629_v24 }
0x103f   : > { %v4198_v2 = vpack.c.bf16 %v3648_v40, %v3647_v53  ;;  %v3646_v6 = vmax.f32 %v3630_v4, 0.0 }
0x1041   : > { %4202 = vst [vmem:[#allocation4 + $0x18] sm:$0xff] %v4198_v2   ;;  %v4193_v11 = vpack.c.bf16 %v3646_v6, %v3645_v8 }
0x1043   : > { %4201 = vst [vmem:[#allocation4 + $0x10] sm:$0xff] %v4193_v11  }
0x1044 PF: > { %v4740_v56 = vld [vmem:[%s4912_s14 + $0x38] sm:$0xff]   ;;  %v4741_v61 = vld [vmem:[%s4912_s14 + $0x30] sm:$0xff]   ;;  %v4742_v63 = vld [vmem:[%s4912_s14 + $0x28] sm:$0xff]   ;;  %s6815_s20 = scalar_lea.vmem %s6721_s11, %s4906_s26  ;;  %s4169_s26 = sshll.u32 (%p4873_p5), %s4858_s24, 3 }
0x1045   : > { %4251 = vmatprep.subr.bf16.mxu0 %v4740_v56  ;;  %4275 = vmatprep.subr.bf16.mxu1 %v4740_v56  ;;  %v4743_v60 = vld [vmem:[%s4912_s14 + $0x20] sm:$0xff]   ;;  %v4744_v62 = vld [vmem:[%s4912_s14 + $0x18] sm:$0xff]   ;;  %v4745_v48 = vld [vmem:[%s4912_s14 + $0x10] sm:$0xff]   ;;  %s3873_s30 = scalar_lea.vmem (%p4873_p5), %s6722_s12, %s4169_s26 }
0x1046   : > { %4252 = vmatpush3.bf16.msra.mxu0 %v4740_v56  ;;  %4283 = vmatpush3.bf16.msra.mxu1 %v4740_v56  ;;  %v4748_v27 = vld [vmem:[#allocation4] sm:$0xff]   ;;  %v4746_v45 = vld [vmem:[%s4912_s14 + $0x8] sm:$0xff]  }
0x1047   : > { %4253 = vmatprep.subr.bf16.mxu0 %v4741_v61  ;;  %4276 = vmatprep.subr.bf16.mxu1 %v4741_v61  ;;  %v4747_v39 = vld [vmem:[%s4912_s14] sm:$0xff]   ;;  %v4750_v16 = vld [vmem:[#allocation4 + $0x8] sm:$0xff]  }
0x1048   : > { %4267 = vmatprep.mubr.bf16.mxu0 %v4748_v27  ;;  %v4751_v37 = vld [vmem:[#allocation4 + $0x18] sm:$0xff]   ;;  %v4155_v34 = vld [vmem:[%s6815_s20] ss:$0 sm:$0xff] }
0x104a   : > { %4254 = vmatpush3.bf16.msra.mxu0 %v4741_v61  ;;  %4284 = vmatpush3.bf16.msra.mxu1 %v4741_v61  ;;  %v4749_v36 = vld [vmem:[#allocation4 + $0x10] sm:$0xff]  }
0x104b   : > { %4255 = vmatprep.subr.bf16.mxu0 %v4742_v63  ;;  %4277 = vmatprep.subr.bf16.mxu1 %v4742_v63 }
0x104c   : > { %4271 = vmatprep.mubr.bf16.mxu1 %v4749_v36 }
0x104e   : > { %4256 = vmatpush3.bf16.msra.mxu0 %v4742_v63  ;;  %4285 = vmatpush3.bf16.msra.mxu1 %v4742_v63 }
0x104f   : > { %4257 = vmatprep.subr.bf16.mxu0 %v4743_v60  ;;  %4278 = vmatprep.subr.bf16.mxu1 %v4743_v60 }
0x1052   : > { %4258 = vmatpush3.bf16.msra.mxu0 %v4743_v60  ;;  %4286 = vmatpush3.bf16.msra.mxu1 %v4743_v60 }
0x1053   : > { %4259 = vmatprep.subr.bf16.mxu0 %v4744_v62  ;;  %4279 = vmatprep.subr.bf16.mxu1 %v4744_v62 }
0x1056   : > { %4260 = vmatpush3.bf16.msra.mxu0 %v4744_v62  ;;  %4287 = vmatpush3.bf16.msra.mxu1 %v4744_v62 }
0x1057   : > { %4261 = vmatprep.subr.bf16.mxu0 %v4745_v48  ;;  %4280 = vmatprep.subr.bf16.mxu1 %v4745_v48 }
0x105a   : > { %4262 = vmatpush3.bf16.msra.mxu0 %v4745_v48  ;;  %4288 = vmatpush3.bf16.msra.mxu1 %v4745_v48 }
0x105b   : > { %4263 = vmatprep.subr.bf16.mxu0 %v4746_v45  ;;  %4281 = vmatprep.subr.bf16.mxu1 %v4746_v45 }
0x105e   : > { %4264 = vmatpush3.bf16.msra.mxu0 %v4746_v45  ;;  %4289 = vmatpush3.bf16.msra.mxu1 %v4746_v45 }
0x105f   : > { %4265 = vmatprep.subr.bf16.mxu0 %v4747_v39  ;;  %4282 = vmatprep.subr.bf16.mxu1 %v4747_v39 }
0x1062   : > { %4266 = vmatpush3.bf16.msra.mxu0 %v4747_v39  ;;  %4290 = vmatpush3.bf16.msra.mxu1 %v4747_v39 }
0x1065   : > { %4268 = vmatmul.mubr.bf16.vlgmr.msra.gmra.mxu0 %v4750_v16  ;;  %4272 = vmatmul.mubr.bf16.vlgmr.msra.gmra.mxu1 %v4751_v37 }
0x1125   : > { %v4269_v18 = vpop.f32.mrf.mxu0  ;;  %v4273_v55 = vpop.f32.mrf.mxu1 }
0x1126   : > { %v3835_v47 = vadd.f32 %v4269_v18, %v4155_v34  ;;  %v3851_v3 = vadd.f32 %v4273_v55, %v4155_v34 }
0x1127   : > { %v3826_v29 = vpop.f32.mrf.mxu0  ;;  %v3842_v54 = vpop.f32.mrf.mxu1 }
0x1128   : > { %3859 = vst [vmem:[%s4914_s15 + $0x10] sm:$0xff] %v3835_v47  ;;  %3863 = vst [vmem:[%s4914_s15 + $0x30] sm:$0xff] %v3851_v3  ;;  %v3827_v33 = vadd.f32 %v4155_v34, %v3826_v29  ;;  %v3843_v30 = vadd.f32 %v4155_v34, %v3842_v54 }
0x1129   : > { %v4270_v21 = vpop.f32.mrf.mxu0  ;;  %v4274_v22 = vpop.f32.mrf.mxu1 }
0x112a   : > { %3857 = vst [vmem:[%s4914_s15] sm:$0xff] %v3827_v33  ;;  %3861 = vst [vmem:[%s4914_s15 + $0x20] sm:$0xff] %v3843_v30  ;;  %v3838_v25 = vadd.f32 %v4270_v21, %v4155_v34  ;;  %v3854_v26 = vadd.f32 %v4274_v22, %v4155_v34  ;;  %3871 = sbr.rel (!%p4873_p5) target bundleno = 4408 (0x1138), region = 117 }
0x112b   : > { %v3829_v28 = vpop.f32.mrf.mxu0  ;;  %v3845_v31 = vpop.f32.mrf.mxu1 }
0x112c   : > { %3860 = vst [vmem:[%s4914_s15 + $0x18] sm:$0xff] %v3838_v25  ;;  %3864 = vst [vmem:[%s4914_s15 + $0x38] sm:$0xff] %v3854_v26  ;;  %v3830_v32 = vadd.f32 %v4155_v34, %v3829_v28  ;;  %v3846_v35 = vadd.f32 %v4155_v34, %v3845_v31 }
0x112e   : > { %3858 = vst [vmem:[%s4914_s15 + $0x8] sm:$0xff] %v3830_v32  ;;  %3862 = vst [vmem:[%s4914_s15 + $0x28] sm:$0xff] %v3846_v35 }
0x112f   : > { %v3920_v10 = vld [vmem:[%s4914_s15 + $0x10] sm:$0xff] }
0x1130   : > { %3921 = vst [vmem:[%s3873_s30 + $0x30] sm:$0xff] %v3920_v10  ;;  %v3928_v49 = vld [vmem:[%s4914_s15 + $0x30] sm:$0xff] }
0x1131   : > { %v3916_v23 = vld [vmem:[%s4914_s15] sm:$0xff]  ;;  %3929 = vst [vmem:[%s3873_s30 + $0x90] sm:$0xff] %v3928_v49 }
0x1132   : > { %v3924_v1 = vld [vmem:[%s4914_s15 + $0x20] sm:$0xff]  ;;  %3917 = vst [vmem:[%s3873_s30] sm:$0xff] %v3916_v23 }
0x1133   : > { %v3922_v52 = vld [vmem:[%s4914_s15 + $0x18] sm:$0xff]  ;;  %3925 = vst [vmem:[%s3873_s30 + $0x60] sm:$0xff] %v3924_v1 }
0x1134   : > { %3923 = vst [vmem:[%s3873_s30 + $0x48] sm:$0xff] %v3922_v52  ;;  %v3930_v12 = vld [vmem:[%s4914_s15 + $0x38] sm:$0xff] }
0x1135   : > { %v3918_v15 = vld [vmem:[%s4914_s15 + $0x8] sm:$0xff]  ;;  %3931 = vst [vmem:[%s3873_s30 + $0xa8] sm:$0xff] %v3930_v12 }
0x1136   : > { %v3926_v0 = vld [vmem:[%s4914_s15 + $0x28] sm:$0xff]  ;;  %3919 = vst [vmem:[%s3873_s30 + $0x18] sm:$0xff] %v3918_v15 }
0x1137   : > { %3927 = vst [vmem:[%s3873_s30 + $0x78] sm:$0xff] %v3926_v0 }
0x1138 PF: > { %p19_p12 = scmp.ge.s32.totalorder %s4861_s25, 5   ;;  %s6816_s21 = smov %s4770_s22 }
0x1139   : > { %s6817_s22 = smov %s4871_s28  ;;  %s6818_s23 = smov %s4861_s25 }
0x113a   :  { %21 = sbr.rel (!%p19_p12) target bundleno = 2 (0x2), region = 206 }

</bundles_post_ra>
